<compile_context>
chip_gen: v7x
topology: tpu7x:2x2x1
jax: 0.10.0
libtpu: 0.0.40
codegen_flags: <defaults>
</compile_context>

<pallas_src>
import math
from functools import partial

import jax
import jax.numpy as jnp
from jax.experimental import pallas as pl
from jax.experimental.pallas import tpu as pltpu

_VMEM_LIMIT = 64 * 1024 * 1024


def _round_up(x, m):
    return ((x + m - 1) // m) * m


def _pad_c(c):
    # pad channel dims up to the lane width when narrow
    return c if c >= 128 else 128


# ----------------------------- Pallas kernels -------------------------------

def _bnrelu_kernel(x_ref, s_ref, b_ref, o_ref):
    # out = relu(x * scale + bias)   (eval-mode folded BatchNorm)
    x = x_ref[...]
    o_ref[...] = jnp.maximum(x * s_ref[...] + b_ref[...], 0.0).astype(o_ref.dtype)


def _gemm_kernel(p_ref, w_ref, o_ref):
    # single MXU GEMM, bf16 operands, f32 accumulation
    acc = jnp.dot(p_ref[...], w_ref[...], preferred_element_type=jnp.float32)
    o_ref[...] = acc.astype(o_ref.dtype)


def _gemm_bnrelu_kernel(p_ref, w_ref, s_ref, b_ref, o_ref):
    # GEMM with fused folded-BN + ReLU epilogue
    acc = jnp.dot(p_ref[...], w_ref[...], preferred_element_type=jnp.float32)
    o_ref[...] = jnp.maximum(acc * s_ref[...] + b_ref[...], 0.0).astype(o_ref.dtype)


def _gemm_add_kernel(p_ref, w_ref, r_ref, o_ref):
    # GEMM with fused residual add epilogue
    acc = jnp.dot(p_ref[...], w_ref[...], preferred_element_type=jnp.float32)
    o_ref[...] = (acc + r_ref[...].astype(jnp.float32)).astype(o_ref.dtype)


def _compiler_params():
    return pltpu.CompilerParams(dimension_semantics=("parallel",),
                                vmem_limit_bytes=_VMEM_LIMIT)


# ------------------------------ JAX wrappers ---------------------------------

def bnrelu(x, scale, bias, out_dtype=jnp.bfloat16):
    """x: (N,H,W,C) f32; scale/bias: (C,) folded BN params. Tiled elementwise kernel."""
    N, H, W, C = x.shape
    R = N * H * W
    x2 = x.reshape(R, C)
    tr = min(1024, _round_up(R, 16))
    Rp = _round_up(R, tr)
    if Rp != R:
        x2 = jnp.pad(x2, ((0, Rp - R), (0, 0)))
    out = pl.pallas_call(
        _bnrelu_kernel,
        out_shape=jax.ShapeDtypeStruct((Rp, C), out_dtype),
        grid=(Rp // tr,),
        in_specs=[pl.BlockSpec((tr, C), lambda i: (i, 0)),
                  pl.BlockSpec((1, C), lambda i: (0, 0)),
                  pl.BlockSpec((1, C), lambda i: (0, 0))],
        out_specs=pl.BlockSpec((tr, C), lambda i: (i, 0)),
        compiler_params=_compiler_params(),
    )(x2, scale.reshape(1, C).astype(jnp.float32),
      bias.reshape(1, C).astype(jnp.float32))
    return out[:R].reshape(N, H, W, C)


def conv2d_fused(x, w, *, stride=1, padding=0, bn_scale=None, bn_bias=None,
                 residual=None, out_dtype=jnp.float32):
    """NHWC KxK conv (bias-free) as one tiled Pallas GEMM.

    Patches laid out as (M, KH*KW*Cin), weights as (KH*KW*Cin, Cout), bf16 operands,
    f32 accumulation.  Optional fused epilogue: folded-BN+ReLU (bn_scale/bn_bias)
    or residual add.  Patch extraction / padding is plain-JAX glue.
    """
    N, H, W, Cin = x.shape
    KH, KW, _, Cout = w.shape
    Ho = (H + 2 * padding - KH) // stride + 1
    Wo = (W + 2 * padding - KW) // stride + 1
    M = N * Ho * Wo
    Kd = KH * KW * Cin

    xp = x
    if padding:
        xp = jnp.pad(x, ((0, 0), (padding, padding), (padding, padding), (0, 0)))
    xp = xp.astype(jnp.bfloat16)

    taps = []
    for kh in range(KH):
        for kw in range(KW):
            taps.append(jax.lax.slice(
                xp, (0, kh, kw, 0),
                (N, kh + (Ho - 1) * stride + 1, kw + (Wo - 1) * stride + 1, Cin),
                (1, stride, stride, 1)))
    p = jnp.stack(taps, axis=3).reshape(M, Kd)          # (M, K*K*Cin), tap-major
    w2 = w.reshape(Kd, Cout).astype(jnp.bfloat16)        # (K*K*Cin, Cout)

    tm = min(256, _round_up(M, 16))                      # 256 rows fits v7x 64 MiB VMEM
    Mp = _round_up(M, tm)
    if Mp != M:
        p = jnp.pad(p, ((0, Mp - M), (0, 0)))

    grid = (Mp // tm,)
    p_spec = pl.BlockSpec((tm, Kd), lambda i: (i, 0))
    w_spec = pl.BlockSpec((Kd, Cout), lambda i: (0, 0))
    v_spec = pl.BlockSpec((1, Cout), lambda i: (0, 0))
    o_spec = pl.BlockSpec((tm, Cout), lambda i: (i, 0))
    out_shape = jax.ShapeDtypeStruct((Mp, Cout), out_dtype)

    if bn_scale is not None:
        o2 = pl.pallas_call(
            _gemm_bnrelu_kernel, out_shape=out_shape, grid=grid,
            in_specs=[p_spec, w_spec, v_spec, v_spec], out_specs=o_spec,
            compiler_params=_compiler_params(),
        )(p, w2, bn_scale.reshape(1, Cout).astype(jnp.float32),
          bn_bias.reshape(1, Cout).astype(jnp.float32))
    elif residual is not None:
        r = residual.reshape(M, Cout).astype(jnp.float32)
        if Mp != M:
            r = jnp.pad(r, ((0, Mp - M), (0, 0)))
        o2 = pl.pallas_call(
            _gemm_add_kernel, out_shape=out_shape, grid=grid,
            in_specs=[p_spec, w_spec, o_spec], out_specs=o_spec,
            compiler_params=_compiler_params(),
        )(p, w2, r)
    else:
        o2 = pl.pallas_call(
            _gemm_kernel, out_shape=out_shape, grid=grid,
            in_specs=[p_spec, w_spec], out_specs=o_spec,
            compiler_params=_compiler_params(),
        )(p, w2)

    return o2[:M].reshape(N, Ho, Wo, Cout)


# ----------------------- BasicBlock / NetworkBlock ---------------------------

def basic_block_fwd(x, p, stride):
    """Pre-activation Wide-ResNet BasicBlock (eval mode, dropRate=0), NHWC, channel-padded."""
    equal_in_out = "short_w" not in p
    a = bnrelu(x, p["bn1_scale"], p["bn1_bias"])                   # relu(bn1(x)), bf16
    a2 = conv2d_fused(a, p["conv1_w"], stride=stride, padding=1,   # conv1 + bn2 + relu fused
                      bn_scale=p["bn2_scale"], bn_bias=p["bn2_bias"],
                      out_dtype=jnp.bfloat16)
    # TODO(synk): F.dropout path (dropRate>0, training=True) not implemented; dropRate=0 here.
    if equal_in_out:
        res = x
    else:
        res = conv2d_fused(a, p["short_w"], stride=stride, padding=0,
                           out_dtype=jnp.float32)                  # 1x1 shortcut
    return conv2d_fused(a2, p["conv2_w"], stride=1, padding=1,
                        residual=res, out_dtype=jnp.float32)       # conv2 + residual add


def _pad_block_params(p, cin_p, cout_p):
    def padv(v, n):
        return jnp.pad(v, (0, n - v.shape[0]))
    def padw(w, ci, co):
        return jnp.pad(w, ((0, 0), (0, 0), (0, ci - w.shape[2]), (0, co - w.shape[3])))
    q = dict(
        bn1_scale=padv(p["bn1_scale"], cin_p),
        bn1_bias=padv(p["bn1_bias"], cin_p),
        conv1_w=padw(p["conv1_w"], cin_p, cout_p),
        bn2_scale=padv(p["bn2_scale"], cout_p),
        bn2_bias=padv(p["bn2_bias"], cout_p),
        conv2_w=padw(p["conv2_w"], cout_p, cout_p),
    )
    if "short_w" in p:
        q["short_w"] = padw(p["short_w"], cin_p, cout_p)
    return q


def network_block_fwd(x_nchw, params_list, stride):
    """NetworkBlock.forward: sequential BasicBlocks. Input/output are NCHW."""
    x = jnp.transpose(x_nchw, (0, 2, 3, 1)).astype(jnp.float32)    # NCHW -> NHWC
    c_in = x.shape[-1]
    c_out = params_list[0]["conv1_w"].shape[3]
    cin_p, cout_p = _pad_c(c_in), _pad_c(c_out)
    if cin_p != c_in:
        x = jnp.pad(x, ((0, 0), (0, 0), (0, 0), (0, cin_p - c_in)))
    for i, p in enumerate(params_list):
        pp = _pad_block_params(p, cin_p if i == 0 else cout_p, cout_p)
        x = basic_block_fwd(x, pp, stride if i == 0 else 1)
    x = x[..., :c_out]
    return jnp.transpose(x, (0, 3, 1, 2))                          # NHWC -> NCHW


# ---------------------------- Parameter init ----------------------------------

def _init_basic_block_params(key, in_c, out_c):
    ks = jax.random.split(key, 7)
    eps = 1e-5

    def bn_fold(kg, kb, c):
        gamma = 1.0 + 0.1 * jax.random.normal(kg, (c,), jnp.float32)
        beta = 0.1 * jax.random.normal(kb, (c,), jnp.float32)
        # fresh BN stats (running_mean=0, running_var=1), eval-mode fold
        scale = gamma / jnp.sqrt(1.0 + eps)
        bias = beta
        return scale, bias

    def conv_w(k, kh, kw, ci, co):
        fan_out = kh * kw * co
        return jax.random.normal(k, (kh, kw, ci, co), jnp.float32) * math.sqrt(2.0 / fan_out)

    s1, b1 = bn_fold(ks[0], ks[1], in_c)
    s2, b2 = bn_fold(ks[2], ks[3], out_c)
    p = dict(
        bn1_scale=s1, bn1_bias=b1,
        conv1_w=conv_w(ks[4], 3, 3, in_c, out_c),
        bn2_scale=s2, bn2_bias=b2,
        conv2_w=conv_w(ks[5], 3, 3, out_c, out_c),
    )
    if in_c != out_c:
        p["short_w"] = conv_w(ks[6], 1, 1, in_c, out_c)
    return p


def init_network_block_params(key, nb_layers, in_planes, out_planes):
    keys = jax.random.split(key, nb_layers)
    return [
        _init_basic_block_params(keys[i], in_planes if i == 0 else out_planes, out_planes)
        for i in range(nb_layers)
    ]


# ------------------------------- References ------------------------------------

_DN = ("NHWC", "HWIO", "NHWC")


def _ref_basic_block_f32(x, p, stride):
    hp = jax.lax.Precision.HIGHEST
    equal_in_out = "short_w" not in p
    a = jnp.maximum(x * p["bn1_scale"] + p["bn1_bias"], 0.0)
    h = jax.lax.conv_general_dilated(a, p["conv1_w"], (stride, stride), ((1, 1), (1, 1)),
                                     dimension_numbers=_DN, precision=hp)
    h = jnp.maximum(h * p["bn2_scale"] + p["bn2_bias"], 0.0)
    h = jax.lax.conv_general_dilated(h, p["conv2_w"], (1, 1), ((1, 1), (1, 1)),
                                     dimension_numbers=_DN, precision=hp)
    res = x if equal_in_out else jax.lax.conv_general_dilated(
        a, p["short_w"], (stride, stride), ((0, 0), (0, 0)),
        dimension_numbers=_DN, precision=hp)
    return res + h


def _ref_basic_block_matched(x, p, stride):
    # same precision choices as the Pallas path: bf16 MXU operands, f32 accumulation
    bf = jnp.bfloat16
    equal_in_out = "short_w" not in p
    a = jnp.maximum(x * p["bn1_scale"] + p["bn1_bias"], 0.0).astype(bf)
    h = jax.lax.conv_general_dilated(a, p["conv1_w"].astype(bf), (stride, stride),
                                     ((1, 1), (1, 1)), dimension_numbers=_DN,
                                     preferred_element_type=jnp.float32)
    a2 = jnp.maximum(h * p["bn2_scale"] + p["bn2_bias"], 0.0).astype(bf)
    h2 = jax.lax.conv_general_dilated(a2, p["conv2_w"].astype(bf), (1, 1),
                                      ((1, 1), (1, 1)), dimension_numbers=_DN,
                                      preferred_element_type=jnp.float32)
    res = x if equal_in_out else jax.lax.conv_general_dilated(
        a, p["short_w"].astype(bf), (stride, stride), ((0, 0), (0, 0)),
        dimension_numbers=_DN, preferred_element_type=jnp.float32)
    return h2 + res


def _ref_network_block(x_nchw, params_list, stride, matched=False):
    x = jnp.transpose(x_nchw, (0, 2, 3, 1)).astype(jnp.float32)
    blk = _ref_basic_block_matched if matched else _ref_basic_block_f32
    for i, p in enumerate(params_list):
        x = blk(x, p, stride if i == 0 else 1)
    return jnp.transpose(x, (0, 3, 1, 2))


# --------------------------------- Main ----------------------------------------

if __name__ == "__main__":
    key = jax.random.PRNGKey(0)
    kx, kp = jax.random.split(key)

    # NetworkBlock(nb_layers=2, in_planes=4, out_planes=8, block=BasicBlock, stride=2, dropRate=0.0)
    N, C_in, H, W = 2, 4, 16, 16
    nb_layers, out_planes, stride = 2, 8, 2

    x_nchw = jax.random.normal(kx, (N, C_in, H, W), jnp.float32)
    params = init_network_block_params(kp, nb_layers, C_in, out_planes)

    fwd = jax.jit(network_block_fwd, static_argnums=(2,))
    out = jax.block_until_ready(fwd(x_nchw, params, stride))

    assert out.shape == (N, out_planes, H // stride, W // stride), out.shape

    # tight check vs an XLA reference with matched precision (bf16 MXU operands, f32 accum)
    ref_m = jax.block_until_ready(_ref_network_block(x_nchw, params, stride, matched=True))
    if not jnp.allclose(out, ref_m, atol=5e-3, rtol=5e-3):
        err = jnp.max(jnp.abs(out - ref_m))
        raise AssertionError(f"Pallas NetworkBlock mismatch vs matched-precision ref (max {err})")

    # loose sanity check vs the full-f32 reference (bf16 operand rounding is the only delta)
    ref_f = jax.block_until_ready(_ref_network_block(x_nchw, params, stride, matched=False))
    if not jnp.allclose(out, ref_f, atol=5e-2, rtol=5e-2):
        err = jnp.max(jnp.abs(out - ref_f))
        raise AssertionError(f"Pallas NetworkBlock mismatch vs f32 ref (max {err})")

    print("KERNEL_OK")
</pallas_src>

<mosaic_0001>
module attributes {stable_mosaic.version = 11 : i64} {
  func.func @_bnrelu_kernel(%arg0: i32, %arg1: memref<512x128xf32, #tpu.memory_space<vmem>>, %arg2: memref<1x128xf32, #tpu.memory_space<vmem>>, %arg3: memref<1x128xf32, #tpu.memory_space<vmem>>, %arg4: memref<512x128xbf16, #tpu.memory_space<vmem>>) attributes {dimension_semantics = [#tpu.dimension_semantics<parallel>], iteration_bounds = array<i64: 1>, scalar_prefetch = 0 : i64, scratch_operands = 0 : i64, tpu.core_type = #tpu.core_type<tc>, window_params = [{transform_indices = @transform_0, window_bounds = array<i64: 512, 128>}, {pipeline_mode = #tpu.pipeline_mode<synchronous>, transform_indices = @transform_1, window_bounds = array<i64: 1, 128>}, {pipeline_mode = #tpu.pipeline_mode<synchronous>, transform_indices = @transform_2, window_bounds = array<i64: 1, 128>}, {transform_indices = @transform_3, window_bounds = array<i64: 512, 128>}]} {
    %c0 = arith.constant 0 : index
    %c0_0 = arith.constant 0 : index
    %0 = vector.load %arg1[%c0, %c0_0] : memref<512x128xf32, #tpu.memory_space<vmem>>, vector<512x128xf32>
    %c0_1 = arith.constant 0 : index
    %c0_2 = arith.constant 0 : index
    %1 = vector.load %arg2[%c0_1, %c0_2] : memref<1x128xf32, #tpu.memory_space<vmem>>, vector<1x128xf32>
    %2 = vector.broadcast %1 : vector<1x128xf32> to vector<512x128xf32>
    %3 = arith.mulf %0, %2 : vector<512x128xf32>
    %c0_3 = arith.constant 0 : index
    %c0_4 = arith.constant 0 : index
    %4 = vector.load %arg3[%c0_3, %c0_4] : memref<1x128xf32, #tpu.memory_space<vmem>>, vector<1x128xf32>
    %5 = vector.broadcast %4 : vector<1x128xf32> to vector<512x128xf32>
    %6 = arith.addf %3, %5 : vector<512x128xf32>
    %cst = arith.constant 0.000000e+00 : f32
    %7 = vector.broadcast %cst : f32 to vector<512x128xf32>
    %8 = arith.maximumf %6, %7 : vector<512x128xf32>
    %9 = arith.truncf %8 : vector<512x128xf32> to vector<512x128xbf16>
    %c0_5 = arith.constant 0 : index
    %c0_6 = arith.constant 0 : index
    %10 = vector.load %arg4[%c0_5, %c0_6] : memref<512x128xbf16, #tpu.memory_space<vmem>>, vector<512x128xbf16>
    tpu.vector_store %arg4[%c0_5, %c0_6], %9 {strides = array<i32>} : memref<512x128xbf16, #tpu.memory_space<vmem>>, vector<512x128xbf16>,
    return
  }
  func.func @transform_0(%arg0: i32) -> (i32, i32) {
    %c0_i32 = arith.constant 0 : i32
    %c0_i32_0 = arith.constant 0 : i32
    return %arg0, %c0_i32 : i32, i32
  }
  func.func @transform_1(%arg0: i32) -> (i32, i32) {
    %c0_i32 = arith.constant 0 : i32
    %c0_i32_0 = arith.constant 0 : i32
    %c0_i32_1 = arith.constant 0 : i32
    return %c0_i32, %c0_i32_0 : i32, i32
  }
  func.func @transform_2(%arg0: i32) -> (i32, i32) {
    %c0_i32 = arith.constant 0 : i32
    %c0_i32_0 = arith.constant 0 : i32
    %c0_i32_1 = arith.constant 0 : i32
    return %c0_i32, %c0_i32_0 : i32, i32
  }
  func.func @transform_3(%arg0: i32) -> (i32, i32) {
    %c0_i32 = arith.constant 0 : i32
    %c0_i32_0 = arith.constant 0 : i32
    return %arg0, %c0_i32 : i32, i32
  }
}

module attributes {stable_mosaic.version = 11 : i64} {
  func.func @_gemm_bnrelu_kernel(%arg0: i32, %arg1: memref<128x1152xbf16, #tpu.memory_space<vmem>>, %arg2: memref<1152x128xbf16, #tpu.memory_space<vmem>>, %arg3: memref<1x128xf32, #tpu.memory_space<vmem>>, %arg4: memref<1x128xf32, #tpu.memory_space<vmem>>, %arg5: memref<128x128xbf16, #tpu.memory_space<vmem>>) attributes {dimension_semantics = [#tpu.dimension_semantics<parallel>], iteration_bounds = array<i64: 1>, scalar_prefetch = 0 : i64, scratch_operands = 0 : i64, tpu.core_type = #tpu.core_type<tc>, window_params = [{transform_indices = @transform_0, window_bounds = array<i64: 128, 1152>}, {pipeline_mode = #tpu.pipeline_mode<synchronous>, transform_indices = @transform_1, window_bounds = array<i64: 1152, 128>}, {pipeline_mode = #tpu.pipeline_mode<synchronous>, transform_indices = @transform_2, window_bounds = array<i64: 1, 128>}, {pipeline_mode = #tpu.pipeline_mode<synchronous>, transform_indices = @transform_3, window_bounds = array<i64: 1, 128>}, {transform_indices = @transform_4, window_bounds = array<i64: 128, 128>}]} {
    %c0 = arith.constant 0 : index
    %c0_0 = arith.constant 0 : index
    %0 = vector.load %arg1[%c0, %c0_0] : memref<128x1152xbf16, #tpu.memory_space<vmem>>, vector<128x1152xbf16>
    %c0_1 = arith.constant 0 : index
    %c0_2 = arith.constant 0 : index
    %1 = vector.load %arg2[%c0_1, %c0_2] : memref<1152x128xbf16, #tpu.memory_space<vmem>>, vector<1152x128xbf16>
    %cst = arith.constant dense<0.000000e+00> : vector<128x128xf32>
    %2 = tpu.matmul %0, %1, %cst {dimension_numbers = #tpu.dot_dimension_numbers<[1], [0], [0], [1], [0, 0, 1, 1], [], []>} : vector<128x1152xbf16>, vector<1152x128xbf16>, vector<128x128xf32> -> vector<128x128xf32>
    %c0_3 = arith.constant 0 : index
    %c0_4 = arith.constant 0 : index
    %3 = vector.load %arg3[%c0_3, %c0_4] : memref<1x128xf32, #tpu.memory_space<vmem>>, vector<1x128xf32>
    %4 = vector.broadcast %3 : vector<1x128xf32> to vector<128x128xf32>
    %5 = arith.mulf %2, %4 : vector<128x128xf32>
    %c0_5 = arith.constant 0 : index
    %c0_6 = arith.constant 0 : index
    %6 = vector.load %arg4[%c0_5, %c0_6] : memref<1x128xf32, #tpu.memory_space<vmem>>, vector<1x128xf32>
    %7 = vector.broadcast %6 : vector<1x128xf32> to vector<128x128xf32>
    %8 = arith.addf %5, %7 : vector<128x128xf32>
    %cst_7 = arith.constant 0.000000e+00 : f32
    %9 = vector.broadcast %cst_7 : f32 to vector<128x128xf32>
    %10 = arith.maximumf %8, %9 : vector<128x128xf32>
    %11 = arith.truncf %10 : vector<128x128xf32> to vector<128x128xbf16>
    %c0_8 = arith.constant 0 : index
    %c0_9 = arith.constant 0 : index
    %12 = vector.load %arg5[%c0_8, %c0_9] : memref<128x128xbf16, #tpu.memory_space<vmem>>, vector<128x128xbf16>
    tpu.vector_store %arg5[%c0_8, %c0_9], %11 {strides = array<i32>} : memref<128x128xbf16, #tpu.memory_space<vmem>>, vector<128x128xbf16>,
    return
  }
  func.func @transform_0(%arg0: i32) -> (i32, i32) {
    %c0_i32 = arith.constant 0 : i32
    %c0_i32_0 = arith.constant 0 : i32
    return %arg0, %c0_i32 : i32, i32
  }
  func.func @transform_1(%arg0: i32) -> (i32, i32) {
    %c0_i32 = arith.constant 0 : i32
    %c0_i32_0 = arith.constant 0 : i32
    %c0_i32_1 = arith.constant 0 : i32
    return %c0_i32, %c0_i32_0 : i32, i32
  }
  func.func @transform_2(%arg0: i32) -> (i32, i32) {
    %c0_i32 = arith.constant 0 : i32
    %c0_i32_0 = arith.constant 0 : i32
    %c0_i32_1 = arith.constant 0 : i32
    return %c0_i32, %c0_i32_0 : i32, i32
  }
  func.func @transform_3(%arg0: i32) -> (i32, i32) {
    %c0_i32 = arith.constant 0 : i32
    %c0_i32_0 = arith.constant 0 : i32
    %c0_i32_1 = arith.constant 0 : i32
    return %c0_i32, %c0_i32_0 : i32, i32
  }
  func.func @transform_4(%arg0: i32) -> (i32, i32) {
    %c0_i32 = arith.constant 0 : i32
    %c0_i32_0 = arith.constant 0 : i32
    return %arg0, %c0_i32 : i32, i32
  }
}

module attributes {stable_mosaic.version = 11 : i64} {
  func.func @_gemm_kernel(%arg0: i32, %arg1: memref<128x128xbf16, #tpu.memory_space<vmem>>, %arg2: memref<128x128xbf16, #tpu.memory_space<vmem>>, %arg3: memref<128x128xf32, #tpu.memory_space<vmem>>) attributes {dimension_semantics = [#tpu.dimension_semantics<parallel>], iteration_bounds = array<i64: 1>, scalar_prefetch = 0 : i64, scratch_operands = 0 : i64, tpu.core_type = #tpu.core_type<tc>, window_params = [{transform_indices = @transform_0, window_bounds = array<i64: 128, 128>}, {pipeline_mode = #tpu.pipeline_mode<synchronous>, transform_indices = @transform_1, window_bounds = array<i64: 128, 128>}, {transform_indices = @transform_2, window_bounds = array<i64: 128, 128>}]} {
    %c0 = arith.constant 0 : index
    %c0_0 = arith.constant 0 : index
    %0 = vector.load %arg1[%c0, %c0_0] : memref<128x128xbf16, #tpu.memory_space<vmem>>, vector<128x128xbf16>
    %c0_1 = arith.constant 0 : index
    %c0_2 = arith.constant 0 : index
    %1 = vector.load %arg2[%c0_1, %c0_2] : memref<128x128xbf16, #tpu.memory_space<vmem>>, vector<128x128xbf16>
    %cst = arith.constant dense<0.000000e+00> : vector<128x128xf32>
    %2 = tpu.matmul %0, %1, %cst {dimension_numbers = #tpu.dot_dimension_numbers<[1], [0], [0], [1], [0, 0, 1, 1], [], []>} : vector<128x128xbf16>, vector<128x128xbf16>, vector<128x128xf32> -> vector<128x128xf32>
    %c0_3 = arith.constant 0 : index
    %c0_4 = arith.constant 0 : index
    %3 = vector.load %arg3[%c0_3, %c0_4] : memref<128x128xf32, #tpu.memory_space<vmem>>, vector<128x128xf32>
    tpu.vector_store %arg3[%c0_3, %c0_4], %2 {strides = array<i32>} : memref<128x128xf32, #tpu.memory_space<vmem>>, vector<128x128xf32>,
    return
  }
  func.func @transform_0(%arg0: i32) -> (i32, i32) {
    %c0_i32 = arith.constant 0 : i32
    %c0_i32_0 = arith.constant 0 : i32
    return %arg0, %c0_i32 : i32, i32
  }
  func.func @transform_1(%arg0: i32) -> (i32, i32) {
    %c0_i32 = arith.constant 0 : i32
    %c0_i32_0 = arith.constant 0 : i32
    %c0_i32_1 = arith.constant 0 : i32
    return %c0_i32, %c0_i32_0 : i32, i32
  }
  func.func @transform_2(%arg0: i32) -> (i32, i32) {
    %c0_i32 = arith.constant 0 : i32
    %c0_i32_0 = arith.constant 0 : i32
    return %arg0, %c0_i32 : i32, i32
  }
}

module attributes {stable_mosaic.version = 11 : i64} {
  func.func @_gemm_add_kernel(%arg0: i32, %arg1: memref<128x1152xbf16, #tpu.memory_space<vmem>>, %arg2: memref<1152x128xbf16, #tpu.memory_space<vmem>>, %arg3: memref<128x128xf32, #tpu.memory_space<vmem>>, %arg4: memref<128x128xf32, #tpu.memory_space<vmem>>) attributes {dimension_semantics = [#tpu.dimension_semantics<parallel>], iteration_bounds = array<i64: 1>, scalar_prefetch = 0 : i64, scratch_operands = 0 : i64, tpu.core_type = #tpu.core_type<tc>, window_params = [{transform_indices = @transform_0, window_bounds = array<i64: 128, 1152>}, {pipeline_mode = #tpu.pipeline_mode<synchronous>, transform_indices = @transform_1, window_bounds = array<i64: 1152, 128>}, {transform_indices = @transform_2, window_bounds = array<i64: 128, 128>}, {transform_indices = @transform_3, window_bounds = array<i64: 128, 128>}]} {
    %c0 = arith.constant 0 : index
    %c0_0 = arith.constant 0 : index
    %0 = vector.load %arg1[%c0, %c0_0] : memref<128x1152xbf16, #tpu.memory_space<vmem>>, vector<128x1152xbf16>
    %c0_1 = arith.constant 0 : index
    %c0_2 = arith.constant 0 : index
    %1 = vector.load %arg2[%c0_1, %c0_2] : memref<1152x128xbf16, #tpu.memory_space<vmem>>, vector<1152x128xbf16>
    %cst = arith.constant dense<0.000000e+00> : vector<128x128xf32>
    %2 = tpu.matmul %0, %1, %cst {dimension_numbers = #tpu.dot_dimension_numbers<[1], [0], [0], [1], [0, 0, 1, 1], [], []>} : vector<128x1152xbf16>, vector<1152x128xbf16>, vector<128x128xf32> -> vector<128x128xf32>
    %c0_3 = arith.constant 0 : index
    %c0_4 = arith.constant 0 : index
    %3 = vector.load %arg3[%c0_3, %c0_4] : memref<128x128xf32, #tpu.memory_space<vmem>>, vector<128x128xf32>
    %4 = arith.addf %2, %3 : vector<128x128xf32>
    %c0_5 = arith.constant 0 : index
    %c0_6 = arith.constant 0 : index
    %5 = vector.load %arg4[%c0_5, %c0_6] : memref<128x128xf32, #tpu.memory_space<vmem>>, vector<128x128xf32>
    tpu.vector_store %arg4[%c0_5, %c0_6], %4 {strides = array<i32>} : memref<128x128xf32, #tpu.memory_space<vmem>>, vector<128x128xf32>,
    return
  }
  func.func @transform_0(%arg0: i32) -> (i32, i32) {
    %c0_i32 = arith.constant 0 : i32
    %c0_i32_0 = arith.constant 0 : i32
    return %arg0, %c0_i32 : i32, i32
  }
  func.func @transform_1(%arg0: i32) -> (i32, i32) {
    %c0_i32 = arith.constant 0 : i32
    %c0_i32_0 = arith.constant 0 : i32
    %c0_i32_1 = arith.constant 0 : i32
    return %c0_i32, %c0_i32_0 : i32, i32
  }
  func.func @transform_2(%arg0: i32) -> (i32, i32) {
    %c0_i32 = arith.constant 0 : i32
    %c0_i32_0 = arith.constant 0 : i32
    return %arg0, %c0_i32 : i32, i32
  }
  func.func @transform_3(%arg0: i32) -> (i32, i32) {
    %c0_i32 = arith.constant 0 : i32
    %c0_i32_0 = arith.constant 0 : i32
    return %arg0, %c0_i32 : i32, i32
  }
}

module attributes {stable_mosaic.version = 11 : i64} {
  func.func @_bnrelu_kernel(%arg0: i32, %arg1: memref<128x128xf32, #tpu.memory_space<vmem>>, %arg2: memref<1x128xf32, #tpu.memory_space<vmem>>, %arg3: memref<1x128xf32, #tpu.memory_space<vmem>>, %arg4: memref<128x128xbf16, #tpu.memory_space<vmem>>) attributes {dimension_semantics = [#tpu.dimension_semantics<parallel>], iteration_bounds = array<i64: 1>, scalar_prefetch = 0 : i64, scratch_operands = 0 : i64, tpu.core_type = #tpu.core_type<tc>, window_params = [{transform_indices = @transform_0, window_bounds = array<i64: 128, 128>}, {pipeline_mode = #tpu.pipeline_mode<synchronous>, transform_indices = @transform_1, window_bounds = array<i64: 1, 128>}, {pipeline_mode = #tpu.pipeline_mode<synchronous>, transform_indices = @transform_2, window_bounds = array<i64: 1, 128>}, {transform_indices = @transform_3, window_bounds = array<i64: 128, 128>}]} {
    %c0 = arith.constant 0 : index
    %c0_0 = arith.constant 0 : index
    %0 = vector.load %arg1[%c0, %c0_0] : memref<128x128xf32, #tpu.memory_space<vmem>>, vector<128x128xf32>
    %c0_1 = arith.constant 0 : index
    %c0_2 = arith.constant 0 : index
    %1 = vector.load %arg2[%c0_1, %c0_2] : memref<1x128xf32, #tpu.memory_space<vmem>>, vector<1x128xf32>
    %2 = vector.broadcast %1 : vector<1x128xf32> to vector<128x128xf32>
    %3 = arith.mulf %0, %2 : vector<128x128xf32>
    %c0_3 = arith.constant 0 : index
    %c0_4 = arith.constant 0 : index
    %4 = vector.load %arg3[%c0_3, %c0_4] : memref<1x128xf32, #tpu.memory_space<vmem>>, vector<1x128xf32>
    %5 = vector.broadcast %4 : vector<1x128xf32> to vector<128x128xf32>
    %6 = arith.addf %3, %5 : vector<128x128xf32>
    %cst = arith.constant 0.000000e+00 : f32
    %7 = vector.broadcast %cst : f32 to vector<128x128xf32>
    %8 = arith.maximumf %6, %7 : vector<128x128xf32>
    %9 = arith.truncf %8 : vector<128x128xf32> to vector<128x128xbf16>
    %c0_5 = arith.constant 0 : index
    %c0_6 = arith.constant 0 : index
    %10 = vector.load %arg4[%c0_5, %c0_6] : memref<128x128xbf16, #tpu.memory_space<vmem>>, vector<128x128xbf16>
    tpu.vector_store %arg4[%c0_5, %c0_6], %9 {strides = array<i32>} : memref<128x128xbf16, #tpu.memory_space<vmem>>, vector<128x128xbf16>,
    return
  }
  func.func @transform_0(%arg0: i32) -> (i32, i32) {
    %c0_i32 = arith.constant 0 : i32
    %c0_i32_0 = arith.constant 0 : i32
    return %arg0, %c0_i32 : i32, i32
  }
  func.func @transform_1(%arg0: i32) -> (i32, i32) {
    %c0_i32 = arith.constant 0 : i32
    %c0_i32_0 = arith.constant 0 : i32
    %c0_i32_1 = arith.constant 0 : i32
    return %c0_i32, %c0_i32_0 : i32, i32
  }
  func.func @transform_2(%arg0: i32) -> (i32, i32) {
    %c0_i32 = arith.constant 0 : i32
    %c0_i32_0 = arith.constant 0 : i32
    %c0_i32_1 = arith.constant 0 : i32
    return %c0_i32, %c0_i32_0 : i32, i32
  }
  func.func @transform_3(%arg0: i32) -> (i32, i32) {
    %c0_i32 = arith.constant 0 : i32
    %c0_i32_0 = arith.constant 0 : i32
    return %arg0, %c0_i32 : i32, i32
  }
}

</mosaic_0001>

<bundles_post_ra>
// kernel: network_block_fwd.7
= control target key start
LH: loop header
LB: loop body
LE: loop exit
PB: predicated region body
PF: predicated region fallthrough
CT: control target
= control target key end

     0   :  { %8 = vsyncpa [#allocation3], 0  ;;  %s1298_s0 = inlined_call_operand.hbm [shape: f32[512,128], index: 0, kind: input, shape index: {}]   ;;  %s1299_s1 = inlined_call_operand.hbm [shape: f32[1,128], index: 1, kind: input, shape index: {}]   ;;  %s1300_s2 = inlined_call_operand.hbm [shape: f32[1,128], index: 2, kind: input, shape index: {}]   ;;  %s1301_s3 = inlined_call_operand.hbm [shape: bf16[512,128], index: 3, kind: output, shape index: {}]  }
   0x1   :  { %9 = vsyncpa [#allocation6], 0 }
   0x2   :  { %10 = vsyncpa [#allocation4], 0  ;;  %s1083_s12 = smov [#allocation5]   ;;  %s1084_s14 = smov [#allocation2]  }
   0x3   :  { %s29_s13 = sshll.u32 %s1083_s12, 4  ;;  %s16_s15 = sshll.u32 %s1084_s14, 4  ;;  %s30_s13 = int_to_ptr.vmem [resolvable:$true] %s29_s13  ;;  %s1111_s15 = int_to_ptr.vmem [resolvable:$true] %s16_s15 }
   0x4   :  { %s989_s18 = scalar_lea.hbm %s1299_s1, 16 }
   0x5   :  { %p990_p0 = scmp.ne.s32.totalorder %s1299_s1, %s989_s18  ;;  %p993_p1 = scmp.lt.u32.totalorder %s989_s18, %s1299_s1 }
   0x7   :  { %p995_p2 = pnand %p993_p1, %p990_p0 }
   0x9   :  { %998 = shalt.err (!%p995_p2)
}
   0xa   :  { %s999_s23 = scalar_lea.vmem %s30_s13, 16  ;;  %s1003_s24 = scalar_lea.vmem %s30_s13, 32 }
   0xb   :  { %p1000_p3 = scmp.ne.s32.totalorder %s30_s13, %s999_s23  ;;  %p1004_p4 = scmp.lt.s32.totalorder %s30_s13, %s30_s13 }
   0xc   :  { %p1005_p5 = scmp.lt.s32.totalorder %s1003_s24, %s999_s23 }
   0xe   :  { %p1006_p6 = por %p1005_p5, %p1004_p4 }
  0x10   :  { %p1007_p7 = pnand %p1006_p6, %p1000_p3 }
  0x12   :  { %1010 = shalt.err (!%p1007_p7)
}
  0x13   :  { %32 = dma.hbm_to_vmem [thread:$0]  %s1299_s1, 16, %s30_s13, [#allocation6]  }
  0x14   :  { %s1011_s29 = scalar_lea.hbm %s1298_s0, 8192 }
  0x15   :  { %p1012_p8 = scmp.ne.s32.totalorder %s1298_s0, %s1011_s29  ;;  %p1015_p9 = scmp.lt.u32.totalorder %s1011_s29, %s1298_s0 }
  0x17   :  { %p1017_p10 = pnand %p1015_p9, %p1012_p8 }
  0x19   :  { %1020 = shalt.err (!%p1017_p10)
}
  0x1a   :  { %s1021_s7 = scalar_lea.vmem %s1111_s15, 8192  ;;  %p1026_p12 = scmp.lt.s32.totalorder %s1111_s15, %s1111_s15 }
  0x1b   :  { %p1022_p11 = scmp.ne.s32.totalorder %s1111_s15, %s1021_s7  ;;  %p1027_p13 = scmp.lt.s32.totalorder %s1021_s7, %s1021_s7 }
  0x1d   :  { %p1028_p0 = por %p1027_p13, %p1026_p12 }
  0x1f   :  { %p1029_p1 = pnand %p1028_p0, %p1022_p11 }
  0x21   :  { %1032 = shalt.err (!%p1029_p1)
}
  0x22   :  { %s1085_s1 = smov 128   ;;  %s1086_s8 = smov 8  }
  0x23   :  { %22 = dma.hbm_to_vmem [thread:$0]  %s1298_s0, 8192, %s1111_s15, [#allocation3], %s1085_s1, %s1085_s1, %s1086_s8  }
  0x24   :  { %s1087_s11 = smov [#allocation7]   ;;  %s1033_s16 = scalar_lea.hbm %s1300_s2, 16 }
  0x25   :  { %s39_s12 = sshll.u32 %s1087_s11, 4  ;;  %p1034_p2 = scmp.ne.s32.totalorder %s1300_s2, %s1033_s16  ;;  %s40_s12 = int_to_ptr.vmem [resolvable:$true] %s39_s12 }
  0x26   :  { %p1037_p3 = scmp.lt.u32.totalorder %s1033_s16, %s1300_s2 }
  0x28   :  { %p1039_p4 = pnand %p1037_p3, %p1034_p2 }
  0x2a   :  { %1042 = shalt.err (!%p1039_p4)
}
  0x2b   :  { %s1043_s21 = scalar_lea.vmem %s40_s12, 16  ;;  %s1047_s0 = scalar_lea.vmem %s40_s12, 32 }
  0x2c   :  { %p1044_p5 = scmp.ne.s32.totalorder %s40_s12, %s1043_s21  ;;  %p1048_p6 = scmp.lt.s32.totalorder %s40_s12, %s40_s12 }
  0x2d   :  { %p1049_p7 = scmp.lt.s32.totalorder %s1047_s0, %s1043_s21 }
  0x2f   :  { %p1050_p8 = por %p1049_p7, %p1048_p6 }
  0x31   :  { %p1051_p9 = pnand %p1050_p8, %p1044_p5 }
  0x33   :  { %1054 = shalt.err (!%p1051_p9)
}
  0x34   :  { %42 = dma.hbm_to_vmem [thread:$0]  %s1300_s2, 16, %s40_s12, [#allocation6]  }
  0x35   :  { %1077 = dma.done.wait [#allocation3], 8192  }
  0x36   :  { %1078 = vsyncadd [#allocation3], 4294959104 }
  0x37   :  { %1079 = dma.done.wait [#allocation6], 32  }
  0x38   :  { %1080 = vsyncadd [#allocation6], 4294967264  ;;  %v52_v0 = vld [vmem:[#allocation2] sm:$0xff]  ;;  %v53_v1 = vld [vmem:[#allocation2 + $0x8] sm:$0xff]  ;;  %s1088_s2 = smov [#allocation8]  }
  0x39   :  { %v1154_v2 = vld [vmem:[#allocation5] ss:$0 sm:$0xff]  ;;  %v1158_v5 = vld [vmem:[#allocation7] ss:$0 sm:$0xff]  ;;  %v54_v6 = vld [vmem:[#allocation2 + $0x10] sm:$0xff]  ;;  %s647_s23 = sshll.u32 %s1088_s2, 4  ;;  %s648_s23 = int_to_ptr.vmem [resolvable:$true] %s647_s23 }
  0x3a   :  { %v123_v3 = vmul.f32 %v1154_v2, %v52_v0  ;;  %v124_v4 = vmul.f32 %v1154_v2, %v53_v1  ;;  %v55_v7 = vld [vmem:[#allocation2 + $0x18] sm:$0xff]  ;;  %v125_v8 = vmul.f32 %v1154_v2, %v54_v6  ;;  %v56_v10 = vld [vmem:[#allocation2 + $0x20] sm:$0xff]  ;;  %v57_v11 = vld [vmem:[#allocation2 + $0x28] sm:$0xff]  ;;  %s1055_s24 = scalar_lea.vmem %s648_s23, 4096  ;;  %p1060_p11 = scmp.lt.s32.totalorder %s648_s23, %s648_s23 }
  0x3b   :  { %v126_v9 = vmul.f32 %v1154_v2, %v55_v7  ;;  %v58_v12 = vld [vmem:[#allocation2 + $0x30] sm:$0xff]  ;;  %v127_v15 = vmul.f32 %v1154_v2, %v56_v10  ;;  %v128_v16 = vmul.f32 %v1154_v2, %v57_v11  ;;  %v59_v17 = vld [vmem:[#allocation2 + $0x38] sm:$0xff]  ;;  %v60_v22 = vld [vmem:[#allocation2 + $0x40] sm:$0xff]  ;;  %p1056_p10 = scmp.ne.s32.totalorder %s648_s23, %s1055_s24  ;;  %p1061_p12 = scmp.lt.s32.totalorder %s1055_s24, %s1055_s24 }
  0x3c   :  { %v194_v13 = vadd.f32 %v1158_v5, %v123_v3  ;;  %v195_v14 = vadd.f32 %v1158_v5, %v124_v4  ;;  %v196_v18 = vadd.f32 %v1158_v5, %v125_v8  ;;  %v129_v20 = vmul.f32 %v1154_v2, %v58_v12  ;;  %v61_v27 = vld [vmem:[#allocation2 + $0x48] sm:$0xff]  ;;  %v62_v32 = vld [vmem:[#allocation2 + $0x50] sm:$0xff]  ;;  %v63_v33 = vld [vmem:[#allocation2 + $0x58] sm:$0xff] }
  0x3d   :  { %v197_v19 = vadd.f32 %v1158_v5, %v126_v9  ;;  %v130_v21 = vmul.f32 %v1154_v2, %v59_v17  ;;  %v198_v25 = vadd.f32 %v1158_v5, %v127_v15  ;;  %v199_v26 = vadd.f32 %v1158_v5, %v128_v16  ;;  %v64_v38 = vld [vmem:[#allocation2 + $0x60] sm:$0xff]  ;;  %v65_v39 = vld [vmem:[#allocation2 + $0x68] sm:$0xff]  ;;  %v66_v44 = vld [vmem:[#allocation2 + $0x70] sm:$0xff]  ;;  %p1062_p13 = por %p1061_p12, %p1060_p11 }
  0x3e   :  { %v258_v23 = vmax.f32 %v194_v13, 0.0  ;;  %v259_v24 = vmax.f32 %v195_v14, 0.0  ;;  %v260_v28 = vmax.f32 %v196_v18, 0.0  ;;  %v200_v30 = vadd.f32 %v1158_v5, %v129_v20  ;;  %v67_v49 = vld [vmem:[#allocation2 + $0x78] sm:$0xff]  ;;  %v68_v54 = vld [vmem:[#allocation2 + $0x80] sm:$0xff]  ;;  %v69_v63 = vld [vmem:[#allocation2 + $0x88] sm:$0xff] }
  0x3f   :  { %v261_v29 = vmax.f32 %v197_v19, 0.0  ;;  %v201_v31 = vadd.f32 %v1158_v5, %v130_v21  ;;  %v262_v35 = vmax.f32 %v198_v25, 0.0  ;;  %v263_v36 = vmax.f32 %v199_v26, 0.0  ;;  %v70_v6 = vld [vmem:[#allocation2 + $0x90] sm:$0xff]  ;;  %v71_v7 = vld [vmem:[#allocation2 + $0x98] sm:$0xff]  ;;  %v72_v12 = vld [vmem:[#allocation2 + $0xa0] sm:$0xff]  ;;  %p1063_p0 = pnand %p1062_p13, %p1056_p10 }
  0x40   :  { %v793_v34 = vpack.c.bf16 %v259_v24, %v258_v23  ;;  %v131_v37 = vmul.f32 %v1154_v2, %v60_v22  ;;  %v264_v41 = vmax.f32 %v200_v30, 0.0  ;;  %v132_v43 = vmul.f32 %v1154_v2, %v61_v27  ;;  %v73_v13 = vld [vmem:[#allocation2 + $0xa8] sm:$0xff]  ;;  %v74_v18 = vld [vmem:[#allocation2 + $0xb0] sm:$0xff]  ;;  %v75_v23 = vld [vmem:[#allocation2 + $0xb8] sm:$0xff] }
  0x41   :  { %v798_v40 = vpack.c.bf16 %v261_v29, %v260_v28  ;;  %v265_v42 = vmax.f32 %v201_v31, 0.0  ;;  %v803_v45 = vpack.c.bf16 %v263_v36, %v262_v35  ;;  %v133_v47 = vmul.f32 %v1154_v2, %v62_v32  ;;  %v76_v28 = vld [vmem:[#allocation2 + $0xc0] sm:$0xff] }
  0x42   :  { %794 = vst [vmem:[#allocation8] sm:$0xff] %v793_v34   ;;  %v202_v46 = vadd.f32 %v1158_v5, %v131_v37  ;;  %v134_v48 = vmul.f32 %v1154_v2, %v63_v33  ;;  %v203_v51 = vadd.f32 %v1158_v5, %v132_v43  ;;  %v135_v52 = vmul.f32 %v1154_v2, %v64_v38  ;;  %v77_v37 = vld [vmem:[#allocation2 + $0xc8] sm:$0xff]  ;;  %v79_v43 = vld [vmem:[#allocation2 + $0xd8] sm:$0xff] }
  0x43   :  { %950 = vst [vmem:[#allocation8 + $0x8] sm:$0xff] %v798_v40   ;;  %v808_v50 = vpack.c.bf16 %v265_v42, %v264_v41  ;;  %v136_v53 = vmul.f32 %v1154_v2, %v65_v39  ;;  %951 = vst [vmem:[#allocation8 + $0x10] sm:$0xff] %v803_v45   ;;  %v204_v56 = vadd.f32 %v1158_v5, %v133_v47  ;;  %v78_v42 = vld [vmem:[#allocation2 + $0xd0] sm:$0xff] }
  0x44   :  { %v266_v55 = vmax.f32 %v202_v46, 0.0  ;;  %v205_v57 = vadd.f32 %v1158_v5, %v134_v48  ;;  %v137_v58 = vmul.f32 %v1154_v2, %v66_v44  ;;  %v267_v59 = vmax.f32 %v203_v51, 0.0  ;;  %v80_v48 = vld [vmem:[#allocation2 + $0xe0] sm:$0xff] }
  0x45   :  { %952 = vst [vmem:[#allocation8 + $0x18] sm:$0xff] %v808_v50   ;;  %v206_v60 = vadd.f32 %v1158_v5, %v135_v52  ;;  %v207_v61 = vadd.f32 %v1158_v5, %v136_v53  ;;  %v138_v62 = vmul.f32 %v1154_v2, %v67_v49  ;;  %v268_v0 = vmax.f32 %v204_v56, 0.0  ;;  %v81_v49 = vld [vmem:[#allocation2 + $0xe8] sm:$0xff] }
  0x46   :  { %v269_v1 = vmax.f32 %v205_v57, 0.0  ;;  %v208_v3 = vadd.f32 %v1158_v5, %v137_v58  ;;  %v139_v4 = vmul.f32 %v1154_v2, %v68_v54  ;;  %v813_v8 = vpack.c.bf16 %v267_v59, %v266_v55  ;;  %v82_v54 = vld [vmem:[#allocation2 + $0xf0] sm:$0xff]  ;;  %v83_v59 = vld [vmem:[#allocation2 + $0xf8] sm:$0xff] }
  0x47   :  { %v270_v9 = vmax.f32 %v206_v60, 0.0  ;;  %v271_v10 = vmax.f32 %v207_v61, 0.0  ;;  %v209_v11 = vadd.f32 %v1158_v5, %v138_v62  ;;  %v140_v16 = vmul.f32 %v1154_v2, %v69_v63 }
  0x48   :  { %v818_v14 = vpack.c.bf16 %v269_v1, %v268_v0  ;;  %v272_v15 = vmax.f32 %v208_v3, 0.0  ;;  %v210_v17 = vadd.f32 %v1158_v5, %v139_v4  ;;  %953 = vst [vmem:[#allocation8 + $0x20] sm:$0xff] %v813_v8   ;;  %v141_v21 = vmul.f32 %v1154_v2, %v70_v6  ;;  %v84_v0 = vld [vmem:[#allocation2 + $0x100] sm:$0xff] }
  0x49   :  { %v823_v19 = vpack.c.bf16 %v271_v10, %v270_v9  ;;  %v273_v20 = vmax.f32 %v209_v11, 0.0  ;;  %v142_v22 = vmul.f32 %v1154_v2, %v71_v7  ;;  %v211_v24 = vadd.f32 %v1158_v5, %v140_v16  ;;  %v85_v11 = vld [vmem:[#allocation2 + $0x108] sm:$0xff]  ;;  %v86_v16 = vld [vmem:[#allocation2 + $0x110] sm:$0xff] }
  0x4a   :  { %954 = vst [vmem:[#allocation8 + $0x28] sm:$0xff] %v818_v14   ;;  %v274_v25 = vmax.f32 %v210_v17, 0.0  ;;  %v143_v26 = vmul.f32 %v1154_v2, %v72_v12  ;;  %v144_v27 = vmul.f32 %v1154_v2, %v73_v13  ;;  %v212_v30 = vadd.f32 %v1158_v5, %v141_v21  ;;  %v87_v17 = vld [vmem:[#allocation2 + $0x118] sm:$0xff] }
  0x4b   :  { %955 = vst [vmem:[#allocation8 + $0x30] sm:$0xff] %v823_v19   ;;  %v828_v29 = vpack.c.bf16 %v273_v20, %v272_v15  ;;  %v213_v31 = vadd.f32 %v1158_v5, %v142_v22  ;;  %v145_v32 = vmul.f32 %v1154_v2, %v74_v18  ;;  %v275_v33 = vmax.f32 %v211_v24, 0.0  ;;  %v88_v22 = vld [vmem:[#allocation2 + $0x120] sm:$0xff] }
  0x4c   :  { %v214_v34 = vadd.f32 %v1158_v5, %v143_v26  ;;  %v215_v35 = vadd.f32 %v1158_v5, %v144_v27  ;;  %v146_v36 = vmul.f32 %v1154_v2, %v75_v23  ;;  %v276_v38 = vmax.f32 %v212_v30, 0.0  ;;  %v89_v23 = vld [vmem:[#allocation2 + $0x128] sm:$0xff] }
  0x4d   :  { %956 = vst [vmem:[#allocation8 + $0x38] sm:$0xff] %v828_v29   ;;  %v277_v39 = vmax.f32 %v213_v31, 0.0  ;;  %v216_v40 = vadd.f32 %v1158_v5, %v145_v32  ;;  %v147_v41 = vmul.f32 %v1154_v2, %v76_v28  ;;  %v833_v44 = vpack.c.bf16 %v275_v33, %v274_v25  ;;  %v90_v28 = vld [vmem:[#allocation2 + $0x130] sm:$0xff]  ;;  %v91_v33 = vld [vmem:[#allocation2 + $0x138] sm:$0xff] }
  0x4e   :  { %v278_v45 = vmax.f32 %v214_v34, 0.0  ;;  %v279_v46 = vmax.f32 %v215_v35, 0.0  ;;  %v217_v47 = vadd.f32 %v1158_v5, %v146_v36  ;;  %v148_v52 = vmul.f32 %v1154_v2, %v77_v37 }
  0x4f   :  { %v838_v50 = vpack.c.bf16 %v277_v39, %v276_v38  ;;  %v280_v51 = vmax.f32 %v216_v40, 0.0  ;;  %v218_v53 = vadd.f32 %v1158_v5, %v147_v41  ;;  %957 = vst [vmem:[#allocation8 + $0x40] sm:$0xff] %v833_v44   ;;  %v149_v57 = vmul.f32 %v1154_v2, %v78_v42  ;;  %v92_v38 = vld [vmem:[#allocation2 + $0x140] sm:$0xff] }
  0x50   :  { %v843_v55 = vpack.c.bf16 %v279_v46, %v278_v45  ;;  %v281_v56 = vmax.f32 %v217_v47, 0.0  ;;  %v150_v58 = vmul.f32 %v1154_v2, %v79_v43  ;;  %v219_v60 = vadd.f32 %v1158_v5, %v148_v52  ;;  %v93_v47 = vld [vmem:[#allocation2 + $0x148] sm:$0xff]  ;;  %v94_v52 = vld [vmem:[#allocation2 + $0x150] sm:$0xff] }
  0x51   :  { %958 = vst [vmem:[#allocation8 + $0x48] sm:$0xff] %v838_v50   ;;  %v282_v61 = vmax.f32 %v218_v53, 0.0  ;;  %v151_v62 = vmul.f32 %v1154_v2, %v80_v48  ;;  %v152_v63 = vmul.f32 %v1154_v2, %v81_v49  ;;  %v220_v3 = vadd.f32 %v1158_v5, %v149_v57  ;;  %v95_v53 = vld [vmem:[#allocation2 + $0x158] sm:$0xff] }
  0x52   :  { %959 = vst [vmem:[#allocation8 + $0x50] sm:$0xff] %v843_v55   ;;  %v848_v1 = vpack.c.bf16 %v281_v56, %v280_v51  ;;  %v221_v4 = vadd.f32 %v1158_v5, %v150_v58  ;;  %v153_v6 = vmul.f32 %v1154_v2, %v82_v54  ;;  %v283_v7 = vmax.f32 %v219_v60, 0.0  ;;  %v96_v58 = vld [vmem:[#allocation2 + $0x160] sm:$0xff] }
  0x53   :  { %v222_v8 = vadd.f32 %v1158_v5, %v151_v62  ;;  %v223_v9 = vadd.f32 %v1158_v5, %v152_v63  ;;  %v154_v10 = vmul.f32 %v1154_v2, %v83_v59  ;;  %v284_v12 = vmax.f32 %v220_v3, 0.0  ;;  %v97_v59 = vld [vmem:[#allocation2 + $0x168] sm:$0xff] }
  0x54   :  { %960 = vst [vmem:[#allocation8 + $0x58] sm:$0xff] %v848_v1   ;;  %v285_v13 = vmax.f32 %v221_v4, 0.0  ;;  %v224_v14 = vadd.f32 %v1158_v5, %v153_v6  ;;  %v155_v15 = vmul.f32 %v1154_v2, %v84_v0  ;;  %v853_v18 = vpack.c.bf16 %v283_v7, %v282_v61  ;;  %v98_v0 = vld [vmem:[#allocation2 + $0x170] sm:$0xff]  ;;  %v99_v7 = vld [vmem:[#allocation2 + $0x178] sm:$0xff] }
  0x55   :  { %v286_v19 = vmax.f32 %v222_v8, 0.0  ;;  %v287_v20 = vmax.f32 %v223_v9, 0.0  ;;  %v225_v21 = vadd.f32 %v1158_v5, %v154_v10  ;;  %v156_v26 = vmul.f32 %v1154_v2, %v85_v11 }
  0x56   :  { %v858_v24 = vpack.c.bf16 %v285_v13, %v284_v12  ;;  %v288_v25 = vmax.f32 %v224_v14, 0.0  ;;  %v226_v27 = vadd.f32 %v1158_v5, %v155_v15  ;;  %961 = vst [vmem:[#allocation8 + $0x60] sm:$0xff] %v853_v18   ;;  %v157_v31 = vmul.f32 %v1154_v2, %v86_v16  ;;  %v100_v12 = vld [vmem:[#allocation2 + $0x180] sm:$0xff] }
  0x57   :  { %v863_v29 = vpack.c.bf16 %v287_v20, %v286_v19  ;;  %v289_v30 = vmax.f32 %v225_v21, 0.0  ;;  %v158_v32 = vmul.f32 %v1154_v2, %v87_v17  ;;  %v227_v34 = vadd.f32 %v1158_v5, %v156_v26  ;;  %v101_v21 = vld [vmem:[#allocation2 + $0x188] sm:$0xff]  ;;  %v102_v26 = vld [vmem:[#allocation2 + $0x190] sm:$0xff] }
  0x58   :  { %962 = vst [vmem:[#allocation8 + $0x68] sm:$0xff] %v858_v24   ;;  %v290_v35 = vmax.f32 %v226_v27, 0.0  ;;  %v159_v36 = vmul.f32 %v1154_v2, %v88_v22  ;;  %v160_v37 = vmul.f32 %v1154_v2, %v89_v23  ;;  %v228_v40 = vadd.f32 %v1158_v5, %v157_v31  ;;  %v103_v27 = vld [vmem:[#allocation2 + $0x198] sm:$0xff] }
  0x59   :  { %963 = vst [vmem:[#allocation8 + $0x70] sm:$0xff] %v863_v29   ;;  %v868_v39 = vpack.c.bf16 %v289_v30, %v288_v25  ;;  %v229_v41 = vadd.f32 %v1158_v5, %v158_v32  ;;  %v161_v42 = vmul.f32 %v1154_v2, %v90_v28  ;;  %v291_v43 = vmax.f32 %v227_v34, 0.0  ;;  %v104_v32 = vld [vmem:[#allocation2 + $0x1a0] sm:$0xff] }
  0x5a   :  { %v230_v44 = vadd.f32 %v1158_v5, %v159_v36  ;;  %v231_v45 = vadd.f32 %v1158_v5, %v160_v37  ;;  %v162_v46 = vmul.f32 %v1154_v2, %v91_v33  ;;  %v292_v48 = vmax.f32 %v228_v40, 0.0  ;;  %v105_v33 = vld [vmem:[#allocation2 + $0x1a8] sm:$0xff] }
  0x5b   :  { %964 = vst [vmem:[#allocation8 + $0x78] sm:$0xff] %v868_v39   ;;  %v293_v49 = vmax.f32 %v229_v41, 0.0  ;;  %v232_v50 = vadd.f32 %v1158_v5, %v161_v42  ;;  %v163_v51 = vmul.f32 %v1154_v2, %v92_v38  ;;  %v873_v54 = vpack.c.bf16 %v291_v43, %v290_v35  ;;  %v106_v38 = vld [vmem:[#allocation2 + $0x1b0] sm:$0xff]  ;;  %v107_v43 = vld [vmem:[#allocation2 + $0x1b8] sm:$0xff] }
  0x5c   :  { %v294_v55 = vmax.f32 %v230_v44, 0.0  ;;  %v295_v56 = vmax.f32 %v231_v45, 0.0  ;;  %v233_v57 = vadd.f32 %v1158_v5, %v162_v46  ;;  %v164_v62 = vmul.f32 %v1154_v2, %v93_v47 }
  0x5d   :  { %v878_v60 = vpack.c.bf16 %v293_v49, %v292_v48  ;;  %v296_v61 = vmax.f32 %v232_v50, 0.0  ;;  %v234_v63 = vadd.f32 %v1158_v5, %v163_v51  ;;  %965 = vst [vmem:[#allocation8 + $0x80] sm:$0xff] %v873_v54   ;;  %v165_v4 = vmul.f32 %v1154_v2, %v94_v52  ;;  %v108_v48 = vld [vmem:[#allocation2 + $0x1c0] sm:$0xff] }
  0x5e   :  { %v883_v1 = vpack.c.bf16 %v295_v56, %v294_v55  ;;  %v297_v3 = vmax.f32 %v233_v57, 0.0  ;;  %v166_v6 = vmul.f32 %v1154_v2, %v95_v53  ;;  %v235_v8 = vadd.f32 %v1158_v5, %v164_v62  ;;  %v109_v57 = vld [vmem:[#allocation2 + $0x1c8] sm:$0xff]  ;;  %v110_v62 = vld [vmem:[#allocation2 + $0x1d0] sm:$0xff] }
  0x5f   :  { %966 = vst [vmem:[#allocation8 + $0x88] sm:$0xff] %v878_v60   ;;  %v298_v9 = vmax.f32 %v234_v63, 0.0  ;;  %v167_v10 = vmul.f32 %v1154_v2, %v96_v58  ;;  %v168_v11 = vmul.f32 %v1154_v2, %v97_v59  ;;  %v236_v14 = vadd.f32 %v1158_v5, %v165_v4  ;;  %v111_v63 = vld [vmem:[#allocation2 + $0x1d8] sm:$0xff] }
  0x60   :  { %967 = vst [vmem:[#allocation8 + $0x90] sm:$0xff] %v883_v1   ;;  %v888_v13 = vpack.c.bf16 %v297_v3, %v296_v61  ;;  %v237_v15 = vadd.f32 %v1158_v5, %v166_v6  ;;  %v169_v16 = vmul.f32 %v1154_v2, %v98_v0  ;;  %v299_v17 = vmax.f32 %v235_v8, 0.0  ;;  %v112_v6 = vld [vmem:[#allocation2 + $0x1e0] sm:$0xff] }
  0x61   :  { %v238_v18 = vadd.f32 %v1158_v5, %v167_v10  ;;  %v239_v19 = vadd.f32 %v1158_v5, %v168_v11  ;;  %v170_v20 = vmul.f32 %v1154_v2, %v99_v7  ;;  %v300_v22 = vmax.f32 %v236_v14, 0.0  ;;  %v113_v7 = vld [vmem:[#allocation2 + $0x1e8] sm:$0xff] }
  0x62   :  { %968 = vst [vmem:[#allocation8 + $0x98] sm:$0xff] %v888_v13   ;;  %v301_v23 = vmax.f32 %v237_v15, 0.0  ;;  %v240_v24 = vadd.f32 %v1158_v5, %v169_v16  ;;  %v171_v25 = vmul.f32 %v1154_v2, %v100_v12  ;;  %v893_v28 = vpack.c.bf16 %v299_v17, %v298_v9  ;;  %v114_v12 = vld [vmem:[#allocation2 + $0x1f0] sm:$0xff]  ;;  %v115_v17 = vld [vmem:[#allocation2 + $0x1f8] sm:$0xff] }
  0x63   :  { %v302_v29 = vmax.f32 %v238_v18, 0.0  ;;  %v303_v30 = vmax.f32 %v239_v19, 0.0  ;;  %v241_v31 = vadd.f32 %v1158_v5, %v170_v20  ;;  %v172_v36 = vmul.f32 %v1154_v2, %v101_v21 }
  0x64   :  { %v898_v34 = vpack.c.bf16 %v301_v23, %v300_v22  ;;  %v304_v35 = vmax.f32 %v240_v24, 0.0  ;;  %v242_v37 = vadd.f32 %v1158_v5, %v171_v25  ;;  %969 = vst [vmem:[#allocation8 + $0xa0] sm:$0xff] %v893_v28   ;;  %v173_v41 = vmul.f32 %v1154_v2, %v102_v26 }
  0x65   :  { %v903_v39 = vpack.c.bf16 %v303_v30, %v302_v29  ;;  %v305_v40 = vmax.f32 %v241_v31, 0.0  ;;  %v174_v42 = vmul.f32 %v1154_v2, %v103_v27  ;;  %v243_v44 = vadd.f32 %v1158_v5, %v172_v36 }
  0x66   :  { %970 = vst [vmem:[#allocation8 + $0xa8] sm:$0xff] %v898_v34   ;;  %v306_v45 = vmax.f32 %v242_v37, 0.0  ;;  %v175_v46 = vmul.f32 %v1154_v2, %v104_v32  ;;  %v176_v47 = vmul.f32 %v1154_v2, %v105_v33  ;;  %v244_v50 = vadd.f32 %v1158_v5, %v173_v41 }
  0x67   :  { %971 = vst [vmem:[#allocation8 + $0xb0] sm:$0xff] %v903_v39   ;;  %v908_v49 = vpack.c.bf16 %v305_v40, %v304_v35  ;;  %v245_v51 = vadd.f32 %v1158_v5, %v174_v42  ;;  %v177_v52 = vmul.f32 %v1154_v2, %v106_v38  ;;  %v307_v53 = vmax.f32 %v243_v44, 0.0 }
  0x68   :  { %v246_v54 = vadd.f32 %v1158_v5, %v175_v46  ;;  %v247_v55 = vadd.f32 %v1158_v5, %v176_v47  ;;  %v178_v56 = vmul.f32 %v1154_v2, %v107_v43  ;;  %v308_v58 = vmax.f32 %v244_v50, 0.0 }
  0x69   :  { %972 = vst [vmem:[#allocation8 + $0xb8] sm:$0xff] %v908_v49   ;;  %v309_v59 = vmax.f32 %v245_v51, 0.0  ;;  %v248_v60 = vadd.f32 %v1158_v5, %v177_v52  ;;  %v179_v61 = vmul.f32 %v1154_v2, %v108_v48  ;;  %v913_v0 = vpack.c.bf16 %v307_v53, %v306_v45 }
  0x6a   :  { %v310_v1 = vmax.f32 %v246_v54, 0.0  ;;  %v311_v3 = vmax.f32 %v247_v55, 0.0  ;;  %v249_v4 = vadd.f32 %v1158_v5, %v178_v56  ;;  %v180_v10 = vmul.f32 %v1154_v2, %v109_v57 }
  0x6b   :  { %v918_v8 = vpack.c.bf16 %v309_v59, %v308_v58  ;;  %v312_v9 = vmax.f32 %v248_v60, 0.0  ;;  %v250_v11 = vadd.f32 %v1158_v5, %v179_v61  ;;  %973 = vst [vmem:[#allocation8 + $0xc0] sm:$0xff] %v913_v0   ;;  %v181_v15 = vmul.f32 %v1154_v2, %v110_v62 }
  0x6c   :  { %v923_v13 = vpack.c.bf16 %v311_v3, %v310_v1  ;;  %v313_v14 = vmax.f32 %v249_v4, 0.0  ;;  %v182_v16 = vmul.f32 %v1154_v2, %v111_v63  ;;  %v251_v18 = vadd.f32 %v1158_v5, %v180_v10 }
  0x6d   :  { %974 = vst [vmem:[#allocation8 + $0xc8] sm:$0xff] %v918_v8   ;;  %v314_v19 = vmax.f32 %v250_v11, 0.0  ;;  %v183_v20 = vmul.f32 %v1154_v2, %v112_v6  ;;  %v184_v21 = vmul.f32 %v1154_v2, %v113_v7  ;;  %v252_v23 = vadd.f32 %v1158_v5, %v181_v15 }
  0x6e   :  { %975 = vst [vmem:[#allocation8 + $0xd0] sm:$0xff] %v923_v13   ;;  %v928_v22 = vpack.c.bf16 %v313_v14, %v312_v9  ;;  %v253_v24 = vadd.f32 %v1158_v5, %v182_v16  ;;  %v185_v25 = vmul.f32 %v1154_v2, %v114_v12  ;;  %v315_v26 = vmax.f32 %v251_v18, 0.0 }
  0x6f   :  { %v254_v27 = vadd.f32 %v1158_v5, %v183_v20  ;;  %v255_v28 = vadd.f32 %v1158_v5, %v184_v21  ;;  %v186_v29 = vmul.f32 %v1154_v2, %v115_v17  ;;  %v316_v30 = vmax.f32 %v252_v23, 0.0 }
  0x70   :  { %976 = vst [vmem:[#allocation8 + $0xd8] sm:$0xff] %v928_v22   ;;  %v317_v31 = vmax.f32 %v253_v24, 0.0  ;;  %v256_v32 = vadd.f32 %v1158_v5, %v185_v25  ;;  %v933_v33 = vpack.c.bf16 %v315_v26, %v314_v19 }
  0x71   :  { %v318_v34 = vmax.f32 %v254_v27, 0.0  ;;  %v319_v35 = vmax.f32 %v255_v28, 0.0  ;;  %v257_v36 = vadd.f32 %v1158_v5, %v186_v29 }
  0x72   :  { %v938_v37 = vpack.c.bf16 %v317_v31, %v316_v30  ;;  %v320_v38 = vmax.f32 %v256_v32, 0.0  ;;  %977 = vst [vmem:[#allocation8 + $0xe0] sm:$0xff] %v933_v33  }
  0x73   :  { %v943_v39 = vpack.c.bf16 %v319_v35, %v318_v34  ;;  %v321_v40 = vmax.f32 %v257_v36, 0.0 }
  0x74   :  { %978 = vst [vmem:[#allocation8 + $0xe8] sm:$0xff] %v938_v37  }
  0x75   :  { %979 = vst [vmem:[#allocation8 + $0xf0] sm:$0xff] %v943_v39   ;;  %v948_v2 = vpack.c.bf16 %v321_v40, %v320_v38 }
  0x77   :  { %980 = vst [vmem:[#allocation8 + $0xf8] sm:$0xff] %v948_v2  }
  0x78   :  { %1066 = shalt.err (!%p1063_p0)
}
  0x79   :  { %s1067_s27 = scalar_lea.hbm %s1301_s3, 4096 }
  0x7a   :  { %p1068_p1 = scmp.ne.s32.totalorder %s1301_s3, %s1067_s27  ;;  %p1071_p2 = scmp.lt.u32.totalorder %s1067_s27, %s1301_s3 }
  0x7c   :  { %p1073_p3 = pnand %p1071_p2, %p1068_p1 }
  0x7e   :  { %1076 = shalt.err (!%p1073_p3)
}
  0x7f   :  { %s1089_s5 = smov 64   ;;  %s1090_s6 = smov 4  }
  0x80   :  { %653 = dma.vmem_to_hbm [thread:$0]  %s648_s23, 4096, %s1301_s3, [#allocation4], %s1089_s5, %s1089_s5, %s1090_s6  }
  0x81   :  { %1081 = dma.done.wait [#allocation4], 4096  }
  0x82   :  { %1082 = vsyncadd [#allocation4], 4294963200 }
  0x83   :  { %657 = vsyncpa [#allocation3], 1 }
  0x84   :  { %658 = vsyncpa [#allocation6], 1 }
  0x85   :  { %659 = vsyncpa [#allocation4], 1 }

// kernel: network_block_fwd.9
= control target key start
LH: loop header
LB: loop body
LE: loop exit
PB: predicated region body
PF: predicated region fallthrough
CT: control target
= control target key end

     0   :  { %7 = vsyncpa [#allocation3], 0  ;;  %s533_s0 = inlined_call_operand.hbm [shape: bf16[128,128], index: 0, kind: input, shape index: {}]   ;;  %s534_s1 = inlined_call_operand.hbm [shape: bf16[128,128], index: 1, kind: input, shape index: {}]   ;;  %s535_s2 = inlined_call_operand.hbm [shape: f32[128,128], index: 2, kind: output, shape index: {}]  }
   0x1   :  { %8 = vsyncpa [#allocation6], 0 }
   0x2   :  { %9 = vsyncpa [#allocation4], 0  ;;  %s475_s9 = smov [#allocation2]   ;;  %s403_s13 = scalar_lea.hbm %s533_s0, 1024 }
   0x3   :  { %s15_s10 = sshll.u32 %s475_s9, 4  ;;  %p404_p0 = scmp.ne.s32.totalorder %s533_s0, %s403_s13  ;;  %s16_s10 = int_to_ptr.vmem [resolvable:$true] %s15_s10 }
   0x4   :  { %p407_p1 = scmp.lt.u32.totalorder %s403_s13, %s533_s0 }
   0x6   :  { %p409_p2 = pnand %p407_p1, %p404_p0 }
   0x8   :  { %412 = shalt.err (!%p409_p2)
}
   0x9   :  { %s413_s18 = scalar_lea.vmem %s16_s10, 1024  ;;  %p418_p4 = scmp.lt.s32.totalorder %s16_s10, %s16_s10 }
   0xa   :  { %p414_p3 = scmp.ne.s32.totalorder %s16_s10, %s413_s18  ;;  %p419_p5 = scmp.lt.s32.totalorder %s413_s18, %s413_s18 }
   0xc   :  { %p420_p6 = por %p419_p5, %p418_p4 }
   0xe   :  { %p421_p7 = pnand %p420_p6, %p414_p3 }
  0x10   :  { %424 = shalt.err (!%p421_p7)
}
  0x11   :  { %s476_s19 = smov 64   ;;  %s477_s20 = smov 4  }
  0x12   :  { %21 = dma.hbm_to_vmem [thread:$0]  %s533_s0, 1024, %s16_s10, [#allocation3], %s476_s19, %s476_s19, %s477_s20  }
  0x13   :  { %s478_s23 = smov [#allocation5]   ;;  %s425_s27 = scalar_lea.hbm %s534_s1, 1024 }
  0x14   :  { %s27_s24 = sshll.u32 %s478_s23, 4  ;;  %p426_p8 = scmp.ne.s32.totalorder %s534_s1, %s425_s27  ;;  %s28_s24 = int_to_ptr.vmem [resolvable:$true] %s27_s24 }
  0x15   :  { %p429_p9 = scmp.lt.u32.totalorder %s425_s27, %s534_s1 }
  0x17   :  { %p431_p10 = pnand %p429_p9, %p426_p8 }
  0x19   :  { %434 = shalt.err (!%p431_p10)
}
  0x1a   :  { %s435_s4 = scalar_lea.vmem %s28_s24, 1024  ;;  %p440_p12 = scmp.lt.s32.totalorder %s28_s24, %s28_s24 }
  0x1b   :  { %p436_p11 = scmp.ne.s32.totalorder %s28_s24, %s435_s4  ;;  %p441_p13 = scmp.lt.s32.totalorder %s435_s4, %s435_s4 }
  0x1d   :  { %p442_p0 = por %p441_p13, %p440_p12 }
  0x1f   :  { %p443_p1 = pnand %p442_p0, %p436_p11 }
  0x21   :  { %446 = shalt.err (!%p443_p1)
}
  0x22   :  { %33 = dma.hbm_to_vmem [thread:$0]  %s534_s1, 1024, %s28_s24, [#allocation6], %s476_s19, %s476_s19, %s477_s20  }
  0x23   :  { %469 = dma.done.wait [#allocation3], 1024  }
  0x24   :  { %470 = vsyncadd [#allocation3], 4294966272 }
  0x25   :  { %471 = dma.done.wait [#allocation6], 1024  }
  0x26   :  { %472 = vsyncadd [#allocation6], 4294966272  ;;  %v387_v0 = vld [vmem:[#allocation5] sm:$0xff]   ;;  %v388_v1 = vld [vmem:[#allocation5 + $0x8] sm:$0xff]   ;;  %s479_s1 = smov [#allocation7]  }
  0x27   :  { %332 = vmatprep.subr.bf16.mxu0 %v387_v0  ;;  %364 = vmatprep.subr.bf16.mxu1 %v387_v0  ;;  %v389_v2 = vld [vmem:[#allocation5 + $0x10] sm:$0xff]   ;;  %v390_v3 = vld [vmem:[#allocation5 + $0x18] sm:$0xff]   ;;  %v395_v4 = vld [vmem:[#allocation2] sm:$0xff]   ;;  %s287_s6 = sshll.u32 %s479_s1, 4  ;;  %s288_s6 = int_to_ptr.vmem [resolvable:$true] %s287_s6 }
  0x28   :  { %333 = vmatpush3.bf16.msra.mxu0 %v387_v0  ;;  %372 = vmatpush3.bf16.msra.mxu1 %v387_v0  ;;  %v396_v5 = vld [vmem:[#allocation2 + $0x20] sm:$0xff]   ;;  %v392_v7 = vld [vmem:[#allocation5 + $0x28] sm:$0xff]   ;;  %v393_v8 = vld [vmem:[#allocation5 + $0x30] sm:$0xff]   ;;  %s447_s7 = scalar_lea.vmem %s288_s6, 2048  ;;  %p452_p3 = scmp.lt.s32.totalorder %s288_s6, %s288_s6 }
  0x29   :  { %334 = vmatprep.subr.bf16.mxu0 %v388_v1  ;;  %365 = vmatprep.subr.bf16.mxu1 %v388_v1  ;;  %v391_v6 = vld [vmem:[#allocation5 + $0x20] sm:$0xff]   ;;  %v394_v9 = vld [vmem:[#allocation5 + $0x38] sm:$0xff]   ;;  %v397_v10 = vld [vmem:[#allocation2 + $0x8] sm:$0xff]   ;;  %p448_p2 = scmp.ne.s32.totalorder %s288_s6, %s447_s7  ;;  %p453_p4 = scmp.lt.s32.totalorder %s447_s7, %s447_s7 }
  0x2a   :  { %348 = vmatprep.mubr.bf16.mxu0 %v395_v4  ;;  %356 = vmatprep.mubr.bf16.mxu1 %v396_v5  ;;  %v398_v11 = vld [vmem:[#allocation2 + $0x28] sm:$0xff]   ;;  %v399_v12 = vld [vmem:[#allocation2 + $0x10] sm:$0xff]   ;;  %v401_v14 = vld [vmem:[#allocation2 + $0x18] sm:$0xff]  }
  0x2b   :  { %v400_v13 = vld [vmem:[#allocation2 + $0x30] sm:$0xff]   ;;  %v402_v15 = vld [vmem:[#allocation2 + $0x38] sm:$0xff]   ;;  %p454_p5 = por %p453_p4, %p452_p3 }
  0x2c   :  { %335 = vmatpush3.bf16.msra.mxu0 %v388_v1  ;;  %373 = vmatpush3.bf16.msra.mxu1 %v388_v1 }
  0x2d   :  { %336 = vmatprep.subr.bf16.mxu0 %v389_v2  ;;  %366 = vmatprep.subr.bf16.mxu1 %v389_v2  ;;  %p455_p6 = pnand %p454_p5, %p448_p2 }
  0x30   :  { %337 = vmatpush3.bf16.msra.mxu0 %v389_v2  ;;  %374 = vmatpush3.bf16.msra.mxu1 %v389_v2 }
  0x31   :  { %338 = vmatprep.subr.bf16.mxu0 %v390_v3  ;;  %367 = vmatprep.subr.bf16.mxu1 %v390_v3 }
  0x34   :  { %339 = vmatpush3.bf16.msra.mxu0 %v390_v3  ;;  %375 = vmatpush3.bf16.msra.mxu1 %v390_v3 }
  0x35   :  { %340 = vmatprep.subr.bf16.mxu0 %v391_v6  ;;  %368 = vmatprep.subr.bf16.mxu1 %v391_v6 }
  0x38   :  { %341 = vmatpush3.bf16.msra.mxu0 %v391_v6  ;;  %376 = vmatpush3.bf16.msra.mxu1 %v391_v6 }
  0x39   :  { %342 = vmatprep.subr.bf16.mxu0 %v392_v7  ;;  %369 = vmatprep.subr.bf16.mxu1 %v392_v7 }
  0x3c   :  { %343 = vmatpush3.bf16.msra.mxu0 %v392_v7  ;;  %377 = vmatpush3.bf16.msra.mxu1 %v392_v7 }
  0x3d   :  { %344 = vmatprep.subr.bf16.mxu0 %v393_v8  ;;  %370 = vmatprep.subr.bf16.mxu1 %v393_v8 }
  0x40   :  { %345 = vmatpush3.bf16.msra.mxu0 %v393_v8  ;;  %378 = vmatpush3.bf16.msra.mxu1 %v393_v8 }
  0x41   :  { %346 = vmatprep.subr.bf16.mxu0 %v394_v9  ;;  %371 = vmatprep.subr.bf16.mxu1 %v394_v9 }
  0x44   :  { %347 = vmatpush3.bf16.msra.mxu0 %v394_v9  ;;  %379 = vmatpush3.bf16.msra.mxu1 %v394_v9 }
  0x47   :  { %349 = vmatmul.mubr.bf16.vlgmr.msra.gmra.mrb[0].mxu0 %v397_v10  ;;  %357 = vmatmul.mubr.bf16.vlgmr.msra.gmra.mrb[0].mxu1 %v398_v11 }
  0x48   :  { %352 = vmatprep.mubr.bf16.mxu0 %v399_v12  ;;  %360 = vmatprep.mubr.bf16.mxu1 %v400_v13 }
  0x4f   :  { %353 = vmatmul.mubr.bf16.gmra.mrb[4].mxu0 %v401_v14  ;;  %361 = vmatmul.mubr.bf16.gmra.mrb[4].mxu1 %v402_v15 }
 0x11a   :  { %v350_v16 = vpop.f32.mrb[0].mxu0  ;;  %v358_v17 = vpop.f32.mrb[0].mxu1 }
 0x11b   :  { %268 = vst [vmem:[#allocation7 + $0x10] sm:$0xff] %v350_v16  ;;  %276 = vst [vmem:[#allocation7 + $0x50] sm:$0xff] %v358_v17  ;;  %v203_v18 = vpop.f32.mrb[1].mxu0  ;;  %v235_v19 = vpop.f32.mrb[1].mxu1 }
 0x11c   :  { %266 = vst [vmem:[#allocation7] sm:$0xff] %v203_v18  ;;  %274 = vst [vmem:[#allocation7 + $0x40] sm:$0xff] %v235_v19  ;;  %v351_v20 = vpop.f32.mrb[2].mxu0  ;;  %v359_v21 = vpop.f32.mrb[2].mxu1 }
 0x11d   :  { %269 = vst [vmem:[#allocation7 + $0x18] sm:$0xff] %v351_v20  ;;  %277 = vst [vmem:[#allocation7 + $0x58] sm:$0xff] %v359_v21  ;;  %v206_v22 = vpop.f32.mrb[3].mxu0  ;;  %v238_v23 = vpop.f32.mrb[3].mxu1 }
 0x11e   :  { %267 = vst [vmem:[#allocation7 + $0x8] sm:$0xff] %v206_v22  ;;  %275 = vst [vmem:[#allocation7 + $0x48] sm:$0xff] %v238_v23 }
 0x122   :  { %v354_v24 = vpop.f32.mrb[4].mxu0  ;;  %v362_v25 = vpop.f32.mrb[4].mxu1 }
 0x123   :  { %272 = vst [vmem:[#allocation7 + $0x30] sm:$0xff] %v354_v24  ;;  %280 = vst [vmem:[#allocation7 + $0x70] sm:$0xff] %v362_v25  ;;  %v219_v26 = vpop.f32.mrb[5].mxu0  ;;  %v251_v27 = vpop.f32.mrb[5].mxu1 }
 0x124   :  { %270 = vst [vmem:[#allocation7 + $0x20] sm:$0xff] %v219_v26  ;;  %278 = vst [vmem:[#allocation7 + $0x60] sm:$0xff] %v251_v27  ;;  %v355_v28 = vpop.f32.mrb[6].mxu0  ;;  %v363_v29 = vpop.f32.mrb[6].mxu1 }
 0x125   :  { %273 = vst [vmem:[#allocation7 + $0x38] sm:$0xff] %v355_v28  ;;  %281 = vst [vmem:[#allocation7 + $0x78] sm:$0xff] %v363_v29  ;;  %v222_v30 = vpop.f32.mrb[7].mxu0  ;;  %v254_v31 = vpop.f32.mrb[7].mxu1 }
 0x126   :  { %271 = vst [vmem:[#allocation7 + $0x28] sm:$0xff] %v222_v30  ;;  %279 = vst [vmem:[#allocation7 + $0x68] sm:$0xff] %v254_v31 }
 0x127   :  { %458 = shalt.err (!%p455_p6)
}
 0x128   :  { %s459_s10 = scalar_lea.hbm %s535_s2, 2048 }
 0x129   :  { %p460_p7 = scmp.ne.s32.totalorder %s535_s2, %s459_s10  ;;  %p463_p8 = scmp.lt.u32.totalorder %s459_s10, %s535_s2 }
 0x12b   :  { %p465_p9 = pnand %p463_p8, %p460_p7 }
 0x12d   :  { %468 = shalt.err (!%p465_p9)
}
 0x12e   :  { %s480_s15 = smov 128   ;;  %s481_s16 = smov 8  }
 0x12f   :  { %293 = dma.vmem_to_hbm [thread:$0]  %s288_s6, 2048, %s535_s2, [#allocation4], %s480_s15, %s480_s15, %s481_s16  }
 0x130   :  { %473 = dma.done.wait [#allocation4], 2048  }
 0x131   :  { %474 = vsyncadd [#allocation4], 4294965248 }
 0x132   :  { %297 = vsyncpa [#allocation3], 1 }
 0x133   :  { %298 = vsyncpa [#allocation6], 1 }
 0x134   :  { %299 = vsyncpa [#allocation4], 1 }

// kernel: network_block_fwd.8
= control target key start
LH: loop header
LB: loop body
LE: loop exit
PB: predicated region body
PF: predicated region fallthrough
CT: control target
= control target key end

     0   :  { %9 = vsyncpa [#allocation3], 0  ;;  %s2808_s0 = inlined_call_operand.hbm [shape: bf16[128,1152], index: 0, kind: input, shape index: {}]   ;;  %s2809_s1 = inlined_call_operand.hbm [shape: bf16[1152,128], index: 1, kind: input, shape index: {}]   ;;  %s2810_s2 = inlined_call_operand.hbm [shape: f32[1,128], index: 2, kind: input, shape index: {}]   ;;  %s2811_s3 = inlined_call_operand.hbm [shape: f32[1,128], index: 3, kind: input, shape index: {}]   ;;  %s2812_s4 = inlined_call_operand.hbm [shape: bf16[128,128], index: 4, kind: output, shape index: {}]  }
   0x1   :  { %10 = vsyncpa [#allocation6], 0 }
   0x2   :  { %11 = vsyncpa [#allocation9], 0 }
   0x3   :  { %12 = vsyncpa [#allocation4], 0  ;;  %s2588_s15 = smov [#allocation5]   ;;  %s2470_s19 = scalar_lea.hbm %s2809_s1, 9216 }
   0x4   :  { %s30_s16 = sshll.u32 %s2588_s15, 4  ;;  %p2471_p0 = scmp.ne.s32.totalorder %s2809_s1, %s2470_s19  ;;  %s31_s16 = int_to_ptr.vmem [resolvable:$true] %s30_s16 }
   0x5   :  { %p2474_p1 = scmp.lt.u32.totalorder %s2470_s19, %s2809_s1 }
   0x7   :  { %p2476_p2 = pnand %p2474_p1, %p2471_p0 }
   0x9   :  { %2479 = shalt.err (!%p2476_p2)
}
   0xa   :  { %s2480_s24 = scalar_lea.vmem %s31_s16, 9216  ;;  %p2485_p4 = scmp.lt.s32.totalorder %s31_s16, %s31_s16 }
   0xb   :  { %p2481_p3 = scmp.ne.s32.totalorder %s31_s16, %s2480_s24  ;;  %p2486_p5 = scmp.lt.s32.totalorder %s2480_s24, %s2480_s24 }
   0xd   :  { %p2487_p6 = por %p2486_p5, %p2485_p4 }
   0xf   :  { %p2488_p7 = pnand %p2487_p6, %p2481_p3 }
  0x11   :  { %2491 = shalt.err (!%p2488_p7)
}
  0x12   :  { %s2589_s25 = smov 64   ;;  %s2590_s26 = smov 4  }
  0x13   :  { %36 = dma.hbm_to_vmem [thread:$0]  %s2809_s1, 9216, %s31_s16, [#allocation6], %s2589_s25, %s2589_s25, %s2590_s26  }
  0x14   :  { %s2591_s29 = smov [#allocation2]   ;;  %s2492_s7 = scalar_lea.hbm %s2808_s0, 9216 }
  0x15   :  { %s18_s30 = sshll.u32 %s2591_s29, 4  ;;  %p2493_p8 = scmp.ne.s32.totalorder %s2808_s0, %s2492_s7  ;;  %s19_s30 = int_to_ptr.vmem [resolvable:$true] %s18_s30 }
  0x16   :  { %p2496_p9 = scmp.lt.u32.totalorder %s2492_s7, %s2808_s0 }
  0x18   :  { %p2498_p10 = pnand %p2496_p9, %p2493_p8 }
  0x1a   :  { %2501 = shalt.err (!%p2498_p10)
}
  0x1b   :  { %s2502_s12 = scalar_lea.vmem %s19_s30, 9216  ;;  %p2507_p12 = scmp.lt.s32.totalorder %s19_s30, %s19_s30 }
  0x1c   :  { %p2503_p11 = scmp.ne.s32.totalorder %s19_s30, %s2502_s12  ;;  %p2508_p13 = scmp.lt.s32.totalorder %s2502_s12, %s2502_s12 }
  0x1e   :  { %p2509_p0 = por %p2508_p13, %p2507_p12 }
  0x20   :  { %p2510_p1 = pnand %p2509_p0, %p2503_p11 }
  0x22   :  { %2513 = shalt.err (!%p2510_p1)
}
  0x23   :  { %s2592_s1 = smov 576   ;;  %s2593_s13 = smov 36  }
  0x24   :  { %24 = dma.hbm_to_vmem [thread:$0]  %s2808_s0, 9216, %s19_s30, [#allocation3], %s2592_s1, %s2592_s1, %s2593_s13  }
  0x25   :  { %s2594_s16 = smov [#allocation7]   ;;  %s2595_s18 = smov [#allocation8]  }
  0x26   :  { %s43_s17 = sshll.u32 %s2594_s16, 4  ;;  %s53_s19 = sshll.u32 %s2595_s18, 4  ;;  %s44_s17 = int_to_ptr.vmem [resolvable:$true] %s43_s17  ;;  %s54_s19 = int_to_ptr.vmem [resolvable:$true] %s53_s19 }
  0x27   :  { %s2514_s22 = scalar_lea.hbm %s2810_s2, 16 }
  0x28   :  { %p2515_p2 = scmp.ne.s32.totalorder %s2810_s2, %s2514_s22  ;;  %p2518_p3 = scmp.lt.u32.totalorder %s2514_s22, %s2810_s2 }
  0x2a   :  { %p2520_p4 = pnand %p2518_p3, %p2515_p2 }
  0x2c   :  { %2523 = shalt.err (!%p2520_p4)
}
  0x2d   :  { %s2524_s0 = scalar_lea.vmem %s44_s17, 16  ;;  %s2528_s29 = scalar_lea.vmem %s44_s17, 32 }
  0x2e   :  { %p2525_p5 = scmp.ne.s32.totalorder %s44_s17, %s2524_s0  ;;  %p2529_p6 = scmp.lt.s32.totalorder %s44_s17, %s44_s17 }
  0x2f   :  { %p2530_p7 = scmp.lt.s32.totalorder %s2528_s29, %s2524_s0 }
  0x31   :  { %p2531_p8 = por %p2530_p7, %p2529_p6 }
  0x33   :  { %p2532_p9 = pnand %p2531_p8, %p2525_p5 }
  0x35   :  { %2535 = shalt.err (!%p2532_p9)
}
  0x36   :  { %46 = dma.hbm_to_vmem [thread:$0]  %s2810_s2, 16, %s44_s17, [#allocation6]  }
  0x37   :  { %s2536_s8 = scalar_lea.hbm %s2811_s3, 16 }
  0x38   :  { %p2537_p10 = scmp.ne.s32.totalorder %s2811_s3, %s2536_s8  ;;  %p2540_p11 = scmp.lt.u32.totalorder %s2536_s8, %s2811_s3 }
  0x3a   :  { %p2542_p12 = pnand %p2540_p11, %p2537_p10 }
  0x3c   :  { %2545 = shalt.err (!%p2542_p12)
}
  0x3d   :  { %s2546_s1 = scalar_lea.vmem %s54_s19, 16  ;;  %s2550_s13 = scalar_lea.vmem %s54_s19, 32 }
  0x3e   :  { %p2547_p13 = scmp.ne.s32.totalorder %s54_s19, %s2546_s1  ;;  %p2551_p0 = scmp.lt.s32.totalorder %s54_s19, %s54_s19 }
  0x3f   :  { %p2552_p1 = scmp.lt.s32.totalorder %s2550_s13, %s2546_s1 }
  0x41   :  { %p2553_p2 = por %p2552_p1, %p2551_p0 }
  0x43   :  { %p2554_p3 = pnand %p2553_p2, %p2547_p13 }
  0x45   :  { %2557 = shalt.err (!%p2554_p3)
}
  0x46   :  { %56 = dma.hbm_to_vmem [thread:$0]  %s2811_s3, 16, %s54_s19, [#allocation9]  }
  0x47   :  { %2580 = dma.done.wait [#allocation3], 9216  }
  0x48   :  { %2581 = vsyncadd [#allocation3], 4294958080 }
  0x49   :  { %2582 = dma.done.wait [#allocation6], 9232  }
  0x4a   :  { %2583 = vsyncadd [#allocation6], 4294958064 }
  0x4b   :  { %2584 = dma.done.wait [#allocation9], 16  }
  0x4c   :  { %2585 = vsyncadd [#allocation9], 4294967280  ;;  %v2294_v0 = vld [vmem:[#allocation5 + $0x40] sm:$0xff]   ;;  %v2298_v4 = vld [vmem:[#allocation5 + $0x48] sm:$0xff]   ;;  %s2596_s3 = smov [#allocation10]  }
  0x4d   :  { %v2295_v1 = vld [vmem:[#allocation5 + $0xc0] sm:$0xff]   ;;  %1965 = vmatprep.subr.bf16.mxu0 %v2294_v0  ;;  %v2299_v5 = vld [vmem:[#allocation5 + $0xc8] sm:$0xff]   ;;  %v2302_v8 = vld [vmem:[#allocation5 + $0x50] sm:$0xff]   ;;  %s1726_s15 = sshll.u32 %s2596_s3, 4  ;;  %s1727_s15 = int_to_ptr.vmem [resolvable:$true] %s1726_s15 }
  0x4e   :  { %v2296_v2 = vld [vmem:[#allocation5] sm:$0xff]   ;;  %2029 = vmatprep.subr.bf16.mxu1 %v2295_v1  ;;  %v2300_v6 = vld [vmem:[#allocation5 + $0x8] sm:$0xff]   ;;  %v2303_v9 = vld [vmem:[#allocation5 + $0xd0] sm:$0xff]   ;;  %s2558_s16 = scalar_lea.vmem %s1727_s15, 1024  ;;  %p2563_p5 = scmp.lt.s32.totalorder %s1727_s15, %s1727_s15 }
  0x4f   :  { %v2297_v3 = vld [vmem:[#allocation5 + $0x80] sm:$0xff]   ;;  %1966 = vmatpush3.bf16.msra.mxu0 %v2296_v2  ;;  %v2301_v7 = vld [vmem:[#allocation5 + $0x88] sm:$0xff]   ;;  %v2304_v10 = vld [vmem:[#allocation5 + $0x10] sm:$0xff]   ;;  %p2559_p4 = scmp.ne.s32.totalorder %s1727_s15, %s2558_s16  ;;  %p2564_p6 = scmp.lt.s32.totalorder %s2558_s16, %s2558_s16 }
  0x50   :  { %2030 = vmatpush3.bf16.msra.mxu1 %v2297_v3  ;;  %1967 = vmatprep.subr.bf16.mxu0 %v2298_v4  ;;  %v2305_v11 = vld [vmem:[#allocation5 + $0x90] sm:$0xff]   ;;  %v2306_v12 = vld [vmem:[#allocation5 + $0x58] sm:$0xff]   ;;  %v2310_v16 = vld [vmem:[#allocation5 + $0x60] sm:$0xff]  }
  0x51   :  { %2031 = vmatprep.subr.bf16.mxu1 %v2299_v5  ;;  %v2307_v13 = vld [vmem:[#allocation5 + $0xd8] sm:$0xff]   ;;  %v2311_v17 = vld [vmem:[#allocation5 + $0xe0] sm:$0xff]   ;;  %v2314_v20 = vld [vmem:[#allocation5 + $0x68] sm:$0xff]   ;;  %p2565_p7 = por %p2564_p6, %p2563_p5 }
  0x52   :  { %v2308_v14 = vld [vmem:[#allocation5 + $0x18] sm:$0xff]   ;;  %v2312_v18 = vld [vmem:[#allocation5 + $0x20] sm:$0xff]   ;;  %v2315_v21 = vld [vmem:[#allocation5 + $0xe8] sm:$0xff]  }
  0x53   :  { %1968 = vmatpush3.bf16.msra.mxu0 %v2300_v6  ;;  %v2309_v15 = vld [vmem:[#allocation5 + $0x98] sm:$0xff]   ;;  %v2313_v19 = vld [vmem:[#allocation5 + $0xa0] sm:$0xff]   ;;  %v2316_v22 = vld [vmem:[#allocation5 + $0x28] sm:$0xff]   ;;  %p2566_p8 = pnand %p2565_p7, %p2559_p4 }
  0x54   :  { %2032 = vmatpush3.bf16.msra.mxu1 %v2301_v7  ;;  %1969 = vmatprep.subr.bf16.mxu0 %v2302_v8  ;;  %v2317_v23 = vld [vmem:[#allocation5 + $0xa8] sm:$0xff]   ;;  %v2318_v24 = vld [vmem:[#allocation5 + $0x70] sm:$0xff]   ;;  %v2322_v28 = vld [vmem:[#allocation5 + $0x78] sm:$0xff]  }
  0x55   :  { %2033 = vmatprep.subr.bf16.mxu1 %v2303_v9  ;;  %v2319_v25 = vld [vmem:[#allocation5 + $0xf0] sm:$0xff]   ;;  %v2323_v29 = vld [vmem:[#allocation5 + $0xf8] sm:$0xff]   ;;  %v2326_v32 = vld [vmem:[#allocation2] ss:$36 sps:$4 sm:$0xff]  }
  0x56   :  { %v2320_v26 = vld [vmem:[#allocation5 + $0x30] sm:$0xff]   ;;  %v2324_v30 = vld [vmem:[#allocation5 + $0x38] sm:$0xff]   ;;  %v2328_v33 = vld [vmem:[#allocation2 + $0x4] ss:$36 sps:$4 sm:$0xff]  }
  0x57   :  { %1970 = vmatpush3.bf16.msra.mxu0 %v2304_v10  ;;  %v2321_v27 = vld [vmem:[#allocation5 + $0xb0] sm:$0xff]   ;;  %v2325_v31 = vld [vmem:[#allocation5 + $0xb8] sm:$0xff]   ;;  %v2329_v34 = vld [vmem:[#allocation2 + $0x8] ss:$36 sps:$4 sm:$0xff]   ;;  %1126 = vmatprep.mubr.bf16.mxu0 %v2328_v33 }
  0x58   :  { %2034 = vmatpush3.bf16.msra.mxu1 %v2305_v11  ;;  %1971 = vmatprep.subr.bf16.mxu0 %v2306_v12  ;;  %v2331_v35 = vld [vmem:[#allocation2 + $0xc] ss:$36 sps:$4 sm:$0xff]   ;;  %v2332_v36 = vld [vmem:[#allocation5 + $0x140] sm:$0xff]   ;;  %v2338_v41 = vld [vmem:[#allocation2 + $0x54] ss:$36 sps:$4 sm:$0xff]  }
  0x59   :  { %2035 = vmatprep.subr.bf16.mxu1 %v2307_v13  ;;  %1223 = vmatprep.mubr.bf16.mxu1 %v2331_v35  ;;  %v2333_v37 = vld [vmem:[#allocation5 + $0x1c0] sm:$0xff]   ;;  %v2336_v40 = vld [vmem:[#allocation2 + $0x4c] ss:$36 sps:$4 sm:$0xff]   ;;  %v2346_v48 = vld [vmem:[#allocation2 + $0x94] ss:$36 sps:$4 sm:$0xff]  }
  0x5a   :  { %v2334_v38 = vld [vmem:[#allocation5 + $0x100] sm:$0xff]   ;;  %v2340_v42 = vld [vmem:[#allocation2 + $0x48] ss:$36 sps:$4 sm:$0xff]   ;;  %v2341_v43 = vld [vmem:[#allocation2 + $0x50] ss:$36 sps:$4 sm:$0xff]  }
  0x5b   :  { %1972 = vmatpush3.bf16.msra.mxu0 %v2308_v14  ;;  %v2335_v39 = vld [vmem:[#allocation5 + $0x180] sm:$0xff]   ;;  %v2342_v44 = vld [vmem:[#allocation5 + $0x148] sm:$0xff]   ;;  %v2350_v50 = vld [vmem:[#allocation2 + $0x90] ss:$36 sps:$4 sm:$0xff]  }
  0x5c   :  { %2036 = vmatpush3.bf16.msra.mxu1 %v2309_v15  ;;  %1973 = vmatprep.subr.bf16.mxu0 %v2310_v16  ;;  %v2343_v45 = vld [vmem:[#allocation5 + $0x1c8] sm:$0xff]   ;;  %v2348_v49 = vld [vmem:[#allocation2 + $0x9c] ss:$36 sps:$4 sm:$0xff]   ;;  %v2352_v52 = vld [vmem:[#allocation5 + $0x150] sm:$0xff]  }
  0x5d   :  { %2037 = vmatprep.subr.bf16.mxu1 %v2311_v17  ;;  %v2344_v46 = vld [vmem:[#allocation5 + $0x108] sm:$0xff]   ;;  %v2351_v51 = vld [vmem:[#allocation2 + $0x98] ss:$36 sps:$4 sm:$0xff]   ;;  %v2353_v53 = vld [vmem:[#allocation5 + $0x1d0] sm:$0xff]  }
  0x5e   :  { %v2345_v47 = vld [vmem:[#allocation5 + $0x188] sm:$0xff]   ;;  %v2354_v54 = vld [vmem:[#allocation5 + $0x110] sm:$0xff]   ;;  %v2356_v56 = vld [vmem:[#allocation2 + $0xdc] ss:$36 sps:$4 sm:$0xff]  }
  0x5f   :  { %1974 = vmatpush3.bf16.msra.mxu0 %v2312_v18  ;;  %v2355_v55 = vld [vmem:[#allocation5 + $0x190] sm:$0xff]   ;;  %v2358_v57 = vld [vmem:[#allocation2 + $0xe4] ss:$36 sps:$4 sm:$0xff]   ;;  %v2360_v58 = vld [vmem:[#allocation2 + $0xd8] ss:$36 sps:$4 sm:$0xff]  }
  0x60   :  { %2038 = vmatpush3.bf16.msra.mxu1 %v2313_v19  ;;  %1975 = vmatprep.subr.bf16.mxu0 %v2314_v20  ;;  %v2361_v59 = vld [vmem:[#allocation2 + $0xe0] ss:$36 sps:$4 sm:$0xff]   ;;  %v2362_v60 = vld [vmem:[#allocation5 + $0x158] sm:$0xff]   ;;  %v2368_v1 = vld [vmem:[#allocation2 + $0x12c] ss:$36 sps:$4 sm:$0xff]  }
  0x61   :  { %2039 = vmatprep.subr.bf16.mxu1 %v2315_v21  ;;  %v2363_v61 = vld [vmem:[#allocation5 + $0x1d8] sm:$0xff]   ;;  %v2366_v0 = vld [vmem:[#allocation2 + $0x124] ss:$36 sps:$4 sm:$0xff]   ;;  %v2376_v8 = vld [vmem:[#allocation2 + $0x16c] ss:$36 sps:$4 sm:$0xff]  }
  0x62   :  { %v2364_v62 = vld [vmem:[#allocation5 + $0x118] sm:$0xff]   ;;  %v2370_v2 = vld [vmem:[#allocation2 + $0x120] ss:$36 sps:$4 sm:$0xff]   ;;  %v2371_v4 = vld [vmem:[#allocation2 + $0x128] ss:$36 sps:$4 sm:$0xff]  }
  0x63   :  { %1976 = vmatpush3.bf16.msra.mxu0 %v2316_v22  ;;  %v2365_v63 = vld [vmem:[#allocation5 + $0x198] sm:$0xff]   ;;  %v2372_v3 = vld [vmem:[#allocation5 + $0x160] sm:$0xff]   ;;  %v2382_v10 = vld [vmem:[#allocation5 + $0x168] sm:$0xff]  }
  0x64   :  { %2040 = vmatpush3.bf16.msra.mxu1 %v2317_v23  ;;  %1977 = vmatprep.subr.bf16.mxu0 %v2318_v24  ;;  %v2373_v5 = vld [vmem:[#allocation5 + $0x1e0] sm:$0xff]   ;;  %v2378_v9 = vld [vmem:[#allocation2 + $0x174] ss:$36 sps:$4 sm:$0xff]   ;;  %v2383_v11 = vld [vmem:[#allocation5 + $0x1e8] sm:$0xff]  }
  0x65   :  { %2041 = vmatprep.subr.bf16.mxu1 %v2319_v25  ;;  %v2374_v6 = vld [vmem:[#allocation5 + $0x120] sm:$0xff]   ;;  %v2380_v12 = vld [vmem:[#allocation2 + $0x168] ss:$36 sps:$4 sm:$0xff]   ;;  %v2381_v15 = vld [vmem:[#allocation2 + $0x170] ss:$36 sps:$4 sm:$0xff]  }
  0x66   :  { %v2375_v7 = vld [vmem:[#allocation5 + $0x1a0] sm:$0xff]   ;;  %v2384_v13 = vld [vmem:[#allocation5 + $0x128] sm:$0xff]   ;;  %v2386_v16 = vld [vmem:[#allocation2 + $0x1b4] ss:$36 sps:$4 sm:$0xff]  }
  0x67   :  { %1978 = vmatpush3.bf16.msra.mxu0 %v2320_v26  ;;  %v2385_v14 = vld [vmem:[#allocation5 + $0x1a8] sm:$0xff]   ;;  %v2388_v17 = vld [vmem:[#allocation2 + $0x1bc] ss:$36 sps:$4 sm:$0xff]   ;;  %v2392_v18 = vld [vmem:[#allocation5 + $0x170] sm:$0xff]  }
  0x68   :  { %2042 = vmatpush3.bf16.msra.mxu1 %v2321_v27  ;;  %1979 = vmatprep.subr.bf16.mxu0 %v2322_v28  ;;  %v2393_v19 = vld [vmem:[#allocation5 + $0x1f0] sm:$0xff]   ;;  %v2391_v23 = vld [vmem:[#allocation2 + $0x1b8] ss:$36 sps:$4 sm:$0xff]   ;;  %v2398_v25 = vld [vmem:[#allocation2 + $0x204] ss:$36 sps:$4 sm:$0xff]  }
  0x69   :  { %2043 = vmatprep.subr.bf16.mxu1 %v2323_v29  ;;  %v2394_v20 = vld [vmem:[#allocation5 + $0x130] sm:$0xff]   ;;  %v2396_v24 = vld [vmem:[#allocation2 + $0x1fc] ss:$36 sps:$4 sm:$0xff]  }
  0x6a   :  { %v2395_v21 = vld [vmem:[#allocation5 + $0x1b0] sm:$0xff]   ;;  %v2402_v26 = vld [vmem:[#allocation5 + $0x178] sm:$0xff]  }
  0x6b   :  { %1980 = vmatpush3.bf16.msra.mxu0 %v2324_v30  ;;  %v2390_v22 = vld [vmem:[#allocation2 + $0x1b0] ss:$36 sps:$4 sm:$0xff]   ;;  %v2403_v27 = vld [vmem:[#allocation5 + $0x1f8] sm:$0xff]  }
  0x6c   :  { %2044 = vmatpush3.bf16.msra.mxu1 %v2325_v31  ;;  %2093 = vmatprep.subr.bf16.mxu0 %v2332_v36  ;;  %v2404_v28 = vld [vmem:[#allocation5 + $0x138] sm:$0xff]   ;;  %v2401_v31 = vld [vmem:[#allocation2 + $0x200] ss:$36 sps:$4 sm:$0xff]   ;;  %v2406_v35 = vld [vmem:[#allocation2 + $0x10] ss:$36 sps:$4 sm:$0xff]  }
  0x6d   :  { %2157 = vmatprep.subr.bf16.mxu1 %v2333_v37  ;;  %v2405_v29 = vld [vmem:[#allocation5 + $0x1b8] sm:$0xff]  }
  0x6e   :  { %1127 = vmatmul.mubr.bf16.vlgmr.msra.gmra.mrb[0].mxu0 %v2326_v32  ;;  %v2400_v30 = vld [vmem:[#allocation2 + $0x1f8] ss:$36 sps:$4 sm:$0xff]   ;;  %v2412_v32 = vld [vmem:[#allocation5 + $0x200] sm:$0xff]  }
  0x6f   :  { %1224 = vmatmul.mubr.bf16.vlgmr.msra.gmra.mrb[0].mxu1 %v2329_v34  ;;  %2094 = vmatpush3.bf16.msra.mxu0 %v2334_v38  ;;  %v2408_v33 = vld [vmem:[#allocation2 + $0x14] ss:$36 sps:$4 sm:$0xff]   ;;  %v2411_v34 = vld [vmem:[#allocation2 + $0x1c] ss:$36 sps:$4 sm:$0xff]   ;;  %v2415_v38 = vld [vmem:[#allocation2 + $0x64] ss:$36 sps:$4 sm:$0xff]  }
  0x70   :  { %2158 = vmatpush3.bf16.msra.mxu1 %v2335_v39  ;;  %1134 = vmatprep.mubr.bf16.mxu0 %v2336_v40  ;;  %v2409_v36 = vld [vmem:[#allocation2 + $0x18] ss:$36 sps:$4 sm:$0xff]   ;;  %v2419_v39 = vld [vmem:[#allocation5 + $0x208] sm:$0xff]   ;;  %v2426_v40 = vld [vmem:[#allocation5 + $0x210] sm:$0xff]  }
  0x71   :  { %1231 = vmatprep.mubr.bf16.mxu1 %v2338_v41  ;;  %2095 = vmatprep.subr.bf16.mxu0 %v2342_v44  ;;  %v2413_v37 = vld [vmem:[#allocation2 + $0x5c] ss:$36 sps:$4 sm:$0xff]   ;;  %v2422_v44 = vld [vmem:[#allocation2 + $0xac] ss:$36 sps:$4 sm:$0xff]  }
  0x72   :  { %2159 = vmatprep.subr.bf16.mxu1 %v2343_v45  ;;  %v2417_v41 = vld [vmem:[#allocation2 + $0x58] ss:$36 sps:$4 sm:$0xff]  }
  0x73   :  { %2096 = vmatpush3.bf16.msra.mxu0 %v2344_v46  ;;  %v2433_v45 = vld [vmem:[#allocation5 + $0x218] sm:$0xff]   ;;  %v2440_v46 = vld [vmem:[#allocation5 + $0x220] sm:$0xff]  }
  0x74   :  { %2160 = vmatpush3.bf16.msra.mxu1 %v2345_v47  ;;  %2097 = vmatprep.subr.bf16.mxu0 %v2352_v52  ;;  %v2424_v47 = vld [vmem:[#allocation2 + $0xa0] ss:$36 sps:$4 sm:$0xff]   ;;  %v2431_v52 = vld [vmem:[#allocation2 + $0xe8] ss:$36 sps:$4 sm:$0xff]  }
  0x75   :  { %2161 = vmatprep.subr.bf16.mxu1 %v2353_v53  ;;  %v2454_v53 = vld [vmem:[#allocation5 + $0x230] sm:$0xff]  }
  0x76   :  { %1135 = vmatmul.mubr.bf16.gmra.mrb[4].mxu0 %v2340_v42  ;;  %v2418_v42 = vld [vmem:[#allocation2 + $0x60] ss:$36 sps:$4 sm:$0xff]  }
  0x77   :  { %1232 = vmatmul.mubr.bf16.gmra.mrb[4].mxu1 %v2341_v43  ;;  %1142 = vmatprep.mubr.bf16.mxu0 %v2346_v48  ;;  %v2420_v43 = vld [vmem:[#allocation2 + $0xa4] ss:$36 sps:$4 sm:$0xff]  }
  0x78   :  { %1239 = vmatprep.mubr.bf16.mxu1 %v2348_v49  ;;  %2098 = vmatpush3.bf16.msra.mxu0 %v2354_v54  ;;  %v2425_v48 = vld [vmem:[#allocation2 + $0xa8] ss:$36 sps:$4 sm:$0xff]   ;;  %v2432_v54 = vld [vmem:[#allocation2 + $0xf0] ss:$36 sps:$4 sm:$0xff]  }
  0x79   :  { %2162 = vmatpush3.bf16.msra.mxu1 %v2355_v55  ;;  %2099 = vmatprep.subr.bf16.mxu0 %v2362_v60  ;;  %v2427_v49 = vld [vmem:[#allocation2 + $0xec] ss:$36 sps:$4 sm:$0xff]   ;;  %v2434_v55 = vld [vmem:[#allocation2 + $0x134] ss:$36 sps:$4 sm:$0xff]   ;;  %v2441_v60 = vld [vmem:[#allocation2 + $0x17c] ss:$36 sps:$4 sm:$0xff]  }
  0x7a   :  { %2163 = vmatprep.subr.bf16.mxu1 %v2363_v61  ;;  %v2443_v61 = vld [vmem:[#allocation2 + $0x184] ss:$36 sps:$4 sm:$0xff]  }
  0x7c   :  { %2100 = vmatpush3.bf16.msra.mxu0 %v2364_v62  ;;  %v2445_v62 = vld [vmem:[#allocation2 + $0x178] ss:$36 sps:$4 sm:$0xff]  }
  0x7d   :  { %2164 = vmatpush3.bf16.msra.mxu1 %v2365_v63  ;;  %2101 = vmatprep.subr.bf16.mxu0 %v2372_v3  ;;  %v2446_v63 = vld [vmem:[#allocation2 + $0x180] ss:$36 sps:$4 sm:$0xff]   ;;  %v2453_v3 = vld [vmem:[#allocation2 + $0x1c8] ss:$36 sps:$4 sm:$0xff]  }
  0x7e   :  { %1143 = vmatmul.mubr.bf16.gmra.mrb[8].mxu0 %v2350_v50  ;;  %2165 = vmatprep.subr.bf16.mxu1 %v2373_v5  ;;  %v2429_v50 = vld [vmem:[#allocation2 + $0xf4] ss:$36 sps:$4 sm:$0xff]  }
  0x7f   :  { %1240 = vmatmul.mubr.bf16.gmra.mrb[8].mxu1 %v2351_v51  ;;  %1150 = vmatprep.mubr.bf16.mxu0 %v2356_v56  ;;  %v2447_v51 = vld [vmem:[#allocation5 + $0x228] sm:$0xff]   ;;  %v2436_v56 = vld [vmem:[#allocation2 + $0x13c] ss:$36 sps:$4 sm:$0xff]   ;;  %v2457_v5 = vld [vmem:[#allocation2 + $0x214] ss:$36 sps:$4 sm:$0xff]  }
  0x80   :  { %1247 = vmatprep.mubr.bf16.mxu1 %v2358_v57  ;;  %2102 = vmatpush3.bf16.msra.mxu0 %v2374_v6  ;;  %v2461_v57 = vld [vmem:[#allocation5 + $0x238] sm:$0xff]   ;;  %v2459_v6 = vld [vmem:[#allocation2 + $0x208] ss:$36 sps:$4 sm:$0xff]  }
  0x81   :  { %2166 = vmatpush3.bf16.msra.mxu1 %v2375_v7  ;;  %2103 = vmatprep.subr.bf16.mxu0 %v2382_v10  ;;  %v2460_v7 = vld [vmem:[#allocation2 + $0x210] ss:$36 sps:$4 sm:$0xff]   ;;  %v2464_v10 = vld [vmem:[#allocation2 + $0x68] ss:$36 sps:$4 sm:$0xff]  }
  0x82   :  { %2167 = vmatprep.subr.bf16.mxu1 %v2383_v11  ;;  %v2465_v11 = vld [vmem:[#allocation2 + $0x188] ss:$36 sps:$4 sm:$0xff]  }
  0x84   :  { %2104 = vmatpush3.bf16.msra.mxu0 %v2384_v13  ;;  %v2467_v13 = vld [vmem:[#allocation2 + $0x1d0] ss:$36 sps:$4 sm:$0xff]  }
  0x85   :  { %2168 = vmatpush3.bf16.msra.mxu1 %v2385_v14  ;;  %2105 = vmatprep.subr.bf16.mxu0 %v2392_v18  ;;  %v2468_v14 = vld [vmem:[#allocation2 + $0xf8] ss:$36 sps:$4 sm:$0xff]  }
  0x86   :  { %1151 = vmatmul.mubr.bf16.gmra.mrb[12].mxu0 %v2360_v58  ;;  %2169 = vmatprep.subr.bf16.mxu1 %v2393_v19  ;;  %v2438_v58 = vld [vmem:[#allocation2 + $0x130] ss:$36 sps:$4 sm:$0xff]  }
  0x87   :  { %1248 = vmatmul.mubr.bf16.gmra.mrb[12].mxu1 %v2361_v59  ;;  %1158 = vmatprep.mubr.bf16.mxu0 %v2366_v0  ;;  %v2439_v59 = vld [vmem:[#allocation2 + $0x138] ss:$36 sps:$4 sm:$0xff]   ;;  %v2448_v0 = vld [vmem:[#allocation2 + $0x1c4] ss:$36 sps:$4 sm:$0xff]  }
  0x88   :  { %1255 = vmatprep.mubr.bf16.mxu1 %v2368_v1  ;;  %2106 = vmatpush3.bf16.msra.mxu0 %v2394_v20  ;;  %v2450_v1 = vld [vmem:[#allocation2 + $0x1cc] ss:$36 sps:$4 sm:$0xff]  }
  0x89   :  { %2170 = vmatpush3.bf16.msra.mxu1 %v2395_v21  ;;  %2107 = vmatprep.subr.bf16.mxu0 %v2402_v26 }
  0x8a   :  { %2171 = vmatprep.subr.bf16.mxu1 %v2403_v27 }
  0x8c   :  { %2108 = vmatpush3.bf16.msra.mxu0 %v2404_v28 }
  0x8d   :  { %2172 = vmatpush3.bf16.msra.mxu1 %v2405_v29  ;;  %2237 = vmatprep.subr.bf16.mxu0 %v2412_v32 }
  0x8e   :  { %1159 = vmatmul.mubr.bf16.gmra.mrb[16].mxu0 %v2370_v2  ;;  %2269 = vmatprep.subr.bf16.mxu1 %v2412_v32  ;;  %v2452_v2 = vld [vmem:[#allocation2 + $0x1c0] ss:$36 sps:$4 sm:$0xff]  }
  0x8f   :  { %1256 = vmatmul.mubr.bf16.gmra.mrb[16].mxu1 %v2371_v4  ;;  %1166 = vmatprep.mubr.bf16.mxu0 %v2376_v8  ;;  %v2455_v4 = vld [vmem:[#allocation2 + $0x20c] ss:$36 sps:$4 sm:$0xff]   ;;  %v2462_v8 = vld [vmem:[#allocation2 + $0x20] ss:$36 sps:$4 sm:$0xff]  }
  0x90   :  { %1263 = vmatprep.mubr.bf16.mxu1 %v2378_v9  ;;  %v2463_v9 = vld [vmem:[#allocation2 + $0x140] ss:$36 sps:$4 sm:$0xff]  }
  0x96   :  { %1167 = vmatmul.mubr.bf16.gmra.mrb[20].mxu0 %v2380_v12  ;;  %v2466_v12 = vld [vmem:[#allocation2 + $0xb0] ss:$36 sps:$4 sm:$0xff]  }
  0x97   :  { %1264 = vmatmul.mubr.bf16.gmra.mrb[20].mxu1 %v2381_v15  ;;  %1174 = vmatprep.mubr.bf16.mxu0 %v2386_v16  ;;  %v2469_v15 = vld [vmem:[#allocation2 + $0x218] ss:$36 sps:$4 sm:$0xff]  }
  0x98   :  { %1271 = vmatprep.mubr.bf16.mxu1 %v2388_v17 }
  0x9e   :  { %1175 = vmatmul.mubr.bf16.gmra.mrb[24].mxu0 %v2390_v22 }
  0x9f   :  { %1272 = vmatmul.mubr.bf16.gmra.mrb[24].mxu1 %v2391_v23  ;;  %1182 = vmatprep.mubr.bf16.mxu0 %v2396_v24 }
  0xa0   :  { %1279 = vmatprep.mubr.bf16.mxu1 %v2398_v25 }
  0xa6   :  { %1183 = vmatmul.mubr.bf16.gmra.mrb[28].mxu0 %v2400_v30 }
  0xa7   :  { %1280 = vmatmul.mubr.bf16.gmra.mrb[28].mxu1 %v2401_v31  ;;  %1320 = vmatprep.mubr.bf16.mxu0 %v2408_v33 }
  0xa8   :  { %1417 = vmatprep.mubr.bf16.mxu1 %v2411_v34 }
  0xae   :  { %1321 = vmatmul.mubr.bf16.vlgmr.msra.gmra.mrb[32].mxu0 %v2406_v35 }
  0xaf   :  { %1418 = vmatmul.mubr.bf16.vlgmr.msra.gmra.mrb[32].mxu1 %v2409_v36  ;;  %2238 = vmatpush3.bf16.msra.mxu0 %v2412_v32 }
  0xb0   :  { %2277 = vmatpush3.bf16.msra.mxu1 %v2412_v32  ;;  %1328 = vmatprep.mubr.bf16.mxu0 %v2413_v37 }
  0xb1   :  { %1425 = vmatprep.mubr.bf16.mxu1 %v2415_v38  ;;  %2239 = vmatprep.subr.bf16.mxu0 %v2419_v39 }
  0xb2   :  { %2270 = vmatprep.subr.bf16.mxu1 %v2419_v39 }
  0xb3   :  { %2240 = vmatpush3.bf16.msra.mxu0 %v2419_v39 }
  0xb4   :  { %2278 = vmatpush3.bf16.msra.mxu1 %v2419_v39  ;;  %2241 = vmatprep.subr.bf16.mxu0 %v2426_v40 }
  0xb5   :  { %2271 = vmatprep.subr.bf16.mxu1 %v2426_v40 }
  0xb6   :  { %1329 = vmatmul.mubr.bf16.gmra.mrb[36].mxu0 %v2417_v41 }
  0xb7   :  { %1426 = vmatmul.mubr.bf16.gmra.mrb[36].mxu1 %v2418_v42  ;;  %1336 = vmatprep.mubr.bf16.mxu0 %v2420_v43 }
  0xb8   :  { %1433 = vmatprep.mubr.bf16.mxu1 %v2422_v44  ;;  %2242 = vmatpush3.bf16.msra.mxu0 %v2426_v40 }
  0xb9   :  { %2279 = vmatpush3.bf16.msra.mxu1 %v2426_v40  ;;  %2243 = vmatprep.subr.bf16.mxu0 %v2433_v45 }
  0xba   :  { %2272 = vmatprep.subr.bf16.mxu1 %v2433_v45 }
  0xbc   :  { %2244 = vmatpush3.bf16.msra.mxu0 %v2433_v45 }
  0xbd   :  { %2280 = vmatpush3.bf16.msra.mxu1 %v2433_v45  ;;  %2245 = vmatprep.subr.bf16.mxu0 %v2440_v46 }
  0xbe   :  { %1337 = vmatmul.mubr.bf16.gmra.mrb[40].mxu0 %v2424_v47  ;;  %2273 = vmatprep.subr.bf16.mxu1 %v2440_v46 }
  0xbf   :  { %1434 = vmatmul.mubr.bf16.gmra.mrb[40].mxu1 %v2425_v48  ;;  %1344 = vmatprep.mubr.bf16.mxu0 %v2427_v49 }
  0xc0   :  { %1441 = vmatprep.mubr.bf16.mxu1 %v2429_v50  ;;  %2246 = vmatpush3.bf16.msra.mxu0 %v2440_v46 }
  0xc1   :  { %2281 = vmatpush3.bf16.msra.mxu1 %v2440_v46  ;;  %2247 = vmatprep.subr.bf16.mxu0 %v2447_v51 }
  0xc2   :  { %2274 = vmatprep.subr.bf16.mxu1 %v2447_v51 }
  0xc4   :  { %2248 = vmatpush3.bf16.msra.mxu0 %v2447_v51 }
  0xc5   :  { %2282 = vmatpush3.bf16.msra.mxu1 %v2447_v51  ;;  %2249 = vmatprep.subr.bf16.mxu0 %v2454_v53 }
  0xc6   :  { %1345 = vmatmul.mubr.bf16.gmra.mrb[44].mxu0 %v2431_v52  ;;  %2275 = vmatprep.subr.bf16.mxu1 %v2454_v53 }
  0xc7   :  { %1442 = vmatmul.mubr.bf16.gmra.mrb[44].mxu1 %v2432_v54  ;;  %1352 = vmatprep.mubr.bf16.mxu0 %v2434_v55 }
  0xc8   :  { %1449 = vmatprep.mubr.bf16.mxu1 %v2436_v56  ;;  %2250 = vmatpush3.bf16.msra.mxu0 %v2454_v53 }
  0xc9   :  { %2283 = vmatpush3.bf16.msra.mxu1 %v2454_v53  ;;  %2251 = vmatprep.subr.bf16.mxu0 %v2461_v57 }
  0xca   :  { %2276 = vmatprep.subr.bf16.mxu1 %v2461_v57 }
  0xcc   :  { %2252 = vmatpush3.bf16.msra.mxu0 %v2461_v57 }
  0xcd   :  { %2284 = vmatpush3.bf16.msra.mxu1 %v2461_v57 }
  0xce   :  { %1353 = vmatmul.mubr.bf16.gmra.mrb[48].mxu0 %v2438_v58 }
  0xcf   :  { %1450 = vmatmul.mubr.bf16.gmra.mrb[48].mxu1 %v2439_v59  ;;  %1360 = vmatprep.mubr.bf16.mxu0 %v2441_v60 }
  0xd0   :  { %1457 = vmatprep.mubr.bf16.mxu1 %v2443_v61 }
  0xd6   :  { %1361 = vmatmul.mubr.bf16.gmra.mrb[52].mxu0 %v2445_v62 }
  0xd7   :  { %1458 = vmatmul.mubr.bf16.gmra.mrb[52].mxu1 %v2446_v63  ;;  %1368 = vmatprep.mubr.bf16.mxu0 %v2448_v0 }
  0xd8   :  { %1465 = vmatprep.mubr.bf16.mxu1 %v2450_v1 }
  0xde   :  { %1369 = vmatmul.mubr.bf16.gmra.mrb[56].mxu0 %v2452_v2 }
  0xdf   :  { %1466 = vmatmul.mubr.bf16.gmra.mrb[56].mxu1 %v2453_v3  ;;  %1376 = vmatprep.mubr.bf16.mxu0 %v2455_v4 }
  0xe0   :  { %1473 = vmatprep.mubr.bf16.mxu1 %v2457_v5 }
  0xe6   :  { %1377 = vmatmul.mubr.bf16.gmra.mrb[60].mxu0 %v2459_v6 }
  0xe7   :  { %1474 = vmatmul.mubr.bf16.gmra.mrb[60].mxu1 %v2460_v7  ;;  %2253 = vmatprep.mubr.bf16.mxu0 %v2462_v8 }
  0xe8   :  { %2261 = vmatprep.mubr.bf16.mxu1 %v2463_v9 }
  0xee   :  { %2254 = vmatmul.mubr.bf16.vlgmr.msra.gmra.mrb[64].mxu0 %v2464_v10 }
  0xef   :  { %2262 = vmatmul.mubr.bf16.vlgmr.msra.gmra.mrb[64].mxu1 %v2465_v11  ;;  %2257 = vmatprep.mubr.bf16.mxu0 %v2466_v12 }
  0xf0   :  { %2265 = vmatprep.mubr.bf16.mxu1 %v2467_v13 }
  0xf6   :  { %2258 = vmatmul.mubr.bf16.gmra.mrb[68].mxu0 %v2468_v14 }
  0xf7   :  { %2266 = vmatmul.mubr.bf16.gmra.mrb[68].mxu1 %v2469_v15 }
 0x141   :  { %v1981_v16 = vpop.f32.mrb[0].mxu0 }
 0x142   :  { %v2045_v17 = vpop.f32.mrb[0].mxu1  ;;  %v1982_v18 = vpop.f32.mrb[1].mxu0 }
 0x143   :  { %v1983_v19 = vadd.f32 %v1982_v18, %v1981_v16  ;;  %v2046_v20 = vpop.f32.mrb[1].mxu1  ;;  %v1984_v21 = vpop.f32.mrb[2].mxu0 }
 0x144   :  { %v2047_v22 = vadd.f32 %v2046_v20, %v2045_v17  ;;  %v2048_v23 = vpop.f32.mrb[2].mxu1  ;;  %v1985_v24 = vpop.f32.mrb[3].mxu0 }
 0x145   :  { %v1986_v25 = vadd.f32 %v1985_v24, %v1984_v21  ;;  %v2049_v26 = vpop.f32.mrb[3].mxu1 }
 0x146   :  { %v2673_v27 = vadd.f32 %v2047_v22, %v1983_v19  ;;  %v2050_v28 = vadd.f32 %v2049_v26, %v2048_v23 }
 0x148   :  { %v2675_v29 = vadd.f32 %v2050_v28, %v1986_v25 }
 0x149   :  { %v1987_v30 = vpop.f32.mrb[4].mxu0 }
 0x14a   :  { %v2051_v31 = vpop.f32.mrb[4].mxu1  ;;  %v1988_v32 = vpop.f32.mrb[5].mxu0 }
 0x14b   :  { %v1989_v33 = vadd.f32 %v1988_v32, %v1987_v30  ;;  %v2052_v34 = vpop.f32.mrb[5].mxu1  ;;  %v1990_v35 = vpop.f32.mrb[6].mxu0 }
 0x14c   :  { %v2053_v36 = vadd.f32 %v2052_v34, %v2051_v31  ;;  %v2054_v37 = vpop.f32.mrb[6].mxu1  ;;  %v1991_v38 = vpop.f32.mrb[7].mxu0 }
 0x14d   :  { %v1992_v39 = vadd.f32 %v1991_v38, %v1990_v35  ;;  %v2055_v40 = vpop.f32.mrb[7].mxu1 }
 0x14e   :  { %v2677_v41 = vadd.f32 %v2053_v36, %v1989_v33  ;;  %v2056_v42 = vadd.f32 %v2055_v40, %v2054_v37 }
 0x150   :  { %v2679_v43 = vadd.f32 %v2056_v42, %v1992_v39 }
 0x151   :  { %v1993_v44 = vpop.f32.mrb[8].mxu0 }
 0x152   :  { %v2057_v45 = vpop.f32.mrb[8].mxu1  ;;  %v1994_v46 = vpop.f32.mrb[9].mxu0 }
 0x153   :  { %v1995_v47 = vadd.f32 %v1994_v46, %v1993_v44  ;;  %v2058_v48 = vpop.f32.mrb[9].mxu1  ;;  %v1996_v49 = vpop.f32.mrb[10].mxu0 }
 0x154   :  { %v2059_v50 = vadd.f32 %v2058_v48, %v2057_v45  ;;  %v2060_v51 = vpop.f32.mrb[10].mxu1  ;;  %v1997_v52 = vpop.f32.mrb[11].mxu0 }
 0x155   :  { %v1998_v53 = vadd.f32 %v1997_v52, %v1996_v49  ;;  %v2061_v54 = vpop.f32.mrb[11].mxu1 }
 0x156   :  { %v2681_v55 = vadd.f32 %v2059_v50, %v1995_v47  ;;  %v2062_v56 = vadd.f32 %v2061_v54, %v2060_v51 }
 0x158   :  { %v2683_v57 = vadd.f32 %v2062_v56, %v1998_v53 }
 0x159   :  { %v1999_v58 = vpop.f32.mrb[12].mxu0 }
 0x15a   :  { %v2063_v59 = vpop.f32.mrb[12].mxu1  ;;  %v2000_v60 = vpop.f32.mrb[13].mxu0 }
 0x15b   :  { %v2001_v61 = vadd.f32 %v2000_v60, %v1999_v58  ;;  %v2064_v62 = vpop.f32.mrb[13].mxu1  ;;  %v2002_v63 = vpop.f32.mrb[14].mxu0 }
 0x15c   :  { %v2065_v0 = vadd.f32 %v2064_v62, %v2063_v59  ;;  %v2066_v1 = vpop.f32.mrb[14].mxu1  ;;  %v2003_v2 = vpop.f32.mrb[15].mxu0 }
 0x15d   :  { %v2004_v3 = vadd.f32 %v2003_v2, %v2002_v63  ;;  %v2067_v4 = vpop.f32.mrb[15].mxu1 }
 0x15e   :  { %v2685_v5 = vadd.f32 %v2065_v0, %v2001_v61  ;;  %v2068_v6 = vadd.f32 %v2067_v4, %v2066_v1 }
 0x160   :  { %v2687_v7 = vadd.f32 %v2068_v6, %v2004_v3 }
 0x161   :  { %v2005_v8 = vpop.f32.mrb[16].mxu0 }
 0x162   :  { %v2069_v9 = vpop.f32.mrb[16].mxu1  ;;  %v2006_v10 = vpop.f32.mrb[17].mxu0 }
 0x163   :  { %v2007_v11 = vadd.f32 %v2006_v10, %v2005_v8  ;;  %v2070_v12 = vpop.f32.mrb[17].mxu1  ;;  %v2008_v13 = vpop.f32.mrb[18].mxu0 }
 0x164   :  { %v2071_v14 = vadd.f32 %v2070_v12, %v2069_v9  ;;  %v2072_v15 = vpop.f32.mrb[18].mxu1  ;;  %v2009_v16 = vpop.f32.mrb[19].mxu0 }
 0x165   :  { %v2010_v17 = vadd.f32 %v2009_v16, %v2008_v13  ;;  %v2073_v18 = vpop.f32.mrb[19].mxu1 }
 0x166   :  { %v2689_v19 = vadd.f32 %v2071_v14, %v2007_v11  ;;  %v2074_v20 = vadd.f32 %v2073_v18, %v2072_v15 }
 0x168   :  { %v2691_v21 = vadd.f32 %v2074_v20, %v2010_v17 }
 0x169   :  { %v2011_v22 = vpop.f32.mrb[20].mxu0 }
 0x16a   :  { %v2075_v23 = vpop.f32.mrb[20].mxu1  ;;  %v2012_v24 = vpop.f32.mrb[21].mxu0 }
 0x16b   :  { %v2013_v25 = vadd.f32 %v2012_v24, %v2011_v22  ;;  %v2076_v26 = vpop.f32.mrb[21].mxu1  ;;  %v2014_v28 = vpop.f32.mrb[22].mxu0 }
 0x16c   :  { %v2077_v30 = vadd.f32 %v2076_v26, %v2075_v23  ;;  %v2078_v31 = vpop.f32.mrb[22].mxu1  ;;  %v2015_v32 = vpop.f32.mrb[23].mxu0 }
 0x16d   :  { %v2016_v33 = vadd.f32 %v2015_v32, %v2014_v28  ;;  %v2079_v34 = vpop.f32.mrb[23].mxu1 }
 0x16e   :  { %v2693_v35 = vadd.f32 %v2077_v30, %v2013_v25  ;;  %v2080_v36 = vadd.f32 %v2079_v34, %v2078_v31 }
 0x170   :  { %v2695_v37 = vadd.f32 %v2080_v36, %v2016_v33 }
 0x171   :  { %v2017_v38 = vpop.f32.mrb[24].mxu0 }
 0x172   :  { %v2081_v39 = vpop.f32.mrb[24].mxu1  ;;  %v2018_v40 = vpop.f32.mrb[25].mxu0 }
 0x173   :  { %v2019_v42 = vadd.f32 %v2018_v40, %v2017_v38  ;;  %v2082_v44 = vpop.f32.mrb[25].mxu1  ;;  %v2020_v45 = vpop.f32.mrb[26].mxu0 }
 0x174   :  { %v2083_v46 = vadd.f32 %v2082_v44, %v2081_v39  ;;  %v2084_v47 = vpop.f32.mrb[26].mxu1  ;;  %v2021_v48 = vpop.f32.mrb[27].mxu0 }
 0x175   :  { %v2022_v49 = vadd.f32 %v2021_v48, %v2020_v45  ;;  %v2085_v50 = vpop.f32.mrb[27].mxu1 }
 0x176   :  { %v2697_v51 = vadd.f32 %v2083_v46, %v2019_v42  ;;  %v2086_v52 = vadd.f32 %v2085_v50, %v2084_v47 }
 0x178   :  { %v2699_v53 = vadd.f32 %v2086_v52, %v2022_v49 }
 0x179   :  { %v2023_v54 = vpop.f32.mrb[28].mxu0 }
 0x17a   :  { %v2087_v56 = vpop.f32.mrb[28].mxu1  ;;  %v2024_v58 = vpop.f32.mrb[29].mxu0 }
 0x17b   :  { %v2025_v59 = vadd.f32 %v2024_v58, %v2023_v54  ;;  %v2088_v60 = vpop.f32.mrb[29].mxu1  ;;  %v2026_v61 = vpop.f32.mrb[30].mxu0 }
 0x17c   :  { %v2089_v62 = vadd.f32 %v2088_v60, %v2087_v56  ;;  %v2090_v63 = vpop.f32.mrb[30].mxu1  ;;  %v2027_v0 = vpop.f32.mrb[31].mxu0 }
 0x17d   :  { %v2028_v1 = vadd.f32 %v2027_v0, %v2026_v61  ;;  %v2091_v2 = vpop.f32.mrb[31].mxu1 }
 0x17e   :  { %v2701_v3 = vadd.f32 %v2089_v62, %v2025_v59  ;;  %v2092_v4 = vadd.f32 %v2091_v2, %v2090_v63 }
 0x180   :  { %v2703_v6 = vadd.f32 %v2092_v4, %v2028_v1 }
 0x181   :  { %v2109_v8 = vpop.f32.mrb[32].mxu0 }
 0x182   :  { %v2173_v9 = vpop.f32.mrb[32].mxu1  ;;  %v2110_v10 = vpop.f32.mrb[33].mxu0 }
 0x183   :  { %v2111_v11 = vadd.f32 %v2110_v10, %v2109_v8  ;;  %v2174_v12 = vpop.f32.mrb[33].mxu1  ;;  %v2112_v13 = vpop.f32.mrb[34].mxu0 }
 0x184   :  { %v2175_v14 = vadd.f32 %v2174_v12, %v2173_v9  ;;  %v2176_v15 = vpop.f32.mrb[34].mxu1  ;;  %v2113_v16 = vpop.f32.mrb[35].mxu0 }
 0x185   :  { %v1323_v17 = vadd.f32 %v2111_v11, %v2673_v27  ;;  %v2114_v18 = vadd.f32 %v2113_v16, %v2112_v13  ;;  %v2177_v20 = vpop.f32.mrb[35].mxu1 }
 0x186   :  { %v2178_v22 = vadd.f32 %v2177_v20, %v2176_v15 }
 0x187   :  { %v1326_v23 = vadd.f32 %v2114_v18, %v2675_v29  ;;  %v2707_v24 = vadd.f32 %v2175_v14, %v1323_v17 }
 0x189   :  { %v2115_v25 = vpop.f32.mrb[36].mxu0  ;;  %v2709_v26 = vadd.f32 %v2178_v22, %v1326_v23 }
 0x18a   :  { %v2179_v28 = vpop.f32.mrb[36].mxu1  ;;  %v2116_v30 = vpop.f32.mrb[37].mxu0 }
 0x18b   :  { %v2117_v31 = vadd.f32 %v2116_v30, %v2115_v25  ;;  %v2180_v32 = vpop.f32.mrb[37].mxu1  ;;  %v2118_v33 = vpop.f32.mrb[38].mxu0 }
 0x18c   :  { %v2181_v34 = vadd.f32 %v2180_v32, %v2179_v28  ;;  %v2182_v36 = vpop.f32.mrb[38].mxu1  ;;  %v2119_v38 = vpop.f32.mrb[39].mxu0 }
 0x18d   :  { %v1331_v27 = vadd.f32 %v2117_v31, %v2677_v41  ;;  %v2120_v39 = vadd.f32 %v2119_v38, %v2118_v33  ;;  %v2183_v40 = vpop.f32.mrb[39].mxu1 }
 0x18e   :  { %v2184_v42 = vadd.f32 %v2183_v40, %v2182_v36 }
 0x18f   :  { %v1334_v29 = vadd.f32 %v2120_v39, %v2679_v43  ;;  %v2713_v44 = vadd.f32 %v2181_v34, %v1331_v27 }
 0x191   :  { %v2121_v45 = vpop.f32.mrb[40].mxu0  ;;  %v2715_v46 = vadd.f32 %v2184_v42, %v1334_v29 }
 0x192   :  { %v2185_v47 = vpop.f32.mrb[40].mxu1  ;;  %v2122_v48 = vpop.f32.mrb[41].mxu0 }
 0x193   :  { %v2123_v49 = vadd.f32 %v2122_v48, %v2121_v45  ;;  %v2186_v50 = vpop.f32.mrb[41].mxu1  ;;  %v2124_v52 = vpop.f32.mrb[42].mxu0 }
 0x194   :  { %v2187_v54 = vadd.f32 %v2186_v50, %v2185_v47  ;;  %v2188_v56 = vpop.f32.mrb[42].mxu1  ;;  %v2125_v58 = vpop.f32.mrb[43].mxu0 }
 0x195   :  { %v1339_v41 = vadd.f32 %v2123_v49, %v2681_v55  ;;  %v2126_v59 = vadd.f32 %v2125_v58, %v2124_v52  ;;  %v2189_v60 = vpop.f32.mrb[43].mxu1 }
 0x196   :  { %v2190_v61 = vadd.f32 %v2189_v60, %v2188_v56 }
 0x197   :  { %v1342_v43 = vadd.f32 %v2126_v59, %v2683_v57  ;;  %v2719_v62 = vadd.f32 %v2187_v54, %v1339_v41 }
 0x199   :  { %v2127_v63 = vpop.f32.mrb[44].mxu0  ;;  %v2721_v0 = vadd.f32 %v2190_v61, %v1342_v43 }
 0x19a   :  { %v2191_v1 = vpop.f32.mrb[44].mxu1  ;;  %v2128_v2 = vpop.f32.mrb[45].mxu0 }
 0x19b   :  { %v2129_v4 = vadd.f32 %v2128_v2, %v2127_v63  ;;  %v2192_v8 = vpop.f32.mrb[45].mxu1  ;;  %v2130_v9 = vpop.f32.mrb[46].mxu0 }
 0x19c   :  { %v2193_v10 = vadd.f32 %v2192_v8, %v2191_v1  ;;  %v2194_v11 = vpop.f32.mrb[46].mxu1  ;;  %v2131_v12 = vpop.f32.mrb[47].mxu0 }
 0x19d   :  { %v1347_v55 = vadd.f32 %v2129_v4, %v2685_v5  ;;  %v2132_v13 = vadd.f32 %v2131_v12, %v2130_v9  ;;  %v2195_v14 = vpop.f32.mrb[47].mxu1 }
 0x19e   :  { %v2196_v15 = vadd.f32 %v2195_v14, %v2194_v11 }
 0x19f   :  { %v1350_v57 = vadd.f32 %v2132_v13, %v2687_v7  ;;  %v2725_v16 = vadd.f32 %v2193_v10, %v1347_v55 }
 0x1a1   :  { %v2133_v17 = vpop.f32.mrb[48].mxu0  ;;  %v2727_v18 = vadd.f32 %v2196_v15, %v1350_v57 }
 0x1a2   :  { %v2197_v20 = vpop.f32.mrb[48].mxu1  ;;  %v2134_v22 = vpop.f32.mrb[49].mxu0 }
 0x1a3   :  { %v2135_v23 = vadd.f32 %v2134_v22, %v2133_v17  ;;  %v2198_v25 = vpop.f32.mrb[49].mxu1  ;;  %v2136_v28 = vpop.f32.mrb[50].mxu0 }
 0x1a4   :  { %v2199_v30 = vadd.f32 %v2198_v25, %v2197_v20  ;;  %v2200_v31 = vpop.f32.mrb[50].mxu1  ;;  %v2137_v32 = vpop.f32.mrb[51].mxu0 }
 0x1a5   :  { %v1355_v5 = vadd.f32 %v2135_v23, %v2689_v19  ;;  %v2138_v33 = vadd.f32 %v2137_v32, %v2136_v28  ;;  %v2201_v34 = vpop.f32.mrb[51].mxu1 }
 0x1a6   :  { %v2202_v36 = vadd.f32 %v2201_v34, %v2200_v31 }
 0x1a7   :  { %v1358_v7 = vadd.f32 %v2138_v33, %v2691_v21  ;;  %v1452_v38 = vadd.f32 %v2199_v30, %v1355_v5  ;;  %v2743_v33 = vld [vmem:[#allocation7] ss:$0 sm:$0xff] }
 0x1a9   :  { %v2139_v27 = vpop.f32.mrb[52].mxu0  ;;  %v2731_v39 = vadd.f32 %v2202_v36, %v1358_v7 }
 0x1aa   :  { %v2203_v40 = vpop.f32.mrb[52].mxu1  ;;  %v2140_v42 = vpop.f32.mrb[53].mxu0 }
 0x1ab   :  { %v2141_v29 = vadd.f32 %v2140_v42, %v2139_v27  ;;  %v2204_v45 = vpop.f32.mrb[53].mxu1  ;;  %v2142_v47 = vpop.f32.mrb[54].mxu0 }
 0x1ac   :  { %v2205_v48 = vadd.f32 %v2204_v45, %v2203_v40  ;;  %v2206_v49 = vpop.f32.mrb[54].mxu1  ;;  %v2143_v50 = vpop.f32.mrb[55].mxu0  ;;  %v2748_v40 = vld [vmem:[#allocation8] ss:$0 sm:$0xff] }
 0x1ad   :  { %v1363_v52 = vadd.f32 %v2141_v29, %v2693_v35  ;;  %v2144_v19 = vadd.f32 %v2143_v50, %v2142_v47  ;;  %v2207_v54 = vpop.f32.mrb[55].mxu1 }
 0x1ae   :  { %v2208_v56 = vadd.f32 %v2207_v54, %v2206_v49 }
 0x1af   :  { %v1366_v58 = vadd.f32 %v2144_v19, %v2695_v37  ;;  %v1460_v21 = vadd.f32 %v2205_v48, %v1363_v52 }
 0x1b1   :  { %v2145_v41 = vpop.f32.mrb[56].mxu0  ;;  %v1463_v59 = vadd.f32 %v2208_v56, %v1366_v58 }
 0x1b2   :  { %v2209_v60 = vpop.f32.mrb[56].mxu1  ;;  %v2146_v61 = vpop.f32.mrb[57].mxu0 }
 0x1b3   :  { %v2147_v43 = vadd.f32 %v2146_v61, %v2145_v41  ;;  %v2210_v63 = vpop.f32.mrb[57].mxu1  ;;  %v2148_v1 = vpop.f32.mrb[58].mxu0 }
 0x1b4   :  { %v2211_v2 = vadd.f32 %v2210_v63, %v2209_v60  ;;  %v2212_v4 = vpop.f32.mrb[58].mxu1  ;;  %v2149_v8 = vpop.f32.mrb[59].mxu0 }
 0x1b5   :  { %v1371_v9 = vadd.f32 %v2147_v43, %v2697_v51  ;;  %v2150_v10 = vadd.f32 %v2149_v8, %v2148_v1  ;;  %v2213_v35 = vpop.f32.mrb[59].mxu1 }
 0x1b6   :  { %v2214_v11 = vadd.f32 %v2213_v35, %v2212_v4 }
 0x1b7   :  { %v1374_v12 = vadd.f32 %v2150_v10, %v2699_v53  ;;  %v2737_v55 = vadd.f32 %v2211_v2, %v1371_v9 }
 0x1b9   :  { %v2151_v37 = vpop.f32.mrb[60].mxu0  ;;  %v2739_v13 = vadd.f32 %v2214_v11, %v1374_v12 }
 0x1ba   :  { %v2215_v14 = vpop.f32.mrb[60].mxu1  ;;  %v2152_v15 = vpop.f32.mrb[61].mxu0 }
 0x1bb   :  { %v2153_v57 = vadd.f32 %v2152_v15, %v2151_v37  ;;  %v2216_v17 = vpop.f32.mrb[61].mxu1  ;;  %v2154_v20 = vpop.f32.mrb[62].mxu0 }
 0x1bc   :  { %v2217_v22 = vadd.f32 %v2216_v17, %v2215_v14  ;;  %v2218_v23 = vpop.f32.mrb[62].mxu1  ;;  %v2155_v25 = vpop.f32.mrb[63].mxu0 }
 0x1bd   :  { %v1379_v51 = vadd.f32 %v2153_v57, %v2701_v3  ;;  %v2156_v28 = vadd.f32 %v2155_v25, %v2154_v20  ;;  %v2219_v30 = vpop.f32.mrb[63].mxu1 }
 0x1be   :  { %v2220_v31 = vadd.f32 %v2219_v30, %v2218_v23 }
 0x1bf   :  { %v1382_v53 = vadd.f32 %v2156_v28, %v2703_v6  ;;  %v1476_v32 = vadd.f32 %v2217_v22, %v1379_v51 }
 0x1c1   :  { %v2255_v5 = vpop.f32.mrb[64].mxu0  ;;  %v2745_v34 = vadd.f32 %v2220_v31, %v1382_v53 }
 0x1c2   :  { %v1525_v36 = vadd.f32 %v2255_v5, %v2713_v44  ;;  %v2263_v7 = vpop.f32.mrb[64].mxu1  ;;  %v1516_v27 = vpop.f32.mrb[65].mxu0 }
 0x1c3   :  { %v1557_v42 = vadd.f32 %v2263_v7, %v1460_v21  ;;  %v1517_v3 = vadd.f32 %v1516_v27, %v2707_v24  ;;  %v1548_v29 = vpop.f32.mrb[65].mxu1  ;;  %v2256_v45 = vpop.f32.mrb[66].mxu0 }
 0x1c4   :  { %v1588_v47 = vmul.f32 %v2743_v33, %v1525_v36  ;;  %v1549_v6 = vadd.f32 %v1548_v29, %v1452_v38  ;;  %v1528_v48 = vadd.f32 %v2256_v45, %v2715_v46  ;;  %v2264_v49 = vpop.f32.mrb[66].mxu1  ;;  %v1519_v50 = vpop.f32.mrb[67].mxu0 }
 0x1c5   :  { %v1596_v52 = vmul.f32 %v2743_v33, %v1557_v42  ;;  %v1586_v44 = vmul.f32 %v2743_v33, %v1517_v3  ;;  %v1560_v19 = vadd.f32 %v2264_v49, %v1463_v59  ;;  %v1520_v54 = vadd.f32 %v1519_v50, %v2709_v26  ;;  %v1551_v56 = vpop.f32.mrb[67].mxu1 }
 0x1c6   :  { %v1611_v58 = vadd.f32 %v2748_v40, %v1588_v47  ;;  %v1594_v24 = vmul.f32 %v2743_v33, %v1549_v6  ;;  %v1589_v21 = vmul.f32 %v2743_v33, %v1528_v48  ;;  %v1552_v38 = vadd.f32 %v1551_v56, %v2731_v39 }
 0x1c7   :  { %v1619_v46 = vadd.f32 %v2748_v40, %v1596_v52  ;;  %v1609_v41 = vadd.f32 %v2748_v40, %v1586_v44  ;;  %v1597_v60 = vmul.f32 %v2743_v33, %v1560_v19  ;;  %v1587_v61 = vmul.f32 %v2743_v33, %v1520_v54 }
 0x1c8   :  { %v1627_v59 = vmax.f32 %v1611_v58, 0.0  ;;  %v1617_v26 = vadd.f32 %v2748_v40, %v1594_v24  ;;  %v1612_v43 = vadd.f32 %v2748_v40, %v1589_v21  ;;  %v1595_v63 = vmul.f32 %v2743_v33, %v1552_v38 }
 0x1c9   :  { %v1635_v1 = vmax.f32 %v1619_v46, 0.0  ;;  %v1625_v2 = vmax.f32 %v1609_v41, 0.0  ;;  %v1620_v4 = vadd.f32 %v2748_v40, %v1597_v60  ;;  %v1610_v39 = vadd.f32 %v2748_v40, %v1587_v61  ;;  %v2259_v8 = vpop.f32.mrb[68].mxu0 }
 0x1ca   :  { %v1633_v9 = vmax.f32 %v1617_v26, 0.0  ;;  %v1628_v10 = vmax.f32 %v1612_v43, 0.0  ;;  %v1618_v35 = vadd.f32 %v2748_v40, %v1595_v63  ;;  %v1541_v11 = vadd.f32 %v2259_v8, %v2725_v16  ;;  %v2267_v12 = vpop.f32.mrb[68].mxu1  ;;  %v1532_v37 = vpop.f32.mrb[69].mxu0 }
 0x1cb   :  { %v1636_v14 = vmax.f32 %v1620_v4, 0.0  ;;  %v1626_v15 = vmax.f32 %v1610_v39, 0.0  ;;  %v1573_v57 = vadd.f32 %v2267_v12, %v1476_v32  ;;  %v1533_v17 = vadd.f32 %v1532_v37, %v2719_v62  ;;  %v1564_v20 = vpop.f32.mrb[69].mxu1  ;;  %v2260_v22 = vpop.f32.mrb[70].mxu0 }
 0x1cc   :  { %v1926_v23 = vpack.c.bf16 %v1628_v10, %v1627_v59  ;;  %v1634_v25 = vmax.f32 %v1618_v35, 0.0  ;;  %v1592_v51 = vmul.f32 %v2743_v33, %v1541_v11  ;;  %v1565_v28 = vadd.f32 %v1564_v20, %v2737_v55  ;;  %v2268_v30 = vpop.f32.mrb[70].mxu1  ;;  %v1535_v31 = vpop.f32.mrb[71].mxu0 }
 0x1cd   :  { %v1946_v53 = vpack.c.bf16 %v1636_v14, %v1635_v1  ;;  %v1921_v5 = vpack.c.bf16 %v1626_v15, %v1625_v2  ;;  %v1600_v16 = vmul.f32 %v2743_v33, %v1573_v57  ;;  %v1590_v36 = vmul.f32 %v2743_v33, %v1533_v17  ;;  %v1567_v7 = vpop.f32.mrb[71].mxu1 }
 0x1ce   :  { %1958 = vst [vmem:[#allocation10 + $0x8] sm:$0xff] %v1926_v23   ;;  %v1941_v32 = vpack.c.bf16 %v1634_v25, %v1633_v9  ;;  %v1598_v62 = vmul.f32 %v2743_v33, %v1565_v28  ;;  %v1544_v27 = vadd.f32 %v2260_v22, %v2727_v18  ;;  %v1576_v42 = vadd.f32 %v2268_v30, %v2745_v34 }
 0x1cf   :  { %1962 = vst [vmem:[#allocation10 + $0x28] sm:$0xff] %v1946_v53   ;;  %1922 = vst [vmem:[#allocation10] sm:$0xff] %v1921_v5   ;;  %v1536_v55 = vadd.f32 %v1535_v31, %v2721_v0  ;;  %v1615_v3 = vadd.f32 %v2748_v40, %v1592_v51  ;;  %v1568_v45 = vadd.f32 %v1567_v7, %v2739_v13 }
 0x1d0   :  { %1961 = vst [vmem:[#allocation10 + $0x20] sm:$0xff] %v1941_v32   ;;  %v1593_v29 = vmul.f32 %v2743_v33, %v1544_v27  ;;  %v1623_v47 = vadd.f32 %v2748_v40, %v1600_v16  ;;  %v1613_v6 = vadd.f32 %v2748_v40, %v1590_v36  ;;  %v1601_v48 = vmul.f32 %v2743_v33, %v1576_v42 }
 0x1d1   :  { %v1591_v18 = vmul.f32 %v2743_v33, %v1536_v55  ;;  %v1621_v49 = vadd.f32 %v2748_v40, %v1598_v62  ;;  %v1599_v0 = vmul.f32 %v2743_v33, %v1568_v45  ;;  %v1631_v44 = vmax.f32 %v1615_v3, 0.0 }
 0x1d2   :  { %v1616_v34 = vadd.f32 %v2748_v40, %v1593_v29  ;;  %v1624_v50 = vadd.f32 %v2748_v40, %v1601_v48  ;;  %v1639_v54 = vmax.f32 %v1623_v47, 0.0  ;;  %v1629_v56 = vmax.f32 %v1613_v6, 0.0 }
 0x1d3   :  { %v1614_v52 = vadd.f32 %v2748_v40, %v1591_v18  ;;  %v1622_v19 = vadd.f32 %v2748_v40, %v1599_v0  ;;  %v1637_v21 = vmax.f32 %v1621_v49, 0.0 }
 0x1d4   :  { %v1632_v13 = vmax.f32 %v1616_v34, 0.0  ;;  %v1640_v58 = vmax.f32 %v1624_v50, 0.0 }
 0x1d5   :  { %v1630_v24 = vmax.f32 %v1614_v52, 0.0  ;;  %v1638_v46 = vmax.f32 %v1622_v19, 0.0 }
 0x1d6   :  { %v1936_v38 = vpack.c.bf16 %v1632_v13, %v1631_v44  ;;  %v1956_v41 = vpack.c.bf16 %v1640_v58, %v1639_v54 }
 0x1d7   :  { %v1931_v60 = vpack.c.bf16 %v1630_v24, %v1629_v56  ;;  %v1951_v33 = vpack.c.bf16 %v1638_v46, %v1637_v21 }
 0x1d8   :  { %1960 = vst [vmem:[#allocation10 + $0x18] sm:$0xff] %v1936_v38   ;;  %1964 = vst [vmem:[#allocation10 + $0x38] sm:$0xff] %v1956_v41  }
 0x1d9   :  { %1959 = vst [vmem:[#allocation10 + $0x10] sm:$0xff] %v1931_v60   ;;  %1963 = vst [vmem:[#allocation10 + $0x30] sm:$0xff] %v1951_v33  }
 0x1da   :  { %2569 = shalt.err (!%p2566_p8)
}
 0x1db   :  { %s2570_s19 = scalar_lea.hbm %s2812_s4, 1024 }
 0x1dc   :  { %p2571_p9 = scmp.ne.s32.totalorder %s2812_s4, %s2570_s19  ;;  %p2574_p10 = scmp.lt.u32.totalorder %s2570_s19, %s2812_s4 }
 0x1de   :  { %p2576_p11 = pnand %p2574_p10, %p2571_p9 }
 0x1e0   :  { %2579 = shalt.err (!%p2576_p11)
}
 0x1e1   :  { %1732 = dma.vmem_to_hbm [thread:$0]  %s1727_s15, 1024, %s2812_s4, [#allocation4], %s2589_s25, %s2589_s25, %s2590_s26  }
 0x1e2   :  { %2586 = dma.done.wait [#allocation4], 1024  }
 0x1e3   :  { %2587 = vsyncadd [#allocation4], 4294966272 }
 0x1e4   :  { %1736 = vsyncpa [#allocation3], 1 }
 0x1e5   :  { %1737 = vsyncpa [#allocation6], 1 }
 0x1e6   :  { %1738 = vsyncpa [#allocation9], 1 }
 0x1e7   :  { %1739 = vsyncpa [#allocation4], 1 }

// kernel: network_block_fwd.11
= control target key start
LH: loop header
LB: loop body
LE: loop exit
PB: predicated region body
PF: predicated region fallthrough
CT: control target
= control target key end

     0   :  { %8 = vsyncpa [#allocation3], 0  ;;  %s530_s0 = inlined_call_operand.hbm [shape: f32[128,128], index: 0, kind: input, shape index: {}]   ;;  %s531_s1 = inlined_call_operand.hbm [shape: f32[1,128], index: 1, kind: input, shape index: {}]   ;;  %s532_s2 = inlined_call_operand.hbm [shape: f32[1,128], index: 2, kind: input, shape index: {}]   ;;  %s533_s3 = inlined_call_operand.hbm [shape: bf16[128,128], index: 3, kind: output, shape index: {}]  }
   0x1   :  { %9 = vsyncpa [#allocation6], 0 }
   0x2   :  { %10 = vsyncpa [#allocation4], 0  ;;  %s411_s12 = smov [#allocation5]   ;;  %s412_s14 = smov [#allocation2]  }
   0x3   :  { %s29_s13 = sshll.u32 %s411_s12, 4  ;;  %s16_s15 = sshll.u32 %s412_s14, 4  ;;  %s30_s13 = int_to_ptr.vmem [resolvable:$true] %s29_s13  ;;  %s439_s15 = int_to_ptr.vmem [resolvable:$true] %s16_s15 }
   0x4   :  { %s317_s18 = scalar_lea.hbm %s531_s1, 16 }
   0x5   :  { %p318_p0 = scmp.ne.s32.totalorder %s531_s1, %s317_s18  ;;  %p321_p1 = scmp.lt.u32.totalorder %s317_s18, %s531_s1 }
   0x7   :  { %p323_p2 = pnand %p321_p1, %p318_p0 }
   0x9   :  { %326 = shalt.err (!%p323_p2)
}
   0xa   :  { %s327_s23 = scalar_lea.vmem %s30_s13, 16  ;;  %s331_s24 = scalar_lea.vmem %s30_s13, 32 }
   0xb   :  { %p328_p3 = scmp.ne.s32.totalorder %s30_s13, %s327_s23  ;;  %p332_p4 = scmp.lt.s32.totalorder %s30_s13, %s30_s13 }
   0xc   :  { %p333_p5 = scmp.lt.s32.totalorder %s331_s24, %s327_s23 }
   0xe   :  { %p334_p6 = por %p333_p5, %p332_p4 }
  0x10   :  { %p335_p7 = pnand %p334_p6, %p328_p3 }
  0x12   :  { %338 = shalt.err (!%p335_p7)
}
  0x13   :  { %32 = dma.hbm_to_vmem [thread:$0]  %s531_s1, 16, %s30_s13, [#allocation6]  }
  0x14   :  { %s339_s29 = scalar_lea.hbm %s530_s0, 2048 }
  0x15   :  { %p340_p8 = scmp.ne.s32.totalorder %s530_s0, %s339_s29  ;;  %p343_p9 = scmp.lt.u32.totalorder %s339_s29, %s530_s0 }
  0x17   :  { %p345_p10 = pnand %p343_p9, %p340_p8 }
  0x19   :  { %348 = shalt.err (!%p345_p10)
}
  0x1a   :  { %s349_s7 = scalar_lea.vmem %s439_s15, 2048  ;;  %p354_p12 = scmp.lt.s32.totalorder %s439_s15, %s439_s15 }
  0x1b   :  { %p350_p11 = scmp.ne.s32.totalorder %s439_s15, %s349_s7  ;;  %p355_p13 = scmp.lt.s32.totalorder %s349_s7, %s349_s7 }
  0x1d   :  { %p356_p0 = por %p355_p13, %p354_p12 }
  0x1f   :  { %p357_p1 = pnand %p356_p0, %p350_p11 }
  0x21   :  { %360 = shalt.err (!%p357_p1)
}
  0x22   :  { %s413_s1 = smov 128   ;;  %s414_s8 = smov 8  }
  0x23   :  { %22 = dma.hbm_to_vmem [thread:$0]  %s530_s0, 2048, %s439_s15, [#allocation3], %s413_s1, %s413_s1, %s414_s8  }
  0x24   :  { %s415_s11 = smov [#allocation7]   ;;  %s361_s16 = scalar_lea.hbm %s532_s2, 16 }
  0x25   :  { %s39_s12 = sshll.u32 %s415_s11, 4  ;;  %p362_p2 = scmp.ne.s32.totalorder %s532_s2, %s361_s16  ;;  %s40_s12 = int_to_ptr.vmem [resolvable:$true] %s39_s12 }
  0x26   :  { %p365_p3 = scmp.lt.u32.totalorder %s361_s16, %s532_s2 }
  0x28   :  { %p367_p4 = pnand %p365_p3, %p362_p2 }
  0x2a   :  { %370 = shalt.err (!%p367_p4)
}
  0x2b   :  { %s371_s21 = scalar_lea.vmem %s40_s12, 16  ;;  %s375_s0 = scalar_lea.vmem %s40_s12, 32 }
  0x2c   :  { %p372_p5 = scmp.ne.s32.totalorder %s40_s12, %s371_s21  ;;  %p376_p6 = scmp.lt.s32.totalorder %s40_s12, %s40_s12 }
  0x2d   :  { %p377_p7 = scmp.lt.s32.totalorder %s375_s0, %s371_s21 }
  0x2f   :  { %p378_p8 = por %p377_p7, %p376_p6 }
  0x31   :  { %p379_p9 = pnand %p378_p8, %p372_p5 }
  0x33   :  { %382 = shalt.err (!%p379_p9)
}
  0x34   :  { %42 = dma.hbm_to_vmem [thread:$0]  %s532_s2, 16, %s40_s12, [#allocation6]  }
  0x35   :  { %405 = dma.done.wait [#allocation3], 2048  }
  0x36   :  { %406 = vsyncadd [#allocation3], 4294965248 }
  0x37   :  { %407 = dma.done.wait [#allocation6], 32  }
  0x38   :  { %408 = vsyncadd [#allocation6], 4294967264  ;;  %v52_v0 = vld [vmem:[#allocation2] sm:$0xff]  ;;  %v53_v1 = vld [vmem:[#allocation2 + $0x8] sm:$0xff]  ;;  %s416_s2 = smov [#allocation8]  }
  0x39   :  { %v482_v2 = vld [vmem:[#allocation5] ss:$0 sm:$0xff]  ;;  %v486_v5 = vld [vmem:[#allocation7] ss:$0 sm:$0xff]  ;;  %v54_v6 = vld [vmem:[#allocation2 + $0x10] sm:$0xff]  ;;  %s215_s23 = sshll.u32 %s416_s2, 4  ;;  %s216_s23 = int_to_ptr.vmem [resolvable:$true] %s215_s23 }
  0x3a   :  { %v75_v3 = vmul.f32 %v482_v2, %v52_v0  ;;  %v76_v4 = vmul.f32 %v482_v2, %v53_v1  ;;  %v55_v7 = vld [vmem:[#allocation2 + $0x18] sm:$0xff]  ;;  %v77_v8 = vmul.f32 %v482_v2, %v54_v6  ;;  %v56_v10 = vld [vmem:[#allocation2 + $0x20] sm:$0xff]  ;;  %v57_v11 = vld [vmem:[#allocation2 + $0x28] sm:$0xff]  ;;  %s383_s24 = scalar_lea.vmem %s216_s23, 1024  ;;  %p388_p11 = scmp.lt.s32.totalorder %s216_s23, %s216_s23 }
  0x3b   :  { %v78_v9 = vmul.f32 %v482_v2, %v55_v7  ;;  %v58_v12 = vld [vmem:[#allocation2 + $0x30] sm:$0xff]  ;;  %v79_v15 = vmul.f32 %v482_v2, %v56_v10  ;;  %v80_v16 = vmul.f32 %v482_v2, %v57_v11  ;;  %v59_v17 = vld [vmem:[#allocation2 + $0x38] sm:$0xff]  ;;  %v60_v22 = vld [vmem:[#allocation2 + $0x40] sm:$0xff]  ;;  %p384_p10 = scmp.ne.s32.totalorder %s216_s23, %s383_s24  ;;  %p389_p12 = scmp.lt.s32.totalorder %s383_s24, %s383_s24 }
  0x3c   :  { %v98_v13 = vadd.f32 %v486_v5, %v75_v3  ;;  %v99_v14 = vadd.f32 %v486_v5, %v76_v4  ;;  %v100_v18 = vadd.f32 %v486_v5, %v77_v8  ;;  %v81_v20 = vmul.f32 %v482_v2, %v58_v12  ;;  %v61_v27 = vld [vmem:[#allocation2 + $0x48] sm:$0xff]  ;;  %v62_v32 = vld [vmem:[#allocation2 + $0x50] sm:$0xff]  ;;  %v63_v33 = vld [vmem:[#allocation2 + $0x58] sm:$0xff] }
  0x3d   :  { %v101_v19 = vadd.f32 %v486_v5, %v78_v9  ;;  %v82_v21 = vmul.f32 %v482_v2, %v59_v17  ;;  %v102_v25 = vadd.f32 %v486_v5, %v79_v15  ;;  %v103_v26 = vadd.f32 %v486_v5, %v80_v16  ;;  %v64_v38 = vld [vmem:[#allocation2 + $0x60] sm:$0xff]  ;;  %v65_v39 = vld [vmem:[#allocation2 + $0x68] sm:$0xff]  ;;  %v66_v44 = vld [vmem:[#allocation2 + $0x70] sm:$0xff]  ;;  %p390_p13 = por %p389_p12, %p388_p11 }
  0x3e   :  { %v114_v23 = vmax.f32 %v98_v13, 0.0  ;;  %v115_v24 = vmax.f32 %v99_v14, 0.0  ;;  %v116_v28 = vmax.f32 %v100_v18, 0.0  ;;  %v104_v30 = vadd.f32 %v486_v5, %v81_v20  ;;  %v67_v49 = vld [vmem:[#allocation2 + $0x78] sm:$0xff] }
  0x3f   :  { %v117_v29 = vmax.f32 %v101_v19, 0.0  ;;  %v105_v31 = vadd.f32 %v486_v5, %v82_v21  ;;  %v118_v35 = vmax.f32 %v102_v25, 0.0  ;;  %v119_v36 = vmax.f32 %v103_v26, 0.0  ;;  %p391_p0 = pnand %p390_p13, %p384_p10 }
  0x40   :  { %v265_v34 = vpack.c.bf16 %v115_v24, %v114_v23  ;;  %v83_v37 = vmul.f32 %v482_v2, %v60_v22  ;;  %v120_v41 = vmax.f32 %v104_v30, 0.0  ;;  %v84_v43 = vmul.f32 %v482_v2, %v61_v27 }
  0x41   :  { %v270_v40 = vpack.c.bf16 %v117_v29, %v116_v28  ;;  %v121_v42 = vmax.f32 %v105_v31, 0.0  ;;  %v275_v45 = vpack.c.bf16 %v119_v36, %v118_v35  ;;  %v85_v47 = vmul.f32 %v482_v2, %v62_v32 }
  0x42   :  { %266 = vst [vmem:[#allocation8] sm:$0xff] %v265_v34   ;;  %v106_v46 = vadd.f32 %v486_v5, %v83_v37  ;;  %v86_v48 = vmul.f32 %v482_v2, %v63_v33  ;;  %v107_v51 = vadd.f32 %v486_v5, %v84_v43  ;;  %v87_v52 = vmul.f32 %v482_v2, %v64_v38 }
  0x43   :  { %302 = vst [vmem:[#allocation8 + $0x8] sm:$0xff] %v270_v40   ;;  %v280_v50 = vpack.c.bf16 %v121_v42, %v120_v41  ;;  %v88_v53 = vmul.f32 %v482_v2, %v65_v39  ;;  %303 = vst [vmem:[#allocation8 + $0x10] sm:$0xff] %v275_v45   ;;  %v108_v55 = vadd.f32 %v486_v5, %v85_v47 }
  0x44   :  { %v122_v54 = vmax.f32 %v106_v46, 0.0  ;;  %v109_v56 = vadd.f32 %v486_v5, %v86_v48  ;;  %v89_v57 = vmul.f32 %v482_v2, %v66_v44  ;;  %v123_v58 = vmax.f32 %v107_v51, 0.0 }
  0x45   :  { %304 = vst [vmem:[#allocation8 + $0x18] sm:$0xff] %v280_v50   ;;  %v110_v59 = vadd.f32 %v486_v5, %v87_v52  ;;  %v111_v60 = vadd.f32 %v486_v5, %v88_v53  ;;  %v90_v61 = vmul.f32 %v482_v2, %v67_v49  ;;  %v124_v62 = vmax.f32 %v108_v55, 0.0 }
  0x46   :  { %v125_v63 = vmax.f32 %v109_v56, 0.0  ;;  %v112_v0 = vadd.f32 %v486_v5, %v89_v57  ;;  %v285_v1 = vpack.c.bf16 %v123_v58, %v122_v54 }
  0x47   :  { %v126_v3 = vmax.f32 %v110_v59, 0.0  ;;  %v127_v4 = vmax.f32 %v111_v60, 0.0  ;;  %v113_v6 = vadd.f32 %v486_v5, %v90_v61 }
  0x48   :  { %v290_v7 = vpack.c.bf16 %v125_v63, %v124_v62  ;;  %v128_v8 = vmax.f32 %v112_v0, 0.0  ;;  %305 = vst [vmem:[#allocation8 + $0x20] sm:$0xff] %v285_v1  }
  0x49   :  { %v295_v9 = vpack.c.bf16 %v127_v4, %v126_v3  ;;  %v129_v10 = vmax.f32 %v113_v6, 0.0 }
  0x4a   :  { %306 = vst [vmem:[#allocation8 + $0x28] sm:$0xff] %v290_v7  }
  0x4b   :  { %307 = vst [vmem:[#allocation8 + $0x30] sm:$0xff] %v295_v9   ;;  %v300_v11 = vpack.c.bf16 %v129_v10, %v128_v8 }
  0x4d   :  { %308 = vst [vmem:[#allocation8 + $0x38] sm:$0xff] %v300_v11  }
  0x4e   :  { %394 = shalt.err (!%p391_p0)
}
  0x4f   :  { %s395_s27 = scalar_lea.hbm %s533_s3, 1024 }
  0x50   :  { %p396_p1 = scmp.ne.s32.totalorder %s533_s3, %s395_s27  ;;  %p399_p2 = scmp.lt.u32.totalorder %s395_s27, %s533_s3 }
  0x52   :  { %p401_p3 = pnand %p399_p2, %p396_p1 }
  0x54   :  { %404 = shalt.err (!%p401_p3)
}
  0x55   :  { %s417_s5 = smov 64   ;;  %s418_s6 = smov 4  }
  0x56   :  { %221 = dma.vmem_to_hbm [thread:$0]  %s216_s23, 1024, %s533_s3, [#allocation4], %s417_s5, %s417_s5, %s418_s6  }
  0x57   :  { %409 = dma.done.wait [#allocation4], 1024  }
  0x58   :  { %410 = vsyncadd [#allocation4], 4294966272 }
  0x59   :  { %225 = vsyncpa [#allocation3], 1 }
  0x5a   :  { %226 = vsyncpa [#allocation6], 1 }
  0x5b   :  { %227 = vsyncpa [#allocation4], 1 }

// kernel: network_block_fwd.10
= control target key start
LH: loop header
LB: loop body
LE: loop exit
PB: predicated region body
PF: predicated region fallthrough
CT: control target
= control target key end

     0   :  { %8 = vsyncpa [#allocation3], 0  ;;  %s2519_s0 = inlined_call_operand.hbm [shape: bf16[128,1152], index: 0, kind: input, shape index: {}]   ;;  %s2520_s1 = inlined_call_operand.hbm [shape: bf16[1152,128], index: 1, kind: input, shape index: {}]   ;;  %s2521_s2 = inlined_call_operand.hbm [shape: f32[128,128], index: 2, kind: input, shape index: {}]   ;;  %s2522_s3 = inlined_call_operand.hbm [shape: f32[128,128], index: 3, kind: output, shape index: {}]  }
   0x1   :  { %9 = vsyncpa [#allocation6], 0 }
   0x2   :  { %10 = vsyncpa [#allocation4], 0  ;;  %s2360_s12 = smov [#allocation5]   ;;  %s2266_s16 = scalar_lea.hbm %s2520_s1, 9216 }
   0x3   :  { %s28_s13 = sshll.u32 %s2360_s12, 4  ;;  %p2267_p0 = scmp.ne.s32.totalorder %s2520_s1, %s2266_s16  ;;  %s29_s13 = int_to_ptr.vmem [resolvable:$true] %s28_s13 }
   0x4   :  { %p2270_p1 = scmp.lt.u32.totalorder %s2266_s16, %s2520_s1 }
   0x6   :  { %p2272_p2 = pnand %p2270_p1, %p2267_p0 }
   0x8   :  { %2275 = shalt.err (!%p2272_p2)
}
   0x9   :  { %s2276_s21 = scalar_lea.vmem %s29_s13, 9216  ;;  %p2281_p4 = scmp.lt.s32.totalorder %s29_s13, %s29_s13 }
   0xa   :  { %p2277_p3 = scmp.ne.s32.totalorder %s29_s13, %s2276_s21  ;;  %p2282_p5 = scmp.lt.s32.totalorder %s2276_s21, %s2276_s21 }
   0xc   :  { %p2283_p6 = por %p2282_p5, %p2281_p4 }
   0xe   :  { %p2284_p7 = pnand %p2283_p6, %p2277_p3 }
  0x10   :  { %2287 = shalt.err (!%p2284_p7)
}
  0x11   :  { %s2361_s22 = smov 64   ;;  %s2362_s23 = smov 4  }
  0x12   :  { %34 = dma.hbm_to_vmem [thread:$0]  %s2520_s1, 9216, %s29_s13, [#allocation6], %s2361_s22, %s2361_s22, %s2362_s23  }
  0x13   :  { %s2363_s26 = smov [#allocation2]   ;;  %s2288_s30 = scalar_lea.hbm %s2519_s0, 9216 }
  0x14   :  { %s16_s27 = sshll.u32 %s2363_s26, 4  ;;  %p2289_p8 = scmp.ne.s32.totalorder %s2519_s0, %s2288_s30  ;;  %s17_s27 = int_to_ptr.vmem [resolvable:$true] %s16_s27 }
  0x15   :  { %p2292_p9 = scmp.lt.u32.totalorder %s2288_s30, %s2519_s0 }
  0x17   :  { %p2294_p10 = pnand %p2292_p9, %p2289_p8 }
  0x19   :  { %2297 = shalt.err (!%p2294_p10)
}
  0x1a   :  { %s2298_s8 = scalar_lea.vmem %s17_s27, 9216  ;;  %p2303_p12 = scmp.lt.s32.totalorder %s17_s27, %s17_s27 }
  0x1b   :  { %p2299_p11 = scmp.ne.s32.totalorder %s17_s27, %s2298_s8  ;;  %p2304_p13 = scmp.lt.s32.totalorder %s2298_s8, %s2298_s8 }
  0x1d   :  { %p2305_p0 = por %p2304_p13, %p2303_p12 }
  0x1f   :  { %p2306_p1 = pnand %p2305_p0, %p2299_p11 }
  0x21   :  { %2309 = shalt.err (!%p2306_p1)
}
  0x22   :  { %s2364_s1 = smov 576   ;;  %s2365_s9 = smov 36  }
  0x23   :  { %22 = dma.hbm_to_vmem [thread:$0]  %s2519_s0, 9216, %s17_s27, [#allocation3], %s2364_s1, %s2364_s1, %s2365_s9  }
  0x24   :  { %s2366_s12 = smov [#allocation7]   ;;  %s2310_s16 = scalar_lea.hbm %s2521_s2, 2048 }
  0x25   :  { %s40_s13 = sshll.u32 %s2366_s12, 4  ;;  %p2311_p2 = scmp.ne.s32.totalorder %s2521_s2, %s2310_s16  ;;  %s41_s13 = int_to_ptr.vmem [resolvable:$true] %s40_s13 }
  0x26   :  { %p2314_p3 = scmp.lt.u32.totalorder %s2310_s16, %s2521_s2 }
  0x28   :  { %p2316_p4 = pnand %p2314_p3, %p2311_p2 }
  0x2a   :  { %2319 = shalt.err (!%p2316_p4)
}
  0x2b   :  { %s2320_s21 = scalar_lea.vmem %s41_s13, 2048  ;;  %p2325_p6 = scmp.lt.s32.totalorder %s41_s13, %s41_s13 }
  0x2c   :  { %p2321_p5 = scmp.ne.s32.totalorder %s41_s13, %s2320_s21  ;;  %p2326_p7 = scmp.lt.s32.totalorder %s2320_s21, %s2320_s21 }
  0x2e   :  { %p2327_p8 = por %p2326_p7, %p2325_p6 }
  0x30   :  { %p2328_p9 = pnand %p2327_p8, %p2321_p5 }
  0x32   :  { %2331 = shalt.err (!%p2328_p9)
}
  0x33   :  { %s2367_s0 = smov 128   ;;  %s2368_s22 = smov 8  }
  0x34   :  { %46 = dma.hbm_to_vmem [thread:$0]  %s2521_s2, 2048, %s41_s13, [#allocation6], %s2367_s0, %s2367_s0, %s2368_s22  }
  0x35   :  { %2354 = dma.done.wait [#allocation3], 9216  }
  0x36   :  { %2355 = vsyncadd [#allocation3], 4294958080 }
  0x37   :  { %2356 = dma.done.wait [#allocation6], 11264  }
  0x38   :  { %2357 = vsyncadd [#allocation6], 4294956032  ;;  %v2090_v0 = vld [vmem:[#allocation5 + $0x40] sm:$0xff]   ;;  %v2094_v4 = vld [vmem:[#allocation5 + $0x48] sm:$0xff]   ;;  %s2369_s2 = smov [#allocation8]  }
  0x39   :  { %v2091_v1 = vld [vmem:[#allocation5 + $0xc0] sm:$0xff]   ;;  %1760 = vmatprep.subr.bf16.mxu0 %v2090_v0  ;;  %v2095_v5 = vld [vmem:[#allocation5 + $0xc8] sm:$0xff]   ;;  %v2098_v8 = vld [vmem:[#allocation5 + $0x50] sm:$0xff]   ;;  %s1603_s25 = sshll.u32 %s2369_s2, 4  ;;  %s1604_s25 = int_to_ptr.vmem [resolvable:$true] %s1603_s25 }
  0x3a   :  { %v2092_v2 = vld [vmem:[#allocation5] sm:$0xff]   ;;  %1824 = vmatprep.subr.bf16.mxu1 %v2091_v1  ;;  %v2096_v6 = vld [vmem:[#allocation5 + $0x8] sm:$0xff]   ;;  %v2099_v9 = vld [vmem:[#allocation5 + $0xd0] sm:$0xff]   ;;  %s2332_s26 = scalar_lea.vmem %s1604_s25, 2048  ;;  %p2337_p11 = scmp.lt.s32.totalorder %s1604_s25, %s1604_s25 }
  0x3b   :  { %v2093_v3 = vld [vmem:[#allocation5 + $0x80] sm:$0xff]   ;;  %1761 = vmatpush3.bf16.msra.mxu0 %v2092_v2  ;;  %v2097_v7 = vld [vmem:[#allocation5 + $0x88] sm:$0xff]   ;;  %v2100_v10 = vld [vmem:[#allocation5 + $0x10] sm:$0xff]   ;;  %p2333_p10 = scmp.ne.s32.totalorder %s1604_s25, %s2332_s26  ;;  %p2338_p12 = scmp.lt.s32.totalorder %s2332_s26, %s2332_s26 }
  0x3c   :  { %1825 = vmatpush3.bf16.msra.mxu1 %v2093_v3  ;;  %1762 = vmatprep.subr.bf16.mxu0 %v2094_v4  ;;  %v2101_v11 = vld [vmem:[#allocation5 + $0x90] sm:$0xff]   ;;  %v2102_v12 = vld [vmem:[#allocation5 + $0x58] sm:$0xff]   ;;  %v2106_v16 = vld [vmem:[#allocation5 + $0x60] sm:$0xff]  }
  0x3d   :  { %1826 = vmatprep.subr.bf16.mxu1 %v2095_v5  ;;  %v2103_v13 = vld [vmem:[#allocation5 + $0xd8] sm:$0xff]   ;;  %v2107_v17 = vld [vmem:[#allocation5 + $0xe0] sm:$0xff]   ;;  %v2110_v20 = vld [vmem:[#allocation5 + $0x68] sm:$0xff]   ;;  %p2339_p13 = por %p2338_p12, %p2337_p11 }
  0x3e   :  { %v2104_v14 = vld [vmem:[#allocation5 + $0x18] sm:$0xff]   ;;  %v2108_v18 = vld [vmem:[#allocation5 + $0x20] sm:$0xff]   ;;  %v2111_v21 = vld [vmem:[#allocation5 + $0xe8] sm:$0xff]  }
  0x3f   :  { %1763 = vmatpush3.bf16.msra.mxu0 %v2096_v6  ;;  %v2105_v15 = vld [vmem:[#allocation5 + $0x98] sm:$0xff]   ;;  %v2109_v19 = vld [vmem:[#allocation5 + $0xa0] sm:$0xff]   ;;  %v2112_v22 = vld [vmem:[#allocation5 + $0x28] sm:$0xff]   ;;  %p2340_p0 = pnand %p2339_p13, %p2333_p10 }
  0x40   :  { %1827 = vmatpush3.bf16.msra.mxu1 %v2097_v7  ;;  %1764 = vmatprep.subr.bf16.mxu0 %v2098_v8  ;;  %v2113_v23 = vld [vmem:[#allocation5 + $0xa8] sm:$0xff]   ;;  %v2114_v24 = vld [vmem:[#allocation5 + $0x70] sm:$0xff]   ;;  %v2118_v28 = vld [vmem:[#allocation5 + $0x78] sm:$0xff]  }
  0x41   :  { %1828 = vmatprep.subr.bf16.mxu1 %v2099_v9  ;;  %v2115_v25 = vld [vmem:[#allocation5 + $0xf0] sm:$0xff]   ;;  %v2119_v29 = vld [vmem:[#allocation5 + $0xf8] sm:$0xff]   ;;  %v2122_v32 = vld [vmem:[#allocation2] ss:$36 sps:$4 sm:$0xff]  }
  0x42   :  { %v2116_v26 = vld [vmem:[#allocation5 + $0x30] sm:$0xff]   ;;  %v2120_v30 = vld [vmem:[#allocation5 + $0x38] sm:$0xff]   ;;  %v2124_v33 = vld [vmem:[#allocation2 + $0x4] ss:$36 sps:$4 sm:$0xff]  }
  0x43   :  { %1765 = vmatpush3.bf16.msra.mxu0 %v2100_v10  ;;  %v2117_v27 = vld [vmem:[#allocation5 + $0xb0] sm:$0xff]   ;;  %v2121_v31 = vld [vmem:[#allocation5 + $0xb8] sm:$0xff]   ;;  %v2125_v34 = vld [vmem:[#allocation2 + $0x8] ss:$36 sps:$4 sm:$0xff]   ;;  %1129 = vmatprep.mubr.bf16.mxu0 %v2124_v33 }
  0x44   :  { %1829 = vmatpush3.bf16.msra.mxu1 %v2101_v11  ;;  %1766 = vmatprep.subr.bf16.mxu0 %v2102_v12  ;;  %v2127_v35 = vld [vmem:[#allocation2 + $0xc] ss:$36 sps:$4 sm:$0xff]   ;;  %v2128_v36 = vld [vmem:[#allocation5 + $0x140] sm:$0xff]   ;;  %v2134_v41 = vld [vmem:[#allocation2 + $0x54] ss:$36 sps:$4 sm:$0xff]  }
  0x45   :  { %1830 = vmatprep.subr.bf16.mxu1 %v2103_v13  ;;  %1226 = vmatprep.mubr.bf16.mxu1 %v2127_v35  ;;  %v2129_v37 = vld [vmem:[#allocation5 + $0x1c0] sm:$0xff]   ;;  %v2132_v40 = vld [vmem:[#allocation2 + $0x4c] ss:$36 sps:$4 sm:$0xff]   ;;  %v2142_v48 = vld [vmem:[#allocation2 + $0x94] ss:$36 sps:$4 sm:$0xff]  }
  0x46   :  { %v2130_v38 = vld [vmem:[#allocation5 + $0x100] sm:$0xff]   ;;  %v2136_v42 = vld [vmem:[#allocation2 + $0x48] ss:$36 sps:$4 sm:$0xff]   ;;  %v2137_v43 = vld [vmem:[#allocation2 + $0x50] ss:$36 sps:$4 sm:$0xff]  }
  0x47   :  { %1767 = vmatpush3.bf16.msra.mxu0 %v2104_v14  ;;  %v2131_v39 = vld [vmem:[#allocation5 + $0x180] sm:$0xff]   ;;  %v2138_v44 = vld [vmem:[#allocation5 + $0x148] sm:$0xff]   ;;  %v2146_v50 = vld [vmem:[#allocation2 + $0x90] ss:$36 sps:$4 sm:$0xff]  }
  0x48   :  { %1831 = vmatpush3.bf16.msra.mxu1 %v2105_v15  ;;  %1768 = vmatprep.subr.bf16.mxu0 %v2106_v16  ;;  %v2139_v45 = vld [vmem:[#allocation5 + $0x1c8] sm:$0xff]   ;;  %v2144_v49 = vld [vmem:[#allocation2 + $0x9c] ss:$36 sps:$4 sm:$0xff]   ;;  %v2148_v52 = vld [vmem:[#allocation5 + $0x150] sm:$0xff]  }
  0x49   :  { %1832 = vmatprep.subr.bf16.mxu1 %v2107_v17  ;;  %v2140_v46 = vld [vmem:[#allocation5 + $0x108] sm:$0xff]   ;;  %v2147_v51 = vld [vmem:[#allocation2 + $0x98] ss:$36 sps:$4 sm:$0xff]   ;;  %v2149_v53 = vld [vmem:[#allocation5 + $0x1d0] sm:$0xff]  }
  0x4a   :  { %v2141_v47 = vld [vmem:[#allocation5 + $0x188] sm:$0xff]   ;;  %v2150_v54 = vld [vmem:[#allocation5 + $0x110] sm:$0xff]   ;;  %v2152_v56 = vld [vmem:[#allocation2 + $0xdc] ss:$36 sps:$4 sm:$0xff]  }
  0x4b   :  { %1769 = vmatpush3.bf16.msra.mxu0 %v2108_v18  ;;  %v2151_v55 = vld [vmem:[#allocation5 + $0x190] sm:$0xff]   ;;  %v2154_v57 = vld [vmem:[#allocation2 + $0xe4] ss:$36 sps:$4 sm:$0xff]   ;;  %v2156_v58 = vld [vmem:[#allocation2 + $0xd8] ss:$36 sps:$4 sm:$0xff]  }
  0x4c   :  { %1833 = vmatpush3.bf16.msra.mxu1 %v2109_v19  ;;  %1770 = vmatprep.subr.bf16.mxu0 %v2110_v20  ;;  %v2157_v59 = vld [vmem:[#allocation2 + $0xe0] ss:$36 sps:$4 sm:$0xff]   ;;  %v2158_v60 = vld [vmem:[#allocation5 + $0x158] sm:$0xff]   ;;  %v2164_v1 = vld [vmem:[#allocation2 + $0x12c] ss:$36 sps:$4 sm:$0xff]  }
  0x4d   :  { %1834 = vmatprep.subr.bf16.mxu1 %v2111_v21  ;;  %v2159_v61 = vld [vmem:[#allocation5 + $0x1d8] sm:$0xff]   ;;  %v2162_v0 = vld [vmem:[#allocation2 + $0x124] ss:$36 sps:$4 sm:$0xff]   ;;  %v2172_v8 = vld [vmem:[#allocation2 + $0x16c] ss:$36 sps:$4 sm:$0xff]  }
  0x4e   :  { %v2160_v62 = vld [vmem:[#allocation5 + $0x118] sm:$0xff]   ;;  %v2166_v2 = vld [vmem:[#allocation2 + $0x120] ss:$36 sps:$4 sm:$0xff]   ;;  %v2167_v4 = vld [vmem:[#allocation2 + $0x128] ss:$36 sps:$4 sm:$0xff]  }
  0x4f   :  { %1771 = vmatpush3.bf16.msra.mxu0 %v2112_v22  ;;  %v2161_v63 = vld [vmem:[#allocation5 + $0x198] sm:$0xff]   ;;  %v2168_v3 = vld [vmem:[#allocation5 + $0x160] sm:$0xff]   ;;  %v2178_v10 = vld [vmem:[#allocation5 + $0x168] sm:$0xff]  }
  0x50   :  { %1835 = vmatpush3.bf16.msra.mxu1 %v2113_v23  ;;  %1772 = vmatprep.subr.bf16.mxu0 %v2114_v24  ;;  %v2169_v5 = vld [vmem:[#allocation5 + $0x1e0] sm:$0xff]   ;;  %v2174_v9 = vld [vmem:[#allocation2 + $0x174] ss:$36 sps:$4 sm:$0xff]   ;;  %v2179_v11 = vld [vmem:[#allocation5 + $0x1e8] sm:$0xff]  }
  0x51   :  { %1836 = vmatprep.subr.bf16.mxu1 %v2115_v25  ;;  %v2170_v6 = vld [vmem:[#allocation5 + $0x120] sm:$0xff]   ;;  %v2176_v12 = vld [vmem:[#allocation2 + $0x168] ss:$36 sps:$4 sm:$0xff]   ;;  %v2177_v15 = vld [vmem:[#allocation2 + $0x170] ss:$36 sps:$4 sm:$0xff]  }
  0x52   :  { %v2171_v7 = vld [vmem:[#allocation5 + $0x1a0] sm:$0xff]   ;;  %v2180_v13 = vld [vmem:[#allocation5 + $0x128] sm:$0xff]   ;;  %v2182_v16 = vld [vmem:[#allocation2 + $0x1b4] ss:$36 sps:$4 sm:$0xff]  }
  0x53   :  { %1773 = vmatpush3.bf16.msra.mxu0 %v2116_v26  ;;  %v2181_v14 = vld [vmem:[#allocation5 + $0x1a8] sm:$0xff]   ;;  %v2184_v17 = vld [vmem:[#allocation2 + $0x1bc] ss:$36 sps:$4 sm:$0xff]   ;;  %v2188_v18 = vld [vmem:[#allocation5 + $0x170] sm:$0xff]  }
  0x54   :  { %1837 = vmatpush3.bf16.msra.mxu1 %v2117_v27  ;;  %1774 = vmatprep.subr.bf16.mxu0 %v2118_v28  ;;  %v2189_v19 = vld [vmem:[#allocation5 + $0x1f0] sm:$0xff]   ;;  %v2187_v23 = vld [vmem:[#allocation2 + $0x1b8] ss:$36 sps:$4 sm:$0xff]   ;;  %v2194_v25 = vld [vmem:[#allocation2 + $0x204] ss:$36 sps:$4 sm:$0xff]  }
  0x55   :  { %1838 = vmatprep.subr.bf16.mxu1 %v2119_v29  ;;  %v2190_v20 = vld [vmem:[#allocation5 + $0x130] sm:$0xff]   ;;  %v2192_v24 = vld [vmem:[#allocation2 + $0x1fc] ss:$36 sps:$4 sm:$0xff]  }
  0x56   :  { %v2191_v21 = vld [vmem:[#allocation5 + $0x1b0] sm:$0xff]   ;;  %v2198_v26 = vld [vmem:[#allocation5 + $0x178] sm:$0xff]  }
  0x57   :  { %1775 = vmatpush3.bf16.msra.mxu0 %v2120_v30  ;;  %v2186_v22 = vld [vmem:[#allocation2 + $0x1b0] ss:$36 sps:$4 sm:$0xff]   ;;  %v2199_v27 = vld [vmem:[#allocation5 + $0x1f8] sm:$0xff]  }
  0x58   :  { %1839 = vmatpush3.bf16.msra.mxu1 %v2121_v31  ;;  %1888 = vmatprep.subr.bf16.mxu0 %v2128_v36  ;;  %v2200_v28 = vld [vmem:[#allocation5 + $0x138] sm:$0xff]   ;;  %v2197_v31 = vld [vmem:[#allocation2 + $0x200] ss:$36 sps:$4 sm:$0xff]   ;;  %v2202_v35 = vld [vmem:[#allocation2 + $0x10] ss:$36 sps:$4 sm:$0xff]  }
  0x59   :  { %1952 = vmatprep.subr.bf16.mxu1 %v2129_v37  ;;  %v2201_v29 = vld [vmem:[#allocation5 + $0x1b8] sm:$0xff]  }
  0x5a   :  { %1130 = vmatmul.mubr.bf16.vlgmr.msra.gmra.mrb[0].mxu0 %v2122_v32  ;;  %v2196_v30 = vld [vmem:[#allocation2 + $0x1f8] ss:$36 sps:$4 sm:$0xff]   ;;  %v2208_v32 = vld [vmem:[#allocation5 + $0x200] sm:$0xff]  }
  0x5b   :  { %1227 = vmatmul.mubr.bf16.vlgmr.msra.gmra.mrb[0].mxu1 %v2125_v34  ;;  %1889 = vmatpush3.bf16.msra.mxu0 %v2130_v38  ;;  %v2204_v33 = vld [vmem:[#allocation2 + $0x14] ss:$36 sps:$4 sm:$0xff]   ;;  %v2207_v34 = vld [vmem:[#allocation2 + $0x1c] ss:$36 sps:$4 sm:$0xff]   ;;  %v2211_v38 = vld [vmem:[#allocation2 + $0x64] ss:$36 sps:$4 sm:$0xff]  }
  0x5c   :  { %1953 = vmatpush3.bf16.msra.mxu1 %v2131_v39  ;;  %1137 = vmatprep.mubr.bf16.mxu0 %v2132_v40  ;;  %v2205_v36 = vld [vmem:[#allocation2 + $0x18] ss:$36 sps:$4 sm:$0xff]   ;;  %v2215_v39 = vld [vmem:[#allocation5 + $0x208] sm:$0xff]   ;;  %v2222_v40 = vld [vmem:[#allocation5 + $0x210] sm:$0xff]  }
  0x5d   :  { %1234 = vmatprep.mubr.bf16.mxu1 %v2134_v41  ;;  %1890 = vmatprep.subr.bf16.mxu0 %v2138_v44  ;;  %v2209_v37 = vld [vmem:[#allocation2 + $0x5c] ss:$36 sps:$4 sm:$0xff]   ;;  %v2218_v44 = vld [vmem:[#allocation2 + $0xac] ss:$36 sps:$4 sm:$0xff]  }
  0x5e   :  { %1954 = vmatprep.subr.bf16.mxu1 %v2139_v45  ;;  %v2213_v41 = vld [vmem:[#allocation2 + $0x58] ss:$36 sps:$4 sm:$0xff]  }
  0x5f   :  { %1891 = vmatpush3.bf16.msra.mxu0 %v2140_v46  ;;  %v2229_v45 = vld [vmem:[#allocation5 + $0x218] sm:$0xff]   ;;  %v2236_v46 = vld [vmem:[#allocation5 + $0x220] sm:$0xff]  }
  0x60   :  { %1955 = vmatpush3.bf16.msra.mxu1 %v2141_v47  ;;  %1892 = vmatprep.subr.bf16.mxu0 %v2148_v52  ;;  %v2220_v47 = vld [vmem:[#allocation2 + $0xa0] ss:$36 sps:$4 sm:$0xff]   ;;  %v2227_v52 = vld [vmem:[#allocation2 + $0xe8] ss:$36 sps:$4 sm:$0xff]  }
  0x61   :  { %1956 = vmatprep.subr.bf16.mxu1 %v2149_v53  ;;  %v2250_v53 = vld [vmem:[#allocation5 + $0x230] sm:$0xff]  }
  0x62   :  { %1138 = vmatmul.mubr.bf16.gmra.mrb[4].mxu0 %v2136_v42  ;;  %v2214_v42 = vld [vmem:[#allocation2 + $0x60] ss:$36 sps:$4 sm:$0xff]  }
  0x63   :  { %1235 = vmatmul.mubr.bf16.gmra.mrb[4].mxu1 %v2137_v43  ;;  %1145 = vmatprep.mubr.bf16.mxu0 %v2142_v48  ;;  %v2216_v43 = vld [vmem:[#allocation2 + $0xa4] ss:$36 sps:$4 sm:$0xff]  }
  0x64   :  { %1242 = vmatprep.mubr.bf16.mxu1 %v2144_v49  ;;  %1893 = vmatpush3.bf16.msra.mxu0 %v2150_v54  ;;  %v2221_v48 = vld [vmem:[#allocation2 + $0xa8] ss:$36 sps:$4 sm:$0xff]   ;;  %v2228_v54 = vld [vmem:[#allocation2 + $0xf0] ss:$36 sps:$4 sm:$0xff]  }
  0x65   :  { %1957 = vmatpush3.bf16.msra.mxu1 %v2151_v55  ;;  %1894 = vmatprep.subr.bf16.mxu0 %v2158_v60  ;;  %v2223_v49 = vld [vmem:[#allocation2 + $0xec] ss:$36 sps:$4 sm:$0xff]   ;;  %v2230_v55 = vld [vmem:[#allocation2 + $0x134] ss:$36 sps:$4 sm:$0xff]   ;;  %v2237_v60 = vld [vmem:[#allocation2 + $0x17c] ss:$36 sps:$4 sm:$0xff]  }
  0x66   :  { %1958 = vmatprep.subr.bf16.mxu1 %v2159_v61  ;;  %v2239_v61 = vld [vmem:[#allocation2 + $0x184] ss:$36 sps:$4 sm:$0xff]  }
  0x68   :  { %1895 = vmatpush3.bf16.msra.mxu0 %v2160_v62  ;;  %v2241_v62 = vld [vmem:[#allocation2 + $0x178] ss:$36 sps:$4 sm:$0xff]  }
  0x69   :  { %1959 = vmatpush3.bf16.msra.mxu1 %v2161_v63  ;;  %1896 = vmatprep.subr.bf16.mxu0 %v2168_v3  ;;  %v2242_v63 = vld [vmem:[#allocation2 + $0x180] ss:$36 sps:$4 sm:$0xff]   ;;  %v2249_v3 = vld [vmem:[#allocation2 + $0x1c8] ss:$36 sps:$4 sm:$0xff]  }
  0x6a   :  { %1146 = vmatmul.mubr.bf16.gmra.mrb[8].mxu0 %v2146_v50  ;;  %1960 = vmatprep.subr.bf16.mxu1 %v2169_v5  ;;  %v2225_v50 = vld [vmem:[#allocation2 + $0xf4] ss:$36 sps:$4 sm:$0xff]  }
  0x6b   :  { %1243 = vmatmul.mubr.bf16.gmra.mrb[8].mxu1 %v2147_v51  ;;  %1153 = vmatprep.mubr.bf16.mxu0 %v2152_v56  ;;  %v2243_v51 = vld [vmem:[#allocation5 + $0x228] sm:$0xff]   ;;  %v2232_v56 = vld [vmem:[#allocation2 + $0x13c] ss:$36 sps:$4 sm:$0xff]   ;;  %v2253_v5 = vld [vmem:[#allocation2 + $0x214] ss:$36 sps:$4 sm:$0xff]  }
  0x6c   :  { %1250 = vmatprep.mubr.bf16.mxu1 %v2154_v57  ;;  %1897 = vmatpush3.bf16.msra.mxu0 %v2170_v6  ;;  %v2257_v57 = vld [vmem:[#allocation5 + $0x238] sm:$0xff]   ;;  %v2255_v6 = vld [vmem:[#allocation2 + $0x208] ss:$36 sps:$4 sm:$0xff]  }
  0x6d   :  { %1961 = vmatpush3.bf16.msra.mxu1 %v2171_v7  ;;  %1898 = vmatprep.subr.bf16.mxu0 %v2178_v10  ;;  %v2256_v7 = vld [vmem:[#allocation2 + $0x210] ss:$36 sps:$4 sm:$0xff]   ;;  %v2260_v10 = vld [vmem:[#allocation2 + $0x68] ss:$36 sps:$4 sm:$0xff]  }
  0x6e   :  { %1962 = vmatprep.subr.bf16.mxu1 %v2179_v11  ;;  %v2261_v11 = vld [vmem:[#allocation2 + $0x188] ss:$36 sps:$4 sm:$0xff]  }
  0x70   :  { %1899 = vmatpush3.bf16.msra.mxu0 %v2180_v13  ;;  %v2263_v13 = vld [vmem:[#allocation2 + $0x1d0] ss:$36 sps:$4 sm:$0xff]  }
  0x71   :  { %1963 = vmatpush3.bf16.msra.mxu1 %v2181_v14  ;;  %1900 = vmatprep.subr.bf16.mxu0 %v2188_v18  ;;  %v2264_v14 = vld [vmem:[#allocation2 + $0xf8] ss:$36 sps:$4 sm:$0xff]   ;;  %v281_v18 = vld [vmem:[#allocation7] sm:$0xff] }
  0x72   :  { %1154 = vmatmul.mubr.bf16.gmra.mrb[12].mxu0 %v2156_v58  ;;  %1964 = vmatprep.subr.bf16.mxu1 %v2189_v19  ;;  %v2234_v58 = vld [vmem:[#allocation2 + $0x130] ss:$36 sps:$4 sm:$0xff]  }
  0x73   :  { %1251 = vmatmul.mubr.bf16.gmra.mrb[12].mxu1 %v2157_v59  ;;  %1161 = vmatprep.mubr.bf16.mxu0 %v2162_v0  ;;  %v2235_v59 = vld [vmem:[#allocation2 + $0x138] ss:$36 sps:$4 sm:$0xff]   ;;  %v2244_v0 = vld [vmem:[#allocation2 + $0x1c4] ss:$36 sps:$4 sm:$0xff]  }
  0x74   :  { %1258 = vmatprep.mubr.bf16.mxu1 %v2164_v1  ;;  %1901 = vmatpush3.bf16.msra.mxu0 %v2190_v20  ;;  %v2246_v1 = vld [vmem:[#allocation2 + $0x1cc] ss:$36 sps:$4 sm:$0xff]  }
  0x75   :  { %1965 = vmatpush3.bf16.msra.mxu1 %v2191_v21  ;;  %1902 = vmatprep.subr.bf16.mxu0 %v2198_v26 }
  0x76   :  { %1966 = vmatprep.subr.bf16.mxu1 %v2199_v27 }
  0x78   :  { %1903 = vmatpush3.bf16.msra.mxu0 %v2200_v28 }
  0x79   :  { %1967 = vmatpush3.bf16.msra.mxu1 %v2201_v29  ;;  %2032 = vmatprep.subr.bf16.mxu0 %v2208_v32 }
  0x7a   :  { %1162 = vmatmul.mubr.bf16.gmra.mrb[16].mxu0 %v2166_v2  ;;  %2064 = vmatprep.subr.bf16.mxu1 %v2208_v32  ;;  %v2248_v2 = vld [vmem:[#allocation2 + $0x1c0] ss:$36 sps:$4 sm:$0xff]  }
  0x7b   :  { %1259 = vmatmul.mubr.bf16.gmra.mrb[16].mxu1 %v2167_v4  ;;  %1169 = vmatprep.mubr.bf16.mxu0 %v2172_v8  ;;  %v2251_v4 = vld [vmem:[#allocation2 + $0x20c] ss:$36 sps:$4 sm:$0xff]   ;;  %v2258_v8 = vld [vmem:[#allocation2 + $0x20] ss:$36 sps:$4 sm:$0xff]  }
  0x7c   :  { %1266 = vmatprep.mubr.bf16.mxu1 %v2174_v9  ;;  %v2259_v9 = vld [vmem:[#allocation2 + $0x140] ss:$36 sps:$4 sm:$0xff]  }
  0x82   :  { %1170 = vmatmul.mubr.bf16.gmra.mrb[20].mxu0 %v2176_v12  ;;  %v2262_v12 = vld [vmem:[#allocation2 + $0xb0] ss:$36 sps:$4 sm:$0xff]  }
  0x83   :  { %1267 = vmatmul.mubr.bf16.gmra.mrb[20].mxu1 %v2177_v15  ;;  %1177 = vmatprep.mubr.bf16.mxu0 %v2182_v16  ;;  %v2265_v15 = vld [vmem:[#allocation2 + $0x218] ss:$36 sps:$4 sm:$0xff]  }
  0x84   :  { %1274 = vmatprep.mubr.bf16.mxu1 %v2184_v17 }
  0x8a   :  { %1178 = vmatmul.mubr.bf16.gmra.mrb[24].mxu0 %v2186_v22 }
  0x8b   :  { %1275 = vmatmul.mubr.bf16.gmra.mrb[24].mxu1 %v2187_v23  ;;  %1185 = vmatprep.mubr.bf16.mxu0 %v2192_v24 }
  0x8c   :  { %1282 = vmatprep.mubr.bf16.mxu1 %v2194_v25  ;;  %v282_v25 = vld [vmem:[#allocation7 + $0x8] sm:$0xff] }
  0x92   :  { %1186 = vmatmul.mubr.bf16.gmra.mrb[28].mxu0 %v2196_v30 }
  0x93   :  { %1283 = vmatmul.mubr.bf16.gmra.mrb[28].mxu1 %v2197_v31  ;;  %1323 = vmatprep.mubr.bf16.mxu0 %v2204_v33 }
  0x94   :  { %1420 = vmatprep.mubr.bf16.mxu1 %v2207_v34 }
  0x9a   :  { %1324 = vmatmul.mubr.bf16.vlgmr.msra.gmra.mrb[32].mxu0 %v2202_v35 }
  0x9b   :  { %1421 = vmatmul.mubr.bf16.vlgmr.msra.gmra.mrb[32].mxu1 %v2205_v36  ;;  %2033 = vmatpush3.bf16.msra.mxu0 %v2208_v32  ;;  %v283_v36 = vld [vmem:[#allocation7 + $0x10] sm:$0xff] }
  0x9c   :  { %2072 = vmatpush3.bf16.msra.mxu1 %v2208_v32  ;;  %1331 = vmatprep.mubr.bf16.mxu0 %v2209_v37 }
  0x9d   :  { %1428 = vmatprep.mubr.bf16.mxu1 %v2211_v38  ;;  %2034 = vmatprep.subr.bf16.mxu0 %v2215_v39 }
  0x9e   :  { %2065 = vmatprep.subr.bf16.mxu1 %v2215_v39 }
  0x9f   :  { %2035 = vmatpush3.bf16.msra.mxu0 %v2215_v39 }
  0xa0   :  { %2073 = vmatpush3.bf16.msra.mxu1 %v2215_v39  ;;  %2036 = vmatprep.subr.bf16.mxu0 %v2222_v40 }
  0xa1   :  { %2066 = vmatprep.subr.bf16.mxu1 %v2222_v40 }
  0xa2   :  { %1332 = vmatmul.mubr.bf16.gmra.mrb[36].mxu0 %v2213_v41 }
  0xa3   :  { %1429 = vmatmul.mubr.bf16.gmra.mrb[36].mxu1 %v2214_v42  ;;  %1339 = vmatprep.mubr.bf16.mxu0 %v2216_v43  ;;  %v284_v43 = vld [vmem:[#allocation7 + $0x18] sm:$0xff] }
  0xa4   :  { %1436 = vmatprep.mubr.bf16.mxu1 %v2218_v44  ;;  %2037 = vmatpush3.bf16.msra.mxu0 %v2222_v40 }
  0xa5   :  { %2074 = vmatpush3.bf16.msra.mxu1 %v2222_v40  ;;  %2038 = vmatprep.subr.bf16.mxu0 %v2229_v45 }
  0xa6   :  { %2067 = vmatprep.subr.bf16.mxu1 %v2229_v45 }
  0xa8   :  { %2039 = vmatpush3.bf16.msra.mxu0 %v2229_v45 }
  0xa9   :  { %2075 = vmatpush3.bf16.msra.mxu1 %v2229_v45  ;;  %2040 = vmatprep.subr.bf16.mxu0 %v2236_v46 }
  0xaa   :  { %1340 = vmatmul.mubr.bf16.gmra.mrb[40].mxu0 %v2220_v47  ;;  %2068 = vmatprep.subr.bf16.mxu1 %v2236_v46 }
  0xab   :  { %1437 = vmatmul.mubr.bf16.gmra.mrb[40].mxu1 %v2221_v48  ;;  %1347 = vmatprep.mubr.bf16.mxu0 %v2223_v49 }
  0xac   :  { %1444 = vmatprep.mubr.bf16.mxu1 %v2225_v50  ;;  %2041 = vmatpush3.bf16.msra.mxu0 %v2236_v46 }
  0xad   :  { %2076 = vmatpush3.bf16.msra.mxu1 %v2236_v46  ;;  %2042 = vmatprep.subr.bf16.mxu0 %v2243_v51 }
  0xae   :  { %2069 = vmatprep.subr.bf16.mxu1 %v2243_v51 }
  0xb0   :  { %2043 = vmatpush3.bf16.msra.mxu0 %v2243_v51 }
  0xb1   :  { %2077 = vmatpush3.bf16.msra.mxu1 %v2243_v51  ;;  %2044 = vmatprep.subr.bf16.mxu0 %v2250_v53 }
  0xb2   :  { %1348 = vmatmul.mubr.bf16.gmra.mrb[44].mxu0 %v2227_v52  ;;  %2070 = vmatprep.subr.bf16.mxu1 %v2250_v53 }
  0xb3   :  { %1445 = vmatmul.mubr.bf16.gmra.mrb[44].mxu1 %v2228_v54  ;;  %1355 = vmatprep.mubr.bf16.mxu0 %v2230_v55  ;;  %v285_v54 = vld [vmem:[#allocation7 + $0x20] sm:$0xff] }
  0xb4   :  { %1452 = vmatprep.mubr.bf16.mxu1 %v2232_v56  ;;  %2045 = vmatpush3.bf16.msra.mxu0 %v2250_v53 }
  0xb5   :  { %2078 = vmatpush3.bf16.msra.mxu1 %v2250_v53  ;;  %2046 = vmatprep.subr.bf16.mxu0 %v2257_v57 }
  0xb6   :  { %2071 = vmatprep.subr.bf16.mxu1 %v2257_v57 }
  0xb8   :  { %2047 = vmatpush3.bf16.msra.mxu0 %v2257_v57 }
  0xb9   :  { %2079 = vmatpush3.bf16.msra.mxu1 %v2257_v57 }
  0xba   :  { %1356 = vmatmul.mubr.bf16.gmra.mrb[48].mxu0 %v2234_v58 }
  0xbb   :  { %1453 = vmatmul.mubr.bf16.gmra.mrb[48].mxu1 %v2235_v59  ;;  %1363 = vmatprep.mubr.bf16.mxu0 %v2237_v60 }
  0xbc   :  { %1460 = vmatprep.mubr.bf16.mxu1 %v2239_v61  ;;  %v286_v61 = vld [vmem:[#allocation7 + $0x28] sm:$0xff] }
  0xc2   :  { %1364 = vmatmul.mubr.bf16.gmra.mrb[52].mxu0 %v2241_v62 }
  0xc3   :  { %1461 = vmatmul.mubr.bf16.gmra.mrb[52].mxu1 %v2242_v63  ;;  %1371 = vmatprep.mubr.bf16.mxu0 %v2244_v0 }
  0xc4   :  { %1468 = vmatprep.mubr.bf16.mxu1 %v2246_v1 }
  0xca   :  { %1372 = vmatmul.mubr.bf16.gmra.mrb[56].mxu0 %v2248_v2 }
  0xcb   :  { %1469 = vmatmul.mubr.bf16.gmra.mrb[56].mxu1 %v2249_v3  ;;  %1379 = vmatprep.mubr.bf16.mxu0 %v2251_v4 }
  0xcc   :  { %1476 = vmatprep.mubr.bf16.mxu1 %v2253_v5 }
  0xd2   :  { %1380 = vmatmul.mubr.bf16.gmra.mrb[60].mxu0 %v2255_v6 }
  0xd3   :  { %1477 = vmatmul.mubr.bf16.gmra.mrb[60].mxu1 %v2256_v7  ;;  %2048 = vmatprep.mubr.bf16.mxu0 %v2258_v8  ;;  %v287_v8 = vld [vmem:[#allocation7 + $0x30] sm:$0xff] }
  0xd4   :  { %2056 = vmatprep.mubr.bf16.mxu1 %v2259_v9 }
  0xda   :  { %2049 = vmatmul.mubr.bf16.vlgmr.msra.gmra.mrb[64].mxu0 %v2260_v10 }
  0xdb   :  { %2057 = vmatmul.mubr.bf16.vlgmr.msra.gmra.mrb[64].mxu1 %v2261_v11  ;;  %2052 = vmatprep.mubr.bf16.mxu0 %v2262_v12 }
  0xdc   :  { %2060 = vmatprep.mubr.bf16.mxu1 %v2263_v13 }
  0xe2   :  { %2053 = vmatmul.mubr.bf16.gmra.mrb[68].mxu0 %v2264_v14 }
  0xe3   :  { %2061 = vmatmul.mubr.bf16.gmra.mrb[68].mxu1 %v2265_v15  ;;  %v288_v15 = vld [vmem:[#allocation7 + $0x38] sm:$0xff] }
 0x12d   :  { %v1776_v16 = vpop.f32.mrb[0].mxu0 }
 0x12e   :  { %v1840_v17 = vpop.f32.mrb[0].mxu1  ;;  %v1777_v19 = vpop.f32.mrb[1].mxu0 }
 0x12f   :  { %v1778_v20 = vadd.f32 %v1777_v19, %v1776_v16  ;;  %v1841_v21 = vpop.f32.mrb[1].mxu1  ;;  %v1779_v22 = vpop.f32.mrb[2].mxu0 }
 0x130   :  { %v1842_v23 = vadd.f32 %v1841_v21, %v1840_v17  ;;  %v1843_v24 = vpop.f32.mrb[2].mxu1  ;;  %v1780_v26 = vpop.f32.mrb[3].mxu0 }
 0x131   :  { %v1132_v27 = vadd.f32 %v1778_v20, %v281_v18  ;;  %v1781_v28 = vadd.f32 %v1780_v26, %v1779_v22  ;;  %v1844_v29 = vpop.f32.mrb[3].mxu1  ;;  %v289_v26 = vld [vmem:[#allocation7 + $0x40] sm:$0xff] }
 0x132   :  { %v1845_v30 = vadd.f32 %v1844_v29, %v1843_v24 }
 0x133   :  { %v2429_v31 = vadd.f32 %v1842_v23, %v1132_v27  ;;  %v1135_v32 = vadd.f32 %v1781_v28, %v282_v25 }
 0x135   :  { %v2431_v33 = vadd.f32 %v1845_v30, %v1135_v32  ;;  %v1782_v34 = vpop.f32.mrb[4].mxu0 }
 0x136   :  { %v1846_v35 = vpop.f32.mrb[4].mxu1  ;;  %v1783_v37 = vpop.f32.mrb[5].mxu0 }
 0x137   :  { %v1784_v38 = vadd.f32 %v1783_v37, %v1782_v34  ;;  %v1847_v39 = vpop.f32.mrb[5].mxu1  ;;  %v1785_v40 = vpop.f32.mrb[6].mxu0 }
 0x138   :  { %v1848_v41 = vadd.f32 %v1847_v39, %v1846_v35  ;;  %v1849_v42 = vpop.f32.mrb[6].mxu1  ;;  %v1786_v44 = vpop.f32.mrb[7].mxu0  ;;  %v290_v35 = vld [vmem:[#allocation7 + $0x48] sm:$0xff] }
 0x139   :  { %v1140_v45 = vadd.f32 %v1784_v38, %v283_v36  ;;  %v1787_v46 = vadd.f32 %v1786_v44, %v1785_v40  ;;  %v1850_v47 = vpop.f32.mrb[7].mxu1 }
 0x13a   :  { %v1851_v48 = vadd.f32 %v1850_v47, %v1849_v42 }
 0x13b   :  { %v2433_v49 = vadd.f32 %v1848_v41, %v1140_v45  ;;  %v1143_v50 = vadd.f32 %v1787_v46, %v284_v43  ;;  %v291_v46 = vld [vmem:[#allocation7 + $0x50] sm:$0xff] }
 0x13d   :  { %v2435_v51 = vadd.f32 %v1851_v48, %v1143_v50  ;;  %v1788_v52 = vpop.f32.mrb[8].mxu0 }
 0x13e   :  { %v1852_v53 = vpop.f32.mrb[8].mxu1  ;;  %v1789_v55 = vpop.f32.mrb[9].mxu0 }
 0x13f   :  { %v1790_v56 = vadd.f32 %v1789_v55, %v1788_v52  ;;  %v1853_v57 = vpop.f32.mrb[9].mxu1  ;;  %v1791_v58 = vpop.f32.mrb[10].mxu0  ;;  %v292_v55 = vld [vmem:[#allocation7 + $0x58] sm:$0xff] }
 0x140   :  { %v1854_v59 = vadd.f32 %v1853_v57, %v1852_v53  ;;  %v1855_v60 = vpop.f32.mrb[10].mxu1  ;;  %v1792_v62 = vpop.f32.mrb[11].mxu0 }
 0x141   :  { %v1148_v63 = vadd.f32 %v1790_v56, %v285_v54  ;;  %v1793_v0 = vadd.f32 %v1792_v62, %v1791_v58  ;;  %v1856_v1 = vpop.f32.mrb[11].mxu1 }
 0x142   :  { %v1857_v2 = vadd.f32 %v1856_v1, %v1855_v60 }
 0x143   :  { %v2437_v3 = vadd.f32 %v1854_v59, %v1148_v63  ;;  %v1151_v4 = vadd.f32 %v1793_v0, %v286_v61 }
 0x145   :  { %v2439_v5 = vadd.f32 %v1857_v2, %v1151_v4  ;;  %v1794_v6 = vpop.f32.mrb[12].mxu0  ;;  %v293_v2 = vld [vmem:[#allocation7 + $0x60] sm:$0xff] }
 0x146   :  { %v1858_v7 = vpop.f32.mrb[12].mxu1  ;;  %v1795_v9 = vpop.f32.mrb[13].mxu0 }
 0x147   :  { %v1796_v10 = vadd.f32 %v1795_v9, %v1794_v6  ;;  %v1859_v11 = vpop.f32.mrb[13].mxu1  ;;  %v1797_v12 = vpop.f32.mrb[14].mxu0 }
 0x148   :  { %v1860_v13 = vadd.f32 %v1859_v11, %v1858_v7  ;;  %v1861_v14 = vpop.f32.mrb[14].mxu1  ;;  %v1798_v16 = vpop.f32.mrb[15].mxu0  ;;  %v294_v11 = vld [vmem:[#allocation7 + $0x68] sm:$0xff] }
 0x149   :  { %v1156_v17 = vadd.f32 %v1796_v10, %v287_v8  ;;  %v1799_v18 = vadd.f32 %v1798_v16, %v1797_v12  ;;  %v1862_v19 = vpop.f32.mrb[15].mxu1 }
 0x14a   :  { %v1863_v20 = vadd.f32 %v1862_v19, %v1861_v14 }
 0x14b   :  { %v2441_v21 = vadd.f32 %v1860_v13, %v1156_v17  ;;  %v1159_v22 = vadd.f32 %v1799_v18, %v288_v15 }
 0x14d   :  { %v2443_v23 = vadd.f32 %v1863_v20, %v1159_v22  ;;  %v1800_v24 = vpop.f32.mrb[16].mxu0 }
 0x14e   :  { %v1864_v25 = vpop.f32.mrb[16].mxu1  ;;  %v1801_v27 = vpop.f32.mrb[17].mxu0 }
 0x14f   :  { %v1802_v28 = vadd.f32 %v1801_v27, %v1800_v24  ;;  %v1865_v29 = vpop.f32.mrb[17].mxu1  ;;  %v1803_v30 = vpop.f32.mrb[18].mxu0  ;;  %v295_v24 = vld [vmem:[#allocation7 + $0x70] sm:$0xff] }
 0x150   :  { %v1866_v32 = vadd.f32 %v1865_v29, %v1864_v25  ;;  %v1867_v34 = vpop.f32.mrb[18].mxu1  ;;  %v1804_v36 = vpop.f32.mrb[19].mxu0 }
 0x151   :  { %v1164_v37 = vadd.f32 %v1802_v28, %v289_v26  ;;  %v1805_v38 = vadd.f32 %v1804_v36, %v1803_v30  ;;  %v1868_v39 = vpop.f32.mrb[19].mxu1 }
 0x152   :  { %v1869_v40 = vadd.f32 %v1868_v39, %v1867_v34 }
 0x153   :  { %v2445_v41 = vadd.f32 %v1866_v32, %v1164_v37  ;;  %v1167_v42 = vadd.f32 %v1805_v38, %v290_v35  ;;  %v296_v32 = vld [vmem:[#allocation7 + $0x78] sm:$0xff] }
 0x155   :  { %v2447_v43 = vadd.f32 %v1869_v40, %v1167_v42  ;;  %v1806_v44 = vpop.f32.mrb[20].mxu0 }
 0x156   :  { %v1870_v45 = vpop.f32.mrb[20].mxu1  ;;  %v1807_v47 = vpop.f32.mrb[21].mxu0 }
 0x157   :  { %v1808_v48 = vadd.f32 %v1807_v47, %v1806_v44  ;;  %v1871_v50 = vpop.f32.mrb[21].mxu1  ;;  %v1809_v52 = vpop.f32.mrb[22].mxu0 }
 0x158   :  { %v1872_v53 = vadd.f32 %v1871_v50, %v1870_v45  ;;  %v1873_v54 = vpop.f32.mrb[22].mxu1  ;;  %v1810_v56 = vpop.f32.mrb[23].mxu0 }
 0x159   :  { %v1172_v57 = vadd.f32 %v1808_v48, %v291_v46  ;;  %v1811_v58 = vadd.f32 %v1810_v56, %v1809_v52  ;;  %v1874_v59 = vpop.f32.mrb[23].mxu1 }
 0x15a   :  { %v1875_v60 = vadd.f32 %v1874_v59, %v1873_v54 }
 0x15b   :  { %v2449_v61 = vadd.f32 %v1872_v53, %v1172_v57  ;;  %v1175_v62 = vadd.f32 %v1811_v58, %v292_v55 }
 0x15d   :  { %v2451_v63 = vadd.f32 %v1875_v60, %v1175_v62  ;;  %v1812_v0 = vpop.f32.mrb[24].mxu0 }
 0x15e   :  { %v1876_v1 = vpop.f32.mrb[24].mxu1  ;;  %v1813_v4 = vpop.f32.mrb[25].mxu0 }
 0x15f   :  { %v1814_v6 = vadd.f32 %v1813_v4, %v1812_v0  ;;  %v1877_v7 = vpop.f32.mrb[25].mxu1  ;;  %v1815_v8 = vpop.f32.mrb[26].mxu0 }
 0x160   :  { %v1878_v9 = vadd.f32 %v1877_v7, %v1876_v1  ;;  %v1879_v10 = vpop.f32.mrb[26].mxu1  ;;  %v1816_v12 = vpop.f32.mrb[27].mxu0 }
 0x161   :  { %v1180_v13 = vadd.f32 %v1814_v6, %v293_v2  ;;  %v1817_v14 = vadd.f32 %v1816_v12, %v1815_v8  ;;  %v1880_v15 = vpop.f32.mrb[27].mxu1 }
 0x162   :  { %v1881_v16 = vadd.f32 %v1880_v15, %v1879_v10 }
 0x163   :  { %v2453_v17 = vadd.f32 %v1878_v9, %v1180_v13  ;;  %v1183_v18 = vadd.f32 %v1817_v14, %v294_v11 }
 0x165   :  { %v2455_v19 = vadd.f32 %v1881_v16, %v1183_v18  ;;  %v1818_v20 = vpop.f32.mrb[28].mxu0 }
 0x166   :  { %v1882_v22 = vpop.f32.mrb[28].mxu1  ;;  %v1819_v25 = vpop.f32.mrb[29].mxu0 }
 0x167   :  { %v1820_v26 = vadd.f32 %v1819_v25, %v1818_v20  ;;  %v1883_v27 = vpop.f32.mrb[29].mxu1  ;;  %v1821_v28 = vpop.f32.mrb[30].mxu0 }
 0x168   :  { %v1884_v29 = vadd.f32 %v1883_v27, %v1882_v22  ;;  %v1885_v30 = vpop.f32.mrb[30].mxu1  ;;  %v1822_v34 = vpop.f32.mrb[31].mxu0 }
 0x169   :  { %v1188_v35 = vadd.f32 %v1820_v26, %v295_v24  ;;  %v1823_v36 = vadd.f32 %v1822_v34, %v1821_v28  ;;  %v1886_v37 = vpop.f32.mrb[31].mxu1 }
 0x16a   :  { %v1887_v38 = vadd.f32 %v1886_v37, %v1885_v30 }
 0x16b   :  { %v2457_v39 = vadd.f32 %v1884_v29, %v1188_v35  ;;  %v1191_v40 = vadd.f32 %v1823_v36, %v296_v32 }
 0x16d   :  { %v2459_v42 = vadd.f32 %v1887_v38, %v1191_v40  ;;  %v1904_v44 = vpop.f32.mrb[32].mxu0 }
 0x16e   :  { %v1968_v45 = vpop.f32.mrb[32].mxu1  ;;  %v1905_v46 = vpop.f32.mrb[33].mxu0 }
 0x16f   :  { %v1906_v47 = vadd.f32 %v1905_v46, %v1904_v44  ;;  %v1969_v48 = vpop.f32.mrb[33].mxu1  ;;  %v1907_v50 = vpop.f32.mrb[34].mxu0 }
 0x170   :  { %v1970_v52 = vadd.f32 %v1969_v48, %v1968_v45  ;;  %v1971_v53 = vpop.f32.mrb[34].mxu1  ;;  %v1908_v54 = vpop.f32.mrb[35].mxu0 }
 0x171   :  { %v1326_v55 = vadd.f32 %v1906_v47, %v2429_v31  ;;  %v1909_v56 = vadd.f32 %v1908_v54, %v1907_v50  ;;  %v1972_v57 = vpop.f32.mrb[35].mxu1 }
 0x172   :  { %v1973_v58 = vadd.f32 %v1972_v57, %v1971_v53 }
 0x173   :  { %v1329_v59 = vadd.f32 %v1909_v56, %v2431_v33  ;;  %v2463_v60 = vadd.f32 %v1970_v52, %v1326_v55 }
 0x175   :  { %v1910_v62 = vpop.f32.mrb[36].mxu0  ;;  %v2465_v0 = vadd.f32 %v1973_v58, %v1329_v59 }
 0x176   :  { %v1974_v1 = vpop.f32.mrb[36].mxu1  ;;  %v1911_v2 = vpop.f32.mrb[37].mxu0 }
 0x177   :  { %v1912_v4 = vadd.f32 %v1911_v2, %v1910_v62  ;;  %v1975_v6 = vpop.f32.mrb[37].mxu1  ;;  %v1913_v7 = vpop.f32.mrb[38].mxu0 }
 0x178   :  { %v1976_v8 = vadd.f32 %v1975_v6, %v1974_v1  ;;  %v1977_v9 = vpop.f32.mrb[38].mxu1  ;;  %v1914_v10 = vpop.f32.mrb[39].mxu0 }
 0x179   :  { %v1334_v31 = vadd.f32 %v1912_v4, %v2433_v49  ;;  %v1915_v11 = vadd.f32 %v1914_v10, %v1913_v7  ;;  %v1978_v12 = vpop.f32.mrb[39].mxu1 }
 0x17a   :  { %v1979_v13 = vadd.f32 %v1978_v12, %v1977_v9 }
 0x17b   :  { %v1337_v33 = vadd.f32 %v1915_v11, %v2435_v51  ;;  %v2469_v14 = vadd.f32 %v1976_v8, %v1334_v31 }
 0x17d   :  { %v1916_v15 = vpop.f32.mrb[40].mxu0  ;;  %v2471_v16 = vadd.f32 %v1979_v13, %v1337_v33 }
 0x17e   :  { %v1980_v18 = vpop.f32.mrb[40].mxu1  ;;  %v1917_v20 = vpop.f32.mrb[41].mxu0 }
 0x17f   :  { %v1918_v22 = vadd.f32 %v1917_v20, %v1916_v15  ;;  %v1981_v24 = vpop.f32.mrb[41].mxu1  ;;  %v1919_v25 = vpop.f32.mrb[42].mxu0 }
 0x180   :  { %v1982_v26 = vadd.f32 %v1981_v24, %v1980_v18  ;;  %v1983_v27 = vpop.f32.mrb[42].mxu1  ;;  %v1920_v28 = vpop.f32.mrb[43].mxu0 }
 0x181   :  { %v1342_v49 = vadd.f32 %v1918_v22, %v2437_v3  ;;  %v1921_v29 = vadd.f32 %v1920_v28, %v1919_v25  ;;  %v1984_v30 = vpop.f32.mrb[43].mxu1 }
 0x182   :  { %v1985_v32 = vadd.f32 %v1984_v30, %v1983_v27 }
 0x183   :  { %v1345_v51 = vadd.f32 %v1921_v29, %v2439_v5  ;;  %v2475_v34 = vadd.f32 %v1982_v26, %v1342_v49 }
 0x185   :  { %v1922_v35 = vpop.f32.mrb[44].mxu0  ;;  %v2477_v36 = vadd.f32 %v1985_v32, %v1345_v51 }
 0x186   :  { %v1986_v37 = vpop.f32.mrb[44].mxu1  ;;  %v1923_v38 = vpop.f32.mrb[45].mxu0 }
 0x187   :  { %v1924_v40 = vadd.f32 %v1923_v38, %v1922_v35  ;;  %v1987_v44 = vpop.f32.mrb[45].mxu1  ;;  %v1925_v45 = vpop.f32.mrb[46].mxu0 }
 0x188   :  { %v1988_v46 = vadd.f32 %v1987_v44, %v1986_v37  ;;  %v1989_v47 = vpop.f32.mrb[46].mxu1  ;;  %v1926_v48 = vpop.f32.mrb[47].mxu0 }
 0x189   :  { %v1350_v3 = vadd.f32 %v1924_v40, %v2441_v21  ;;  %v1927_v50 = vadd.f32 %v1926_v48, %v1925_v45  ;;  %v1990_v52 = vpop.f32.mrb[47].mxu1 }
 0x18a   :  { %v1991_v53 = vadd.f32 %v1990_v52, %v1989_v47 }
 0x18b   :  { %v1353_v5 = vadd.f32 %v1927_v50, %v2443_v23  ;;  %v2481_v54 = vadd.f32 %v1988_v46, %v1350_v3 }
 0x18d   :  { %v1928_v55 = vpop.f32.mrb[48].mxu0  ;;  %v2483_v56 = vadd.f32 %v1991_v53, %v1353_v5 }
 0x18e   :  { %v1992_v57 = vpop.f32.mrb[48].mxu1  ;;  %v1929_v58 = vpop.f32.mrb[49].mxu0 }
 0x18f   :  { %v1930_v59 = vadd.f32 %v1929_v58, %v1928_v55  ;;  %v1993_v62 = vpop.f32.mrb[49].mxu1  ;;  %v1931_v1 = vpop.f32.mrb[50].mxu0 }
 0x190   :  { %v1994_v2 = vadd.f32 %v1993_v62, %v1992_v57  ;;  %v1995_v4 = vpop.f32.mrb[50].mxu1  ;;  %v1932_v6 = vpop.f32.mrb[51].mxu0 }
 0x191   :  { %v1358_v21 = vadd.f32 %v1930_v59, %v2445_v41  ;;  %v1933_v7 = vadd.f32 %v1932_v6, %v1931_v1  ;;  %v1996_v8 = vpop.f32.mrb[51].mxu1 }
 0x192   :  { %v1997_v9 = vadd.f32 %v1996_v8, %v1995_v4 }
 0x193   :  { %v1361_v23 = vadd.f32 %v1933_v7, %v2447_v43  ;;  %v1455_v10 = vadd.f32 %v1994_v2, %v1358_v21 }
 0x195   :  { %v1934_v31 = vpop.f32.mrb[52].mxu0  ;;  %v2487_v11 = vadd.f32 %v1997_v9, %v1361_v23 }
 0x196   :  { %v1998_v12 = vpop.f32.mrb[52].mxu1  ;;  %v1935_v13 = vpop.f32.mrb[53].mxu0 }
 0x197   :  { %v1936_v33 = vadd.f32 %v1935_v13, %v1934_v31  ;;  %v1999_v15 = vpop.f32.mrb[53].mxu1  ;;  %v1937_v18 = vpop.f32.mrb[54].mxu0 }
 0x198   :  { %v2000_v20 = vadd.f32 %v1999_v15, %v1998_v12  ;;  %v2001_v22 = vpop.f32.mrb[54].mxu1  ;;  %v1938_v24 = vpop.f32.mrb[55].mxu0 }
 0x199   :  { %v1366_v25 = vadd.f32 %v1936_v33, %v2449_v61  ;;  %v1939_v41 = vadd.f32 %v1938_v24, %v1937_v18  ;;  %v2002_v26 = vpop.f32.mrb[55].mxu1 }
 0x19a   :  { %v2003_v27 = vadd.f32 %v2002_v26, %v2001_v22 }
 0x19b   :  { %v1369_v28 = vadd.f32 %v1939_v41, %v2451_v63  ;;  %v1463_v43 = vadd.f32 %v2000_v20, %v1366_v25 }
 0x19d   :  { %v1940_v49 = vpop.f32.mrb[56].mxu0  ;;  %v1466_v29 = vadd.f32 %v2003_v27, %v1369_v28 }
 0x19e   :  { %v2004_v30 = vpop.f32.mrb[56].mxu1  ;;  %v1941_v32 = vpop.f32.mrb[57].mxu0 }
 0x19f   :  { %v1942_v51 = vadd.f32 %v1941_v32, %v1940_v49  ;;  %v2005_v35 = vpop.f32.mrb[57].mxu1  ;;  %v1943_v37 = vpop.f32.mrb[58].mxu0 }
 0x1a0   :  { %v2006_v38 = vadd.f32 %v2005_v35, %v2004_v30  ;;  %v2007_v40 = vpop.f32.mrb[58].mxu1  ;;  %v1944_v44 = vpop.f32.mrb[59].mxu0 }
 0x1a1   :  { %v1374_v45 = vadd.f32 %v1942_v51, %v2453_v17  ;;  %v1945_v46 = vadd.f32 %v1944_v44, %v1943_v37  ;;  %v2008_v61 = vpop.f32.mrb[59].mxu1 }
 0x1a2   :  { %v2009_v47 = vadd.f32 %v2008_v61, %v2007_v40 }
 0x1a3   :  { %v1377_v48 = vadd.f32 %v1945_v46, %v2455_v19  ;;  %v1471_v3 = vadd.f32 %v2006_v38, %v1374_v45 }
 0x1a5   :  { %v1946_v63 = vpop.f32.mrb[60].mxu0  ;;  %v1474_v50 = vadd.f32 %v2009_v47, %v1377_v48 }
 0x1a6   :  { %v2010_v52 = vpop.f32.mrb[60].mxu1  ;;  %v1947_v53 = vpop.f32.mrb[61].mxu0 }
 0x1a7   :  { %v1948_v5 = vadd.f32 %v1947_v53, %v1946_v63  ;;  %v2011_v55 = vpop.f32.mrb[61].mxu1  ;;  %v1949_v57 = vpop.f32.mrb[62].mxu0 }
 0x1a8   :  { %v2012_v58 = vadd.f32 %v2011_v55, %v2010_v52  ;;  %v2013_v59 = vpop.f32.mrb[62].mxu1  ;;  %v1950_v62 = vpop.f32.mrb[63].mxu0 }
 0x1a9   :  { %v1382_v1 = vadd.f32 %v1948_v5, %v2457_v39  ;;  %v1951_v2 = vadd.f32 %v1950_v62, %v1949_v57  ;;  %v2014_v17 = vpop.f32.mrb[63].mxu1 }
 0x1aa   :  { %v2015_v4 = vadd.f32 %v2014_v17, %v2013_v59 }
 0x1ab   :  { %v1385_v6 = vadd.f32 %v1951_v2, %v2459_v42  ;;  %v1479_v21 = vadd.f32 %v2012_v58, %v1382_v1 }
 0x1ad   :  { %v2050_v19 = vpop.f32.mrb[64].mxu0  ;;  %v1482_v7 = vadd.f32 %v2015_v4, %v1385_v6 }
 0x1ae   :  { %v1528_v8 = vadd.f32 %v2050_v19, %v2469_v14  ;;  %v2058_v9 = vpop.f32.mrb[64].mxu1  ;;  %v1519_v23 = vpop.f32.mrb[65].mxu0 }
 0x1af   :  { %v1560_v31 = vadd.f32 %v2058_v9, %v1463_v43  ;;  %v1520_v12 = vadd.f32 %v1519_v23, %v2463_v60  ;;  %v1551_v13 = vpop.f32.mrb[65].mxu1  ;;  %v2051_v33 = vpop.f32.mrb[66].mxu0 }
 0x1b0   :  { %1584 = vst [vmem:[#allocation8 + $0x10] sm:$0xff] %v1528_v8  ;;  %v1552_v15 = vadd.f32 %v1551_v13, %v1455_v10  ;;  %v1531_v39 = vadd.f32 %v2051_v33, %v2471_v16  ;;  %v2059_v18 = vpop.f32.mrb[66].mxu1  ;;  %v1522_v20 = vpop.f32.mrb[67].mxu0 }
 0x1b1   :  { %1592 = vst [vmem:[#allocation8 + $0x50] sm:$0xff] %v1560_v31  ;;  %1582 = vst [vmem:[#allocation8] sm:$0xff] %v1520_v12  ;;  %v1563_v42 = vadd.f32 %v2059_v18, %v1466_v29  ;;  %v1523_v22 = vadd.f32 %v1522_v20, %v2465_v0  ;;  %v1554_v24 = vpop.f32.mrb[67].mxu1 }
 0x1b2   :  { %1590 = vst [vmem:[#allocation8 + $0x40] sm:$0xff] %v1552_v15  ;;  %1585 = vst [vmem:[#allocation8 + $0x18] sm:$0xff] %v1531_v39  ;;  %v1555_v14 = vadd.f32 %v1554_v24, %v2487_v11 }
 0x1b3   :  { %1593 = vst [vmem:[#allocation8 + $0x58] sm:$0xff] %v1563_v42  ;;  %1583 = vst [vmem:[#allocation8 + $0x8] sm:$0xff] %v1523_v22 }
 0x1b4   :  { %1591 = vst [vmem:[#allocation8 + $0x48] sm:$0xff] %v1555_v14 }
 0x1b5   :  { %v2054_v60 = vpop.f32.mrb[68].mxu0 }
 0x1b6   :  { %v1544_v10 = vadd.f32 %v2054_v60, %v2481_v54  ;;  %v2062_v25 = vpop.f32.mrb[68].mxu1  ;;  %v1535_v16 = vpop.f32.mrb[69].mxu0 }
 0x1b7   :  { %v1576_v41 = vadd.f32 %v2062_v25, %v1479_v21  ;;  %v1536_v26 = vadd.f32 %v1535_v16, %v2475_v34  ;;  %v1567_v27 = vpop.f32.mrb[69].mxu1  ;;  %v2055_v28 = vpop.f32.mrb[70].mxu0 }
 0x1b8   :  { %1588 = vst [vmem:[#allocation8 + $0x30] sm:$0xff] %v1544_v10  ;;  %v1568_v0 = vadd.f32 %v1567_v27, %v1471_v3  ;;  %v1547_v43 = vadd.f32 %v2055_v28, %v2483_v56  ;;  %v2063_v11 = vpop.f32.mrb[70].mxu1  ;;  %v1538_v49 = vpop.f32.mrb[71].mxu0 }
 0x1b9   :  { %1596 = vst [vmem:[#allocation8 + $0x70] sm:$0xff] %v1576_v41  ;;  %1586 = vst [vmem:[#allocation8 + $0x20] sm:$0xff] %v1536_v26  ;;  %v1579_v29 = vadd.f32 %v2063_v11, %v1482_v7  ;;  %v1539_v54 = vadd.f32 %v1538_v49, %v2477_v36  ;;  %v1570_v30 = vpop.f32.mrb[71].mxu1 }
 0x1ba   :  { %1594 = vst [vmem:[#allocation8 + $0x60] sm:$0xff] %v1568_v0  ;;  %1589 = vst [vmem:[#allocation8 + $0x38] sm:$0xff] %v1547_v43  ;;  %v1571_v32 = vadd.f32 %v1570_v30, %v1474_v50 }
 0x1bb   :  { %1597 = vst [vmem:[#allocation8 + $0x78] sm:$0xff] %v1579_v29  ;;  %1587 = vst [vmem:[#allocation8 + $0x28] sm:$0xff] %v1539_v54 }
 0x1bc   :  { %1595 = vst [vmem:[#allocation8 + $0x68] sm:$0xff] %v1571_v32 }
 0x1bd   :  { %2343 = shalt.err (!%p2340_p0)
}
 0x1be   :  { %s2344_s29 = scalar_lea.hbm %s2522_s3, 2048 }
 0x1bf   :  { %p2345_p1 = scmp.ne.s32.totalorder %s2522_s3, %s2344_s29  ;;  %p2348_p2 = scmp.lt.u32.totalorder %s2344_s29, %s2522_s3 }
 0x1c1   :  { %p2350_p3 = pnand %p2348_p2, %p2345_p1 }
 0x1c3   :  { %2353 = shalt.err (!%p2350_p3)
}
 0x1c4   :  { %1609 = dma.vmem_to_hbm [thread:$0]  %s1604_s25, 2048, %s2522_s3, [#allocation4], %s2367_s0, %s2367_s0, %s2368_s22  }
 0x1c5   :  { %2358 = dma.done.wait [#allocation4], 2048  }
 0x1c6   :  { %2359 = vsyncadd [#allocation4], 4294965248 }
 0x1c7   :  { %1613 = vsyncpa [#allocation3], 1 }
 0x1c8   :  { %1614 = vsyncpa [#allocation6], 1 }
 0x1c9   :  { %1615 = vsyncpa [#allocation4], 1 }

</bundles_post_ra>
